<compile_context>
chip_gen: v5e
topology: v5e:2x2
jax: 0.10.0
libtpu: 0.0.40
codegen_flags: <defaults>
</compile_context>

<pallas_src>
import functools

import jax
import jax.numpy as jnp
from jax.experimental import pallas as pl
from jax.experimental.pallas import tpu as pltpu


# ----------------------------------------------------------------------------
# Fully fused forward kernel (one grid step = one image)
# ----------------------------------------------------------------------------
def _dekr_fused_kernel(x_ref, w_t_ref, sh_t_ref,
                       w1_ref, sh1_ref, w2_ref, sh2_ref,
                       w_f_ref, b_f_ref, mask_d_ref, mask_1_ref,
                       out_ref, cols_ref,
                       *, H, W, C1, num_blocks, dilation):
    P = H * W

    def conv3x3(feat_f32, w_bf16, mask_ref, dil):
        """3x3 'same' conv with dilation `dil` on a resident (C1, P) f32 map.

        Builds the (9*C1, P) im2col matrix in-kernel (pltpu.roll along the
        lane/pixel axis + zero-padding mask) into cols_ref, then one MXU
        matmul: (Cout, 9*C1) @ (9*C1, P) with f32 accumulation.
        """
        for t in range(9):
            dh = (t // 3 - 1) * dil
            dw = (t % 3 - 1) * dil
            off = dh * W + dw                       # flat pixel offset of tap
            s = (-off) % P
            shifted = feat_f32 if s == 0 else pltpu.roll(feat_f32, shift=s, axis=1)
            if off == 0:
                masked = shifted                    # center tap: always valid
            else:
                masked = shifted * mask_ref[t]      # (1, P) boundary mask
            cols_ref[t * C1:(t + 1) * C1, :] = masked.astype(jnp.bfloat16)
        return jnp.dot(w_bf16, cols_ref[...], preferred_element_type=jnp.float32)

    # --- transition: 1x1 conv (scale-folded, no bias) + shift + ReLU ---------
    x = x_ref[0].astype(jnp.bfloat16)                               # (C0, P)
    feat = jnp.dot(w_t_ref[...], x, preferred_element_type=jnp.float32)
    feat = jnp.maximum(feat + sh_t_ref[...], 0.0)                   # (C1, P) f32

    # --- BasicBlocks (dilated 3x3 convs, identity residual) ------------------
    for i in range(num_blocks):
        res = feat
        y = conv3x3(feat, w1_ref[i], mask_d_ref, dilation) + sh1_ref[i]
        y = jnp.maximum(y, 0.0)
        y = conv3x3(y, w2_ref[i], mask_d_ref, dilation) + sh2_ref[i]
        feat = jnp.maximum(y + res, 0.0)

    # --- final 3x3 conv (dilation 1, padding 1) + bias ------------------------
    out = conv3x3(feat, w_f_ref[...], mask_1_ref, 1) + b_f_ref[...]
    out_ref[0] = out.astype(out_ref.dtype)


def _make_tap_masks(h, w, dil):
    """(9, 1, h*w) f32 validity masks for the 9 taps of a dilated 3x3 conv."""
    hh = jnp.arange(h * w, dtype=jnp.int32) // w
    ww = jnp.arange(h * w, dtype=jnp.int32) % w
    rows = []
    for t in range(9):
        dh = (t // 3 - 1) * dil
        dw = (t % 3 - 1) * dil
        valid = ((hh + dh >= 0) & (hh + dh < h) &
                 (ww + dw >= 0) & (ww + dw < w))
        rows.append(valid)
    return jnp.stack(rows).astype(jnp.float32).reshape(9, 1, h * w)


# ----------------------------------------------------------------------------
# DEKRHeatmap forward (single pallas_call; everything resident in VMEM)
# ----------------------------------------------------------------------------
def dekr_heatmap_forward(x_nchw, params):
    b, c0, h, w = x_nchw.shape
    p = h * w
    d = params["dilation"]
    c1 = params["trans_w"].shape[1]
    cj = params["final_w"].shape[1]
    nb = len(params["blocks"])

    # Channel-major, pixels on the lane axis: NCHW -> (B, C0, H*W) is free.
    x_cm = x_nchw.reshape(b, c0, p).astype(jnp.float32)

    # Fold BN scale into the weight rows (per output channel), transpose to
    # (Cout, K) for channel-major matmuls, cast to bf16; shifts stay f32.
    w_t = (params["trans_scale"][:, None] * params["trans_w"].T).astype(jnp.bfloat16)
    sh_t = params["trans_shift"].reshape(c1, 1).astype(jnp.float32)

    w1 = jnp.stack([blk["scale1"][:, None] * blk["w1"].T
                    for blk in params["blocks"]]).astype(jnp.bfloat16)   # (nb, C1, 9C1)
    sh1 = jnp.stack([blk["shift1"].reshape(c1, 1)
                     for blk in params["blocks"]]).astype(jnp.float32)   # (nb, C1, 1)
    w2 = jnp.stack([blk["scale2"][:, None] * blk["w2"].T
                    for blk in params["blocks"]]).astype(jnp.bfloat16)
    sh2 = jnp.stack([blk["shift2"].reshape(c1, 1)
                     for blk in params["blocks"]]).astype(jnp.float32)

    w_f = params["final_w"].T.astype(jnp.bfloat16)                       # (CJ, 9C1)
    b_f = params["final_b"].reshape(cj, 1).astype(jnp.float32)

    mask_d = _make_tap_masks(h, w, d)   # masks for the dilated block convs
    mask_1 = _make_tap_masks(h, w, 1)   # masks for the final 3x3 conv

    kernel = functools.partial(_dekr_fused_kernel, H=h, W=w, C1=c1,
                               num_blocks=nb, dilation=d)

    out = pl.pallas_call(
        kernel,
        out_shape=jax.ShapeDtypeStruct((b, cj, p), jnp.float32),
        grid_spec=pltpu.PrefetchScalarGridSpec(
            num_scalar_prefetch=0,
            grid=(b,),
            in_specs=[
                pl.BlockSpec((1, c0, p), lambda i: (i, 0, 0)),          # x
                pl.BlockSpec((c1, c0), lambda i: (0, 0)),               # w_t
                pl.BlockSpec((c1, 1), lambda i: (0, 0)),                # sh_t
                pl.BlockSpec((nb, c1, 9 * c1), lambda i: (0, 0, 0)),    # w1
                pl.BlockSpec((nb, c1, 1), lambda i: (0, 0, 0)),         # sh1
                pl.BlockSpec((nb, c1, 9 * c1), lambda i: (0, 0, 0)),    # w2
                pl.BlockSpec((nb, c1, 1), lambda i: (0, 0, 0)),         # sh2
                pl.BlockSpec((cj, 9 * c1), lambda i: (0, 0)),           # w_f
                pl.BlockSpec((cj, 1), lambda i: (0, 0)),                # b_f
                pl.BlockSpec((9, 1, p), lambda i: (0, 0, 0)),           # mask_d
                pl.BlockSpec((9, 1, p), lambda i: (0, 0, 0)),           # mask_1
            ],
            out_specs=pl.BlockSpec((1, cj, p), lambda i: (i, 0, 0)),
            scratch_shapes=[pltpu.VMEM((9 * c1, p), jnp.bfloat16)],     # im2col cols
        ),
        compiler_params=pltpu.CompilerParams(
            dimension_semantics=("parallel",),
            vmem_limit_bytes=32 * 1024 * 1024,
        ),
    )(x_cm, w_t, sh_t, w1, sh1, w2, sh2, w_f, b_f, mask_d, mask_1)

    return out.reshape(b, cj, h, w)                                     # NCHW


# ----------------------------------------------------------------------------
# Pure-JAX f32 reference (lax.conv, unfolded BN params) for validation
# ----------------------------------------------------------------------------
def reference_forward(x_nchw, params):
    x = jnp.transpose(x_nchw, (0, 2, 3, 1)).astype(jnp.float32)

    def conv(v, w_hwio, dil, pad):
        return jax.lax.conv_general_dilated(
            v, w_hwio, window_strides=(1, 1),
            padding=[(pad, pad), (pad, pad)], rhs_dilation=(dil, dil),
            dimension_numbers=("NHWC", "HWIO", "NHWC"))

    c0 = x.shape[-1]
    c1 = params["trans_w"].shape[1]
    feat = conv(x, params["trans_w"].reshape(1, 1, c0, c1), 1, 0)
    feat = jnp.maximum(feat * params["trans_scale"] + params["trans_shift"], 0.0)

    d = params["dilation"]
    for blk in params["blocks"]:
        res = feat
        y = conv(feat, blk["w1"].reshape(3, 3, c1, c1), d, d)
        y = jnp.maximum(y * blk["scale1"] + blk["shift1"], 0.0)
        y = conv(y, blk["w2"].reshape(3, 3, c1, c1), d, d)
        y = y * blk["scale2"] + blk["shift2"] + res
        feat = jnp.maximum(y, 0.0)

    cj = params["final_w"].shape[1]
    out = conv(feat, params["final_w"].reshape(3, 3, c1, cj), 1, 1) + params["final_b"]
    return jnp.transpose(out, (0, 3, 1, 2))


# ----------------------------------------------------------------------------
# Deterministic parameter init (synthetic weights; eval-mode BN folded)
# ----------------------------------------------------------------------------
def _folded_bn(key, c, eps=1e-5):
    k1, k2, k3, k4 = jax.random.split(key, 4)
    gamma = 1.0 + 0.1 * jax.random.normal(k1, (c,), jnp.float32)
    beta = 0.1 * jax.random.normal(k2, (c,), jnp.float32)
    mean = 0.1 * jax.random.normal(k3, (c,), jnp.float32)
    var = 0.5 + 0.5 * jnp.abs(jax.random.normal(k4, (c,), jnp.float32))
    scale = gamma / jnp.sqrt(var + eps)
    shift = beta - mean * scale
    return scale, shift


def init_params(key, channels, num_blocks, dilation_rate):
    c0, c1, cj = channels
    keys = iter(jax.random.split(key, 8 + 6 * num_blocks))

    def w_mat(k, fan_in, cout):
        return (jax.random.normal(k, (fan_in, cout), jnp.float32)
                / jnp.sqrt(jnp.float32(fan_in)))

    params = {"dilation": dilation_rate}
    params["trans_w"] = w_mat(next(keys), c0, c1)                 # 1x1 conv
    params["trans_scale"], params["trans_shift"] = _folded_bn(next(keys), c1)

    blocks = []
    for _ in range(num_blocks):
        blk = {}
        blk["w1"] = w_mat(next(keys), 9 * c1, c1)                 # 3x3 dilated conv
        blk["scale1"], blk["shift1"] = _folded_bn(next(keys), c1)
        blk["w2"] = w_mat(next(keys), 9 * c1, c1)
        blk["scale2"], blk["shift2"] = _folded_bn(next(keys), c1)
        blocks.append(blk)
    params["blocks"] = blocks

    params["final_w"] = w_mat(next(keys), 9 * c1, cj)             # final 3x3 conv
    params["final_b"] = 0.1 * jax.random.normal(next(keys), (cj,), jnp.float32)
    return params


# ----------------------------------------------------------------------------
if __name__ == "__main__":
    # Small config: channels=(16, 32, 8), num_blocks=2, dilation=2, final k=3
    channels = (16, 32, 8)
    num_blocks = 2
    dilation_rate = 2
    B, H, W = 2, 16, 16

    root = jax.random.PRNGKey(0)
    kx, kp = jax.random.split(root)
    x = jax.random.normal(kx, (B, channels[0], H, W), jnp.float32)   # NCHW input
    params = init_params(kp, channels, num_blocks, dilation_rate)

    out = jax.block_until_ready(dekr_heatmap_forward(x, params))
    assert out.shape == (B, channels[2], H, W), out.shape

    ref = jax.block_until_ready(reference_forward(x, params))
    max_err = float(jnp.max(jnp.abs(out - ref)))
    # bf16 MXU inputs + f32 accumulation over 6 conv layers -> a few % tolerance
    # vs the f32 lax.conv reference.
    assert jnp.allclose(out, ref, rtol=5e-2, atol=1e-1), max_err

    print("KERNEL_OK")
</pallas_src>

<mosaic_0001>
module attributes {stable_mosaic.version = 11 : i64} {
  func.func @_dekr_fused_kernel(%arg0: i32, %arg1: memref<1x16x256xf32, #tpu.memory_space<vmem>>, %arg2: memref<32x16xbf16, #tpu.memory_space<vmem>>, %arg3: memref<32x1xf32, #tpu.memory_space<vmem>>, %arg4: memref<2x32x288xbf16, #tpu.memory_space<vmem>>, %arg5: memref<2x32x1xf32, #tpu.memory_space<vmem>>, %arg6: memref<2x32x288xbf16, #tpu.memory_space<vmem>>, %arg7: memref<2x32x1xf32, #tpu.memory_space<vmem>>, %arg8: memref<8x288xbf16, #tpu.memory_space<vmem>>, %arg9: memref<8x1xf32, #tpu.memory_space<vmem>>, %arg10: memref<9x1x256xf32, #tpu.memory_space<vmem>>, %arg11: memref<9x1x256xf32, #tpu.memory_space<vmem>>, %arg12: memref<1x8x256xf32, #tpu.memory_space<vmem>>, %arg13: memref<288x256xbf16, #tpu.memory_space<vmem>>) attributes {dimension_semantics = [#tpu.dimension_semantics<parallel>], iteration_bounds = array<i64: 2>, scalar_prefetch = 0 : i64, scratch_operands = 1 : i64, tpu.core_type = #tpu.core_type<tc>, window_params = [{transform_indices = @transform_0, window_bounds = array<i64: 1, 16, 256>}, {pipeline_mode = #tpu.pipeline_mode<synchronous>, transform_indices = @transform_1, window_bounds = array<i64: 32, 16>}, {pipeline_mode = #tpu.pipeline_mode<synchronous>, transform_indices = @transform_2, window_bounds = array<i64: 32, 1>}, {pipeline_mode = #tpu.pipeline_mode<synchronous>, transform_indices = @transform_3, window_bounds = array<i64: 2, 32, 288>}, {pipeline_mode = #tpu.pipeline_mode<synchronous>, transform_indices = @transform_4, window_bounds = array<i64: 2, 32, 1>}, {pipeline_mode = #tpu.pipeline_mode<synchronous>, transform_indices = @transform_5, window_bounds = array<i64: 2, 32, 288>}, {pipeline_mode = #tpu.pipeline_mode<synchronous>, transform_indices = @transform_6, window_bounds = array<i64: 2, 32, 1>}, {pipeline_mode = #tpu.pipeline_mode<synchronous>, transform_indices = @transform_7, window_bounds = array<i64: 8, 288>}, {pipeline_mode = #tpu.pipeline_mode<synchronous>, transform_indices = @transform_8, window_bounds = array<i64: 8, 1>}, {pipeline_mode = #tpu.pipeline_mode<synchronous>, transform_indices = @transform_9, window_bounds = array<i64: 9, 1, 256>}, {pipeline_mode = #tpu.pipeline_mode<synchronous>, transform_indices = @transform_10, window_bounds = array<i64: 9, 1, 256>}, {transform_indices = @transform_11, window_bounds = array<i64: 1, 8, 256>}]} {
    %c0 = arith.constant 0 : index
    %c0_0 = arith.constant 0 : index
    %c0_1 = arith.constant 0 : index
    %0 = vector.load %arg1[%c0, %c0_0, %c0_1] : memref<1x16x256xf32, #tpu.memory_space<vmem>>, vector<1x16x256xf32>
    %1 = vector.shape_cast %0 : vector<1x16x256xf32> to vector<16x256xf32>
    %2 = arith.truncf %1 : vector<16x256xf32> to vector<16x256xbf16>
    %c0_2 = arith.constant 0 : index
    %c0_3 = arith.constant 0 : index
    %3 = vector.load %arg2[%c0_2, %c0_3] : memref<32x16xbf16, #tpu.memory_space<vmem>>, vector<32x16xbf16>
    %cst = arith.constant dense<0.000000e+00> : vector<32x256xf32>
    %4 = tpu.matmul %3, %2, %cst {dimension_numbers = #tpu.dot_dimension_numbers<[1], [0], [0], [1], [0, 0, 1, 1], [], []>} : vector<32x16xbf16>, vector<16x256xbf16>, vector<32x256xf32> -> vector<32x256xf32>
    %c0_4 = arith.constant 0 : index
    %c0_5 = arith.constant 0 : index
    %5 = vector.load %arg3[%c0_4, %c0_5] : memref<32x1xf32, #tpu.memory_space<vmem>>, vector<32x1xf32>
    %6 = vector.broadcast %5 : vector<32x1xf32> to vector<32x256xf32>
    %7 = arith.addf %4, %6 : vector<32x256xf32>
    %cst_6 = arith.constant 0.000000e+00 : f32
    %8 = vector.broadcast %cst_6 : f32 to vector<32x256xf32>
    %9 = arith.maximumf %7, %8 : vector<32x256xf32>
    %c0_7 = arith.constant 0 : index
    %c0_8 = arith.constant 0 : index
    %c0_9 = arith.constant 0 : index
    %10 = vector.load %arg4[%c0_7, %c0_8, %c0_9] : memref<2x32x288xbf16, #tpu.memory_space<vmem>>, vector<1x32x288xbf16>
    %11 = vector.shape_cast %10 : vector<1x32x288xbf16> to vector<32x288xbf16>
    %c34_i32 = arith.constant 34 : i32
    %12 = tpu.dynamic_rotate %9 by %c34_i32 dim 1 : vector<32x256xf32>, i32 -> vector<32x256xf32>
    %c0_10 = arith.constant 0 : index
    %c0_11 = arith.constant 0 : index
    %c0_12 = arith.constant 0 : index
    %13 = vector.load %arg10[%c0_10, %c0_11, %c0_12] : memref<9x1x256xf32, #tpu.memory_space<vmem>>, vector<1x1x256xf32>
    %14 = vector.shape_cast %13 : vector<1x1x256xf32> to vector<1x256xf32>
    %15 = vector.broadcast %14 : vector<1x256xf32> to vector<32x256xf32>
    %16 = arith.mulf %12, %15 : vector<32x256xf32>
    %17 = arith.truncf %16 : vector<32x256xf32> to vector<32x256xbf16>
    %c0_13 = arith.constant 0 : index
    %c0_14 = arith.constant 0 : index
    %18 = vector.load %arg13[%c0_13, %c0_14] : memref<288x256xbf16, #tpu.memory_space<vmem>>, vector<32x256xbf16>
    tpu.vector_store %arg13[%c0_13, %c0_14], %17 {strides = array<i32>} : memref<288x256xbf16, #tpu.memory_space<vmem>>, vector<32x256xbf16>,
    %c32_i32 = arith.constant 32 : i32
    %19 = tpu.dynamic_rotate %9 by %c32_i32 dim 1 : vector<32x256xf32>, i32 -> vector<32x256xf32>
    %c1 = arith.constant 1 : index
    %c0_15 = arith.constant 0 : index
    %c0_16 = arith.constant 0 : index
    %20 = vector.load %arg10[%c1, %c0_15, %c0_16] : memref<9x1x256xf32, #tpu.memory_space<vmem>>, vector<1x1x256xf32>
    %21 = vector.shape_cast %20 : vector<1x1x256xf32> to vector<1x256xf32>
    %22 = vector.broadcast %21 : vector<1x256xf32> to vector<32x256xf32>
    %23 = arith.mulf %19, %22 : vector<32x256xf32>
    %24 = arith.truncf %23 : vector<32x256xf32> to vector<32x256xbf16>
    %c32 = arith.constant 32 : index
    %c0_17 = arith.constant 0 : index
    %25 = vector.load %arg13[%c32, %c0_17] : memref<288x256xbf16, #tpu.memory_space<vmem>>, vector<32x256xbf16>
    tpu.vector_store %arg13[%c32, %c0_17], %24 {strides = array<i32>} : memref<288x256xbf16, #tpu.memory_space<vmem>>, vector<32x256xbf16>,
    %c30_i32 = arith.constant 30 : i32
    %26 = tpu.dynamic_rotate %9 by %c30_i32 dim 1 : vector<32x256xf32>, i32 -> vector<32x256xf32>
    %c2 = arith.constant 2 : index
    %c0_18 = arith.constant 0 : index
    %c0_19 = arith.constant 0 : index
    %27 = vector.load %arg10[%c2, %c0_18, %c0_19] : memref<9x1x256xf32, #tpu.memory_space<vmem>>, vector<1x1x256xf32>
    %28 = vector.shape_cast %27 : vector<1x1x256xf32> to vector<1x256xf32>
    %29 = vector.broadcast %28 : vector<1x256xf32> to vector<32x256xf32>
    %30 = arith.mulf %26, %29 : vector<32x256xf32>
    %31 = arith.truncf %30 : vector<32x256xf32> to vector<32x256xbf16>
    %c64 = arith.constant 64 : index
    %c0_20 = arith.constant 0 : index
    %32 = vector.load %arg13[%c64, %c0_20] : memref<288x256xbf16, #tpu.memory_space<vmem>>, vector<32x256xbf16>
    tpu.vector_store %arg13[%c64, %c0_20], %31 {strides = array<i32>} : memref<288x256xbf16, #tpu.memory_space<vmem>>, vector<32x256xbf16>,
    %c2_i32 = arith.constant 2 : i32
    %33 = tpu.dynamic_rotate %9 by %c2_i32 dim 1 : vector<32x256xf32>, i32 -> vector<32x256xf32>
    %c3 = arith.constant 3 : index
    %c0_21 = arith.constant 0 : index
    %c0_22 = arith.constant 0 : index
    %34 = vector.load %arg10[%c3, %c0_21, %c0_22] : memref<9x1x256xf32, #tpu.memory_space<vmem>>, vector<1x1x256xf32>
    %35 = vector.shape_cast %34 : vector<1x1x256xf32> to vector<1x256xf32>
    %36 = vector.broadcast %35 : vector<1x256xf32> to vector<32x256xf32>
    %37 = arith.mulf %33, %36 : vector<32x256xf32>
    %38 = arith.truncf %37 : vector<32x256xf32> to vector<32x256xbf16>
    %c96 = arith.constant 96 : index
    %c0_23 = arith.constant 0 : index
    %39 = vector.load %arg13[%c96, %c0_23] : memref<288x256xbf16, #tpu.memory_space<vmem>>, vector<32x256xbf16>
    tpu.vector_store %arg13[%c96, %c0_23], %38 {strides = array<i32>} : memref<288x256xbf16, #tpu.memory_space<vmem>>, vector<32x256xbf16>,
    %40 = arith.truncf %9 : vector<32x256xf32> to vector<32x256xbf16>
    %c128 = arith.constant 128 : index
    %c0_24 = arith.constant 0 : index
    %41 = vector.load %arg13[%c128, %c0_24] : memref<288x256xbf16, #tpu.memory_space<vmem>>, vector<32x256xbf16>
    tpu.vector_store %arg13[%c128, %c0_24], %40 {strides = array<i32>} : memref<288x256xbf16, #tpu.memory_space<vmem>>, vector<32x256xbf16>,
    %c254_i32 = arith.constant 254 : i32
    %42 = tpu.dynamic_rotate %9 by %c254_i32 dim 1 : vector<32x256xf32>, i32 -> vector<32x256xf32>
    %c5 = arith.constant 5 : index
    %c0_25 = arith.constant 0 : index
    %c0_26 = arith.constant 0 : index
    %43 = vector.load %arg10[%c5, %c0_25, %c0_26] : memref<9x1x256xf32, #tpu.memory_space<vmem>>, vector<1x1x256xf32>
    %44 = vector.shape_cast %43 : vector<1x1x256xf32> to vector<1x256xf32>
    %45 = vector.broadcast %44 : vector<1x256xf32> to vector<32x256xf32>
    %46 = arith.mulf %42, %45 : vector<32x256xf32>
    %47 = arith.truncf %46 : vector<32x256xf32> to vector<32x256xbf16>
    %c160 = arith.constant 160 : index
    %c0_27 = arith.constant 0 : index
    %48 = vector.load %arg13[%c160, %c0_27] : memref<288x256xbf16, #tpu.memory_space<vmem>>, vector<32x256xbf16>
    tpu.vector_store %arg13[%c160, %c0_27], %47 {strides = array<i32>} : memref<288x256xbf16, #tpu.memory_space<vmem>>, vector<32x256xbf16>,
    %c226_i32 = arith.constant 226 : i32
    %49 = tpu.dynamic_rotate %9 by %c226_i32 dim 1 : vector<32x256xf32>, i32 -> vector<32x256xf32>
    %c6 = arith.constant 6 : index
    %c0_28 = arith.constant 0 : index
    %c0_29 = arith.constant 0 : index
    %50 = vector.load %arg10[%c6, %c0_28, %c0_29] : memref<9x1x256xf32, #tpu.memory_space<vmem>>, vector<1x1x256xf32>
    %51 = vector.shape_cast %50 : vector<1x1x256xf32> to vector<1x256xf32>
    %52 = vector.broadcast %51 : vector<1x256xf32> to vector<32x256xf32>
    %53 = arith.mulf %49, %52 : vector<32x256xf32>
    %54 = arith.truncf %53 : vector<32x256xf32> to vector<32x256xbf16>
    %c192 = arith.constant 192 : index
    %c0_30 = arith.constant 0 : index
    %55 = vector.load %arg13[%c192, %c0_30] : memref<288x256xbf16, #tpu.memory_space<vmem>>, vector<32x256xbf16>
    tpu.vector_store %arg13[%c192, %c0_30], %54 {strides = array<i32>} : memref<288x256xbf16, #tpu.memory_space<vmem>>, vector<32x256xbf16>,
    %c224_i32 = arith.constant 224 : i32
    %56 = tpu.dynamic_rotate %9 by %c224_i32 dim 1 : vector<32x256xf32>, i32 -> vector<32x256xf32>
    %c7 = arith.constant 7 : index
    %c0_31 = arith.constant 0 : index
    %c0_32 = arith.constant 0 : index
    %57 = vector.load %arg10[%c7, %c0_31, %c0_32] : memref<9x1x256xf32, #tpu.memory_space<vmem>>, vector<1x1x256xf32>
    %58 = vector.shape_cast %57 : vector<1x1x256xf32> to vector<1x256xf32>
    %59 = vector.broadcast %58 : vector<1x256xf32> to vector<32x256xf32>
    %60 = arith.mulf %56, %59 : vector<32x256xf32>
    %61 = arith.truncf %60 : vector<32x256xf32> to vector<32x256xbf16>
    %c224 = arith.constant 224 : index
    %c0_33 = arith.constant 0 : index
    %62 = vector.load %arg13[%c224, %c0_33] : memref<288x256xbf16, #tpu.memory_space<vmem>>, vector<32x256xbf16>
    tpu.vector_store %arg13[%c224, %c0_33], %61 {strides = array<i32>} : memref<288x256xbf16, #tpu.memory_space<vmem>>, vector<32x256xbf16>,
    %c222_i32 = arith.constant 222 : i32
    %63 = tpu.dynamic_rotate %9 by %c222_i32 dim 1 : vector<32x256xf32>, i32 -> vector<32x256xf32>
    %c8 = arith.constant 8 : index
    %c0_34 = arith.constant 0 : index
    %c0_35 = arith.constant 0 : index
    %64 = vector.load %arg10[%c8, %c0_34, %c0_35] : memref<9x1x256xf32, #tpu.memory_space<vmem>>, vector<1x1x256xf32>
    %65 = vector.shape_cast %64 : vector<1x1x256xf32> to vector<1x256xf32>
    %66 = vector.broadcast %65 : vector<1x256xf32> to vector<32x256xf32>
    %67 = arith.mulf %63, %66 : vector<32x256xf32>
    %68 = arith.truncf %67 : vector<32x256xf32> to vector<32x256xbf16>
    %c256 = arith.constant 256 : index
    %c0_36 = arith.constant 0 : index
    %69 = vector.load %arg13[%c256, %c0_36] : memref<288x256xbf16, #tpu.memory_space<vmem>>, vector<32x256xbf16>
    tpu.vector_store %arg13[%c256, %c0_36], %68 {strides = array<i32>} : memref<288x256xbf16, #tpu.memory_space<vmem>>, vector<32x256xbf16>,
    %c0_37 = arith.constant 0 : index
    %c0_38 = arith.constant 0 : index
    %70 = vector.load %arg13[%c0_37, %c0_38] : memref<288x256xbf16, #tpu.memory_space<vmem>>, vector<288x256xbf16>
    %cst_39 = arith.constant dense<0.000000e+00> : vector<32x256xf32>
    %71 = tpu.matmul %11, %70, %cst_39 {dimension_numbers = #tpu.dot_dimension_numbers<[1], [0], [0], [1], [0, 0, 1, 1], [], []>} : vector<32x288xbf16>, vector<288x256xbf16>, vector<32x256xf32> -> vector<32x256xf32>
    %c0_40 = arith.constant 0 : index
    %c0_41 = arith.constant 0 : index
    %c0_42 = arith.constant 0 : index
    %72 = vector.load %arg5[%c0_40, %c0_41, %c0_42] : memref<2x32x1xf32, #tpu.memory_space<vmem>>, vector<1x32x1xf32>
    %73 = vector.shape_cast %72 : vector<1x32x1xf32> to vector<32x1xf32>
    %74 = vector.broadcast %73 : vector<32x1xf32> to vector<32x256xf32>
    %75 = arith.addf %71, %74 : vector<32x256xf32>
    %cst_43 = arith.constant 0.000000e+00 : f32
    %76 = vector.broadcast %cst_43 : f32 to vector<32x256xf32>
    %77 = arith.maximumf %75, %76 : vector<32x256xf32>
    %c0_44 = arith.constant 0 : index
    %c0_45 = arith.constant 0 : index
    %c0_46 = arith.constant 0 : index
    %78 = vector.load %arg6[%c0_44, %c0_45, %c0_46] : memref<2x32x288xbf16, #tpu.memory_space<vmem>>, vector<1x32x288xbf16>
    %79 = vector.shape_cast %78 : vector<1x32x288xbf16> to vector<32x288xbf16>
    %c34_i32_47 = arith.constant 34 : i32
    %80 = tpu.dynamic_rotate %77 by %c34_i32_47 dim 1 : vector<32x256xf32>, i32 -> vector<32x256xf32>
    %c0_48 = arith.constant 0 : index
    %c0_49 = arith.constant 0 : index
    %c0_50 = arith.constant 0 : index
    %81 = vector.load %arg10[%c0_48, %c0_49, %c0_50] : memref<9x1x256xf32, #tpu.memory_space<vmem>>, vector<1x1x256xf32>
    %82 = vector.shape_cast %81 : vector<1x1x256xf32> to vector<1x256xf32>
    %83 = vector.broadcast %82 : vector<1x256xf32> to vector<32x256xf32>
    %84 = arith.mulf %80, %83 : vector<32x256xf32>
    %85 = arith.truncf %84 : vector<32x256xf32> to vector<32x256xbf16>
    %c0_51 = arith.constant 0 : index
    %c0_52 = arith.constant 0 : index
    %86 = vector.load %arg13[%c0_51, %c0_52] : memref<288x256xbf16, #tpu.memory_space<vmem>>, vector<32x256xbf16>
    tpu.vector_store %arg13[%c0_51, %c0_52], %85 {strides = array<i32>} : memref<288x256xbf16, #tpu.memory_space<vmem>>, vector<32x256xbf16>,
    %c32_i32_53 = arith.constant 32 : i32
    %87 = tpu.dynamic_rotate %77 by %c32_i32_53 dim 1 : vector<32x256xf32>, i32 -> vector<32x256xf32>
    %c1_54 = arith.constant 1 : index
    %c0_55 = arith.constant 0 : index
    %c0_56 = arith.constant 0 : index
    %88 = vector.load %arg10[%c1_54, %c0_55, %c0_56] : memref<9x1x256xf32, #tpu.memory_space<vmem>>, vector<1x1x256xf32>
    %89 = vector.shape_cast %88 : vector<1x1x256xf32> to vector<1x256xf32>
    %90 = vector.broadcast %89 : vector<1x256xf32> to vector<32x256xf32>
    %91 = arith.mulf %87, %90 : vector<32x256xf32>
    %92 = arith.truncf %91 : vector<32x256xf32> to vector<32x256xbf16>
    %c32_57 = arith.constant 32 : index
    %c0_58 = arith.constant 0 : index
    %93 = vector.load %arg13[%c32_57, %c0_58] : memref<288x256xbf16, #tpu.memory_space<vmem>>, vector<32x256xbf16>
    tpu.vector_store %arg13[%c32_57, %c0_58], %92 {strides = array<i32>} : memref<288x256xbf16, #tpu.memory_space<vmem>>, vector<32x256xbf16>,
    %c30_i32_59 = arith.constant 30 : i32
    %94 = tpu.dynamic_rotate %77 by %c30_i32_59 dim 1 : vector<32x256xf32>, i32 -> vector<32x256xf32>
    %c2_60 = arith.constant 2 : index
    %c0_61 = arith.constant 0 : index
    %c0_62 = arith.constant 0 : index
    %95 = vector.load %arg10[%c2_60, %c0_61, %c0_62] : memref<9x1x256xf32, #tpu.memory_space<vmem>>, vector<1x1x256xf32>
    %96 = vector.shape_cast %95 : vector<1x1x256xf32> to vector<1x256xf32>
    %97 = vector.broadcast %96 : vector<1x256xf32> to vector<32x256xf32>
    %98 = arith.mulf %94, %97 : vector<32x256xf32>
    %99 = arith.truncf %98 : vector<32x256xf32> to vector<32x256xbf16>
    %c64_63 = arith.constant 64 : index
    %c0_64 = arith.constant 0 : index
    %100 = vector.load %arg13[%c64_63, %c0_64] : memref<288x256xbf16, #tpu.memory_space<vmem>>, vector<32x256xbf16>
    tpu.vector_store %arg13[%c64_63, %c0_64], %99 {strides = array<i32>} : memref<288x256xbf16, #tpu.memory_space<vmem>>, vector<32x256xbf16>,
    %c2_i32_65 = arith.constant 2 : i32
    %101 = tpu.dynamic_rotate %77 by %c2_i32_65 dim 1 : vector<32x256xf32>, i32 -> vector<32x256xf32>
    %c3_66 = arith.constant 3 : index
    %c0_67 = arith.constant 0 : index
    %c0_68 = arith.constant 0 : index
    %102 = vector.load %arg10[%c3_66, %c0_67, %c0_68] : memref<9x1x256xf32, #tpu.memory_space<vmem>>, vector<1x1x256xf32>
    %103 = vector.shape_cast %102 : vector<1x1x256xf32> to vector<1x256xf32>
    %104 = vector.broadcast %103 : vector<1x256xf32> to vector<32x256xf32>
    %105 = arith.mulf %101, %104 : vector<32x256xf32>
    %106 = arith.truncf %105 : vector<32x256xf32> to vector<32x256xbf16>
    %c96_69 = arith.constant 96 : index
    %c0_70 = arith.constant 0 : index
    %107 = vector.load %arg13[%c96_69, %c0_70] : memref<288x256xbf16, #tpu.memory_space<vmem>>, vector<32x256xbf16>
    tpu.vector_store %arg13[%c96_69, %c0_70], %106 {strides = array<i32>} : memref<288x256xbf16, #tpu.memory_space<vmem>>, vector<32x256xbf16>,
    %108 = arith.truncf %77 : vector<32x256xf32> to vector<32x256xbf16>
    %c128_71 = arith.constant 128 : index
    %c0_72 = arith.constant 0 : index
    %109 = vector.load %arg13[%c128_71, %c0_72] : memref<288x256xbf16, #tpu.memory_space<vmem>>, vector<32x256xbf16>
    tpu.vector_store %arg13[%c128_71, %c0_72], %108 {strides = array<i32>} : memref<288x256xbf16, #tpu.memory_space<vmem>>, vector<32x256xbf16>,
    %c254_i32_73 = arith.constant 254 : i32
    %110 = tpu.dynamic_rotate %77 by %c254_i32_73 dim 1 : vector<32x256xf32>, i32 -> vector<32x256xf32>
    %c5_74 = arith.constant 5 : index
    %c0_75 = arith.constant 0 : index
    %c0_76 = arith.constant 0 : index
    %111 = vector.load %arg10[%c5_74, %c0_75, %c0_76] : memref<9x1x256xf32, #tpu.memory_space<vmem>>, vector<1x1x256xf32>
    %112 = vector.shape_cast %111 : vector<1x1x256xf32> to vector<1x256xf32>
    %113 = vector.broadcast %112 : vector<1x256xf32> to vector<32x256xf32>
    %114 = arith.mulf %110, %113 : vector<32x256xf32>
    %115 = arith.truncf %114 : vector<32x256xf32> to vector<32x256xbf16>
    %c160_77 = arith.constant 160 : index
    %c0_78 = arith.constant 0 : index
    %116 = vector.load %arg13[%c160_77, %c0_78] : memref<288x256xbf16, #tpu.memory_space<vmem>>, vector<32x256xbf16>
    tpu.vector_store %arg13[%c160_77, %c0_78], %115 {strides = array<i32>} : memref<288x256xbf16, #tpu.memory_space<vmem>>, vector<32x256xbf16>,
    %c226_i32_79 = arith.constant 226 : i32
    %117 = tpu.dynamic_rotate %77 by %c226_i32_79 dim 1 : vector<32x256xf32>, i32 -> vector<32x256xf32>
    %c6_80 = arith.constant 6 : index
    %c0_81 = arith.constant 0 : index
    %c0_82 = arith.constant 0 : index
    %118 = vector.load %arg10[%c6_80, %c0_81, %c0_82] : memref<9x1x256xf32, #tpu.memory_space<vmem>>, vector<1x1x256xf32>
    %119 = vector.shape_cast %118 : vector<1x1x256xf32> to vector<1x256xf32>
    %120 = vector.broadcast %119 : vector<1x256xf32> to vector<32x256xf32>
    %121 = arith.mulf %117, %120 : vector<32x256xf32>
    %122 = arith.truncf %121 : vector<32x256xf32> to vector<32x256xbf16>
    %c192_83 = arith.constant 192 : index
    %c0_84 = arith.constant 0 : index
    %123 = vector.load %arg13[%c192_83, %c0_84] : memref<288x256xbf16, #tpu.memory_space<vmem>>, vector<32x256xbf16>
    tpu.vector_store %arg13[%c192_83, %c0_84], %122 {strides = array<i32>} : memref<288x256xbf16, #tpu.memory_space<vmem>>, vector<32x256xbf16>,
    %c224_i32_85 = arith.constant 224 : i32
    %124 = tpu.dynamic_rotate %77 by %c224_i32_85 dim 1 : vector<32x256xf32>, i32 -> vector<32x256xf32>
    %c7_86 = arith.constant 7 : index
    %c0_87 = arith.constant 0 : index
    %c0_88 = arith.constant 0 : index
    %125 = vector.load %arg10[%c7_86, %c0_87, %c0_88] : memref<9x1x256xf32, #tpu.memory_space<vmem>>, vector<1x1x256xf32>
    %126 = vector.shape_cast %125 : vector<1x1x256xf32> to vector<1x256xf32>
    %127 = vector.broadcast %126 : vector<1x256xf32> to vector<32x256xf32>
    %128 = arith.mulf %124, %127 : vector<32x256xf32>
    %129 = arith.truncf %128 : vector<32x256xf32> to vector<32x256xbf16>
    %c224_89 = arith.constant 224 : index
    %c0_90 = arith.constant 0 : index
    %130 = vector.load %arg13[%c224_89, %c0_90] : memref<288x256xbf16, #tpu.memory_space<vmem>>, vector<32x256xbf16>
    tpu.vector_store %arg13[%c224_89, %c0_90], %129 {strides = array<i32>} : memref<288x256xbf16, #tpu.memory_space<vmem>>, vector<32x256xbf16>,
    %c222_i32_91 = arith.constant 222 : i32
    %131 = tpu.dynamic_rotate %77 by %c222_i32_91 dim 1 : vector<32x256xf32>, i32 -> vector<32x256xf32>
    %c8_92 = arith.constant 8 : index
    %c0_93 = arith.constant 0 : index
    %c0_94 = arith.constant 0 : index
    %132 = vector.load %arg10[%c8_92, %c0_93, %c0_94] : memref<9x1x256xf32, #tpu.memory_space<vmem>>, vector<1x1x256xf32>
    %133 = vector.shape_cast %132 : vector<1x1x256xf32> to vector<1x256xf32>
    %134 = vector.broadcast %133 : vector<1x256xf32> to vector<32x256xf32>
    %135 = arith.mulf %131, %134 : vector<32x256xf32>
    %136 = arith.truncf %135 : vector<32x256xf32> to vector<32x256xbf16>
    %c256_95 = arith.constant 256 : index
    %c0_96 = arith.constant 0 : index
    %137 = vector.load %arg13[%c256_95, %c0_96] : memref<288x256xbf16, #tpu.memory_space<vmem>>, vector<32x256xbf16>
    tpu.vector_store %arg13[%c256_95, %c0_96], %136 {strides = array<i32>} : memref<288x256xbf16, #tpu.memory_space<vmem>>, vector<32x256xbf16>,
    %c0_97 = arith.constant 0 : index
    %c0_98 = arith.constant 0 : index
    %138 = vector.load %arg13[%c0_97, %c0_98] : memref<288x256xbf16, #tpu.memory_space<vmem>>, vector<288x256xbf16>
    %cst_99 = arith.constant dense<0.000000e+00> : vector<32x256xf32>
    %139 = tpu.matmul %79, %138, %cst_99 {dimension_numbers = #tpu.dot_dimension_numbers<[1], [0], [0], [1], [0, 0, 1, 1], [], []>} : vector<32x288xbf16>, vector<288x256xbf16>, vector<32x256xf32> -> vector<32x256xf32>
    %c0_100 = arith.constant 0 : index
    %c0_101 = arith.constant 0 : index
    %c0_102 = arith.constant 0 : index
    %140 = vector.load %arg7[%c0_100, %c0_101, %c0_102] : memref<2x32x1xf32, #tpu.memory_space<vmem>>, vector<1x32x1xf32>
    %141 = vector.shape_cast %140 : vector<1x32x1xf32> to vector<32x1xf32>
    %142 = vector.broadcast %141 : vector<32x1xf32> to vector<32x256xf32>
    %143 = arith.addf %139, %142 : vector<32x256xf32>
    %144 = arith.addf %143, %9 : vector<32x256xf32>
    %cst_103 = arith.constant 0.000000e+00 : f32
    %145 = vector.broadcast %cst_103 : f32 to vector<32x256xf32>
    %146 = arith.maximumf %144, %145 : vector<32x256xf32>
    %c1_104 = arith.constant 1 : index
    %c0_105 = arith.constant 0 : index
    %c0_106 = arith.constant 0 : index
    %147 = vector.load %arg4[%c1_104, %c0_105, %c0_106] : memref<2x32x288xbf16, #tpu.memory_space<vmem>>, vector<1x32x288xbf16>
    %148 = vector.shape_cast %147 : vector<1x32x288xbf16> to vector<32x288xbf16>
    %c34_i32_107 = arith.constant 34 : i32
    %149 = tpu.dynamic_rotate %146 by %c34_i32_107 dim 1 : vector<32x256xf32>, i32 -> vector<32x256xf32>
    %c0_108 = arith.constant 0 : index
    %c0_109 = arith.constant 0 : index
    %c0_110 = arith.constant 0 : index
    %150 = vector.load %arg10[%c0_108, %c0_109, %c0_110] : memref<9x1x256xf32, #tpu.memory_space<vmem>>, vector<1x1x256xf32>
    %151 = vector.shape_cast %150 : vector<1x1x256xf32> to vector<1x256xf32>
    %152 = vector.broadcast %151 : vector<1x256xf32> to vector<32x256xf32>
    %153 = arith.mulf %149, %152 : vector<32x256xf32>
    %154 = arith.truncf %153 : vector<32x256xf32> to vector<32x256xbf16>
    %c0_111 = arith.constant 0 : index
    %c0_112 = arith.constant 0 : index
    %155 = vector.load %arg13[%c0_111, %c0_112] : memref<288x256xbf16, #tpu.memory_space<vmem>>, vector<32x256xbf16>
    tpu.vector_store %arg13[%c0_111, %c0_112], %154 {strides = array<i32>} : memref<288x256xbf16, #tpu.memory_space<vmem>>, vector<32x256xbf16>,
    %c32_i32_113 = arith.constant 32 : i32
    %156 = tpu.dynamic_rotate %146 by %c32_i32_113 dim 1 : vector<32x256xf32>, i32 -> vector<32x256xf32>
    %c1_114 = arith.constant 1 : index
    %c0_115 = arith.constant 0 : index
    %c0_116 = arith.constant 0 : index
    %157 = vector.load %arg10[%c1_114, %c0_115, %c0_116] : memref<9x1x256xf32, #tpu.memory_space<vmem>>, vector<1x1x256xf32>
    %158 = vector.shape_cast %157 : vector<1x1x256xf32> to vector<1x256xf32>
    %159 = vector.broadcast %158 : vector<1x256xf32> to vector<32x256xf32>
    %160 = arith.mulf %156, %159 : vector<32x256xf32>
    %161 = arith.truncf %160 : vector<32x256xf32> to vector<32x256xbf16>
    %c32_117 = arith.constant 32 : index
    %c0_118 = arith.constant 0 : index
    %162 = vector.load %arg13[%c32_117, %c0_118] : memref<288x256xbf16, #tpu.memory_space<vmem>>, vector<32x256xbf16>
    tpu.vector_store %arg13[%c32_117, %c0_118], %161 {strides = array<i32>} : memref<288x256xbf16, #tpu.memory_space<vmem>>, vector<32x256xbf16>,
    %c30_i32_119 = arith.constant 30 : i32
    %163 = tpu.dynamic_rotate %146 by %c30_i32_119 dim 1 : vector<32x256xf32>, i32 -> vector<32x256xf32>
    %c2_120 = arith.constant 2 : index
    %c0_121 = arith.constant 0 : index
    %c0_122 = arith.constant 0 : index
    %164 = vector.load %arg10[%c2_120, %c0_121, %c0_122] : memref<9x1x256xf32, #tpu.memory_space<vmem>>, vector<1x1x256xf32>
    %165 = vector.shape_cast %164 : vector<1x1x256xf32> to vector<1x256xf32>
    %166 = vector.broadcast %165 : vector<1x256xf32> to vector<32x256xf32>
    %167 = arith.mulf %163, %166 : vector<32x256xf32>
    %168 = arith.truncf %167 : vector<32x256xf32> to vector<32x256xbf16>
    %c64_123 = arith.constant 64 : index
    %c0_124 = arith.constant 0 : index
    %169 = vector.load %arg13[%c64_123, %c0_124] : memref<288x256xbf16, #tpu.memory_space<vmem>>, vector<32x256xbf16>
    tpu.vector_store %arg13[%c64_123, %c0_124], %168 {strides = array<i32>} : memref<288x256xbf16, #tpu.memory_space<vmem>>, vector<32x256xbf16>,
    %c2_i32_125 = arith.constant 2 : i32
    %170 = tpu.dynamic_rotate %146 by %c2_i32_125 dim 1 : vector<32x256xf32>, i32 -> vector<32x256xf32>
    %c3_126 = arith.constant 3 : index
    %c0_127 = arith.constant 0 : index
    %c0_128 = arith.constant 0 : index
    %171 = vector.load %arg10[%c3_126, %c0_127, %c0_128] : memref<9x1x256xf32, #tpu.memory_space<vmem>>, vector<1x1x256xf32>
    %172 = vector.shape_cast %171 : vector<1x1x256xf32> to vector<1x256xf32>
    %173 = vector.broadcast %172 : vector<1x256xf32> to vector<32x256xf32>
    %174 = arith.mulf %170, %173 : vector<32x256xf32>
    %175 = arith.truncf %174 : vector<32x256xf32> to vector<32x256xbf16>
    %c96_129 = arith.constant 96 : index
    %c0_130 = arith.constant 0 : index
    %176 = vector.load %arg13[%c96_129, %c0_130] : memref<288x256xbf16, #tpu.memory_space<vmem>>, vector<32x256xbf16>
    tpu.vector_store %arg13[%c96_129, %c0_130], %175 {strides = array<i32>} : memref<288x256xbf16, #tpu.memory_space<vmem>>, vector<32x256xbf16>,
    %177 = arith.truncf %146 : vector<32x256xf32> to vector<32x256xbf16>
    %c128_131 = arith.constant 128 : index
    %c0_132 = arith.constant 0 : index
    %178 = vector.load %arg13[%c128_131, %c0_132] : memref<288x256xbf16, #tpu.memory_space<vmem>>, vector<32x256xbf16>
    tpu.vector_store %arg13[%c128_131, %c0_132], %177 {strides = array<i32>} : memref<288x256xbf16, #tpu.memory_space<vmem>>, vector<32x256xbf16>,
    %c254_i32_133 = arith.constant 254 : i32
    %179 = tpu.dynamic_rotate %146 by %c254_i32_133 dim 1 : vector<32x256xf32>, i32 -> vector<32x256xf32>
    %c5_134 = arith.constant 5 : index
    %c0_135 = arith.constant 0 : index
    %c0_136 = arith.constant 0 : index
    %180 = vector.load %arg10[%c5_134, %c0_135, %c0_136] : memref<9x1x256xf32, #tpu.memory_space<vmem>>, vector<1x1x256xf32>
    %181 = vector.shape_cast %180 : vector<1x1x256xf32> to vector<1x256xf32>
    %182 = vector.broadcast %181 : vector<1x256xf32> to vector<32x256xf32>
    %183 = arith.mulf %179, %182 : vector<32x256xf32>
    %184 = arith.truncf %183 : vector<32x256xf32> to vector<32x256xbf16>
    %c160_137 = arith.constant 160 : index
    %c0_138 = arith.constant 0 : index
    %185 = vector.load %arg13[%c160_137, %c0_138] : memref<288x256xbf16, #tpu.memory_space<vmem>>, vector<32x256xbf16>
    tpu.vector_store %arg13[%c160_137, %c0_138], %184 {strides = array<i32>} : memref<288x256xbf16, #tpu.memory_space<vmem>>, vector<32x256xbf16>,
    %c226_i32_139 = arith.constant 226 : i32
    %186 = tpu.dynamic_rotate %146 by %c226_i32_139 dim 1 : vector<32x256xf32>, i32 -> vector<32x256xf32>
    %c6_140 = arith.constant 6 : index
    %c0_141 = arith.constant 0 : index
    %c0_142 = arith.constant 0 : index
    %187 = vector.load %arg10[%c6_140, %c0_141, %c0_142] : memref<9x1x256xf32, #tpu.memory_space<vmem>>, vector<1x1x256xf32>
    %188 = vector.shape_cast %187 : vector<1x1x256xf32> to vector<1x256xf32>
    %189 = vector.broadcast %188 : vector<1x256xf32> to vector<32x256xf32>
    %190 = arith.mulf %186, %189 : vector<32x256xf32>
    %191 = arith.truncf %190 : vector<32x256xf32> to vector<32x256xbf16>
    %c192_143 = arith.constant 192 : index
    %c0_144 = arith.constant 0 : index
    %192 = vector.load %arg13[%c192_143, %c0_144] : memref<288x256xbf16, #tpu.memory_space<vmem>>, vector<32x256xbf16>
    tpu.vector_store %arg13[%c192_143, %c0_144], %191 {strides = array<i32>} : memref<288x256xbf16, #tpu.memory_space<vmem>>, vector<32x256xbf16>,
    %c224_i32_145 = arith.constant 224 : i32
    %193 = tpu.dynamic_rotate %146 by %c224_i32_145 dim 1 : vector<32x256xf32>, i32 -> vector<32x256xf32>
    %c7_146 = arith.constant 7 : index
    %c0_147 = arith.constant 0 : index
    %c0_148 = arith.constant 0 : index
    %194 = vector.load %arg10[%c7_146, %c0_147, %c0_148] : memref<9x1x256xf32, #tpu.memory_space<vmem>>, vector<1x1x256xf32>
    %195 = vector.shape_cast %194 : vector<1x1x256xf32> to vector<1x256xf32>
    %196 = vector.broadcast %195 : vector<1x256xf32> to vector<32x256xf32>
    %197 = arith.mulf %193, %196 : vector<32x256xf32>
    %198 = arith.truncf %197 : vector<32x256xf32> to vector<32x256xbf16>
    %c224_149 = arith.constant 224 : index
    %c0_150 = arith.constant 0 : index
    %199 = vector.load %arg13[%c224_149, %c0_150] : memref<288x256xbf16, #tpu.memory_space<vmem>>, vector<32x256xbf16>
    tpu.vector_store %arg13[%c224_149, %c0_150], %198 {strides = array<i32>} : memref<288x256xbf16, #tpu.memory_space<vmem>>, vector<32x256xbf16>,
    %c222_i32_151 = arith.constant 222 : i32
    %200 = tpu.dynamic_rotate %146 by %c222_i32_151 dim 1 : vector<32x256xf32>, i32 -> vector<32x256xf32>
    %c8_152 = arith.constant 8 : index
    %c0_153 = arith.constant 0 : index
    %c0_154 = arith.constant 0 : index
    %201 = vector.load %arg10[%c8_152, %c0_153, %c0_154] : memref<9x1x256xf32, #tpu.memory_space<vmem>>, vector<1x1x256xf32>
    %202 = vector.shape_cast %201 : vector<1x1x256xf32> to vector<1x256xf32>
    %203 = vector.broadcast %202 : vector<1x256xf32> to vector<32x256xf32>
    %204 = arith.mulf %200, %203 : vector<32x256xf32>
    %205 = arith.truncf %204 : vector<32x256xf32> to vector<32x256xbf16>
    %c256_155 = arith.constant 256 : index
    %c0_156 = arith.constant 0 : index
    %206 = vector.load %arg13[%c256_155, %c0_156] : memref<288x256xbf16, #tpu.memory_space<vmem>>, vector<32x256xbf16>
    tpu.vector_store %arg13[%c256_155, %c0_156], %205 {strides = array<i32>} : memref<288x256xbf16, #tpu.memory_space<vmem>>, vector<32x256xbf16>,
    %c0_157 = arith.constant 0 : index
    %c0_158 = arith.constant 0 : index
    %207 = vector.load %arg13[%c0_157, %c0_158] : memref<288x256xbf16, #tpu.memory_space<vmem>>, vector<288x256xbf16>
    %cst_159 = arith.constant dense<0.000000e+00> : vector<32x256xf32>
    %208 = tpu.matmul %148, %207, %cst_159 {dimension_numbers = #tpu.dot_dimension_numbers<[1], [0], [0], [1], [0, 0, 1, 1], [], []>} : vector<32x288xbf16>, vector<288x256xbf16>, vector<32x256xf32> -> vector<32x256xf32>
    %c1_160 = arith.constant 1 : index
    %c0_161 = arith.constant 0 : index
    %c0_162 = arith.constant 0 : index
    %209 = vector.load %arg5[%c1_160, %c0_161, %c0_162] : memref<2x32x1xf32, #tpu.memory_space<vmem>>, vector<1x32x1xf32>
    %210 = vector.shape_cast %209 : vector<1x32x1xf32> to vector<32x1xf32>
    %211 = vector.broadcast %210 : vector<32x1xf32> to vector<32x256xf32>
    %212 = arith.addf %208, %211 : vector<32x256xf32>
    %cst_163 = arith.constant 0.000000e+00 : f32
    %213 = vector.broadcast %cst_163 : f32 to vector<32x256xf32>
    %214 = arith.maximumf %212, %213 : vector<32x256xf32>
    %c1_164 = arith.constant 1 : index
    %c0_165 = arith.constant 0 : index
    %c0_166 = arith.constant 0 : index
    %215 = vector.load %arg6[%c1_164, %c0_165, %c0_166] : memref<2x32x288xbf16, #tpu.memory_space<vmem>>, vector<1x32x288xbf16>
    %216 = vector.shape_cast %215 : vector<1x32x288xbf16> to vector<32x288xbf16>
    %c34_i32_167 = arith.constant 34 : i32
    %217 = tpu.dynamic_rotate %214 by %c34_i32_167 dim 1 : vector<32x256xf32>, i32 -> vector<32x256xf32>
    %c0_168 = arith.constant 0 : index
    %c0_169 = arith.constant 0 : index
    %c0_170 = arith.constant 0 : index
    %218 = vector.load %arg10[%c0_168, %c0_169, %c0_170] : memref<9x1x256xf32, #tpu.memory_space<vmem>>, vector<1x1x256xf32>
    %219 = vector.shape_cast %218 : vector<1x1x256xf32> to vector<1x256xf32>
    %220 = vector.broadcast %219 : vector<1x256xf32> to vector<32x256xf32>
    %221 = arith.mulf %217, %220 : vector<32x256xf32>
    %222 = arith.truncf %221 : vector<32x256xf32> to vector<32x256xbf16>
    %c0_171 = arith.constant 0 : index
    %c0_172 = arith.constant 0 : index
    %223 = vector.load %arg13[%c0_171, %c0_172] : memref<288x256xbf16, #tpu.memory_space<vmem>>, vector<32x256xbf16>
    tpu.vector_store %arg13[%c0_171, %c0_172], %222 {strides = array<i32>} : memref<288x256xbf16, #tpu.memory_space<vmem>>, vector<32x256xbf16>,
    %c32_i32_173 = arith.constant 32 : i32
    %224 = tpu.dynamic_rotate %214 by %c32_i32_173 dim 1 : vector<32x256xf32>, i32 -> vector<32x256xf32>
    %c1_174 = arith.constant 1 : index
    %c0_175 = arith.constant 0 : index
    %c0_176 = arith.constant 0 : index
    %225 = vector.load %arg10[%c1_174, %c0_175, %c0_176] : memref<9x1x256xf32, #tpu.memory_space<vmem>>, vector<1x1x256xf32>
    %226 = vector.shape_cast %225 : vector<1x1x256xf32> to vector<1x256xf32>
    %227 = vector.broadcast %226 : vector<1x256xf32> to vector<32x256xf32>
    %228 = arith.mulf %224, %227 : vector<32x256xf32>
    %229 = arith.truncf %228 : vector<32x256xf32> to vector<32x256xbf16>
    %c32_177 = arith.constant 32 : index
    %c0_178 = arith.constant 0 : index
    %230 = vector.load %arg13[%c32_177, %c0_178] : memref<288x256xbf16, #tpu.memory_space<vmem>>, vector<32x256xbf16>
    tpu.vector_store %arg13[%c32_177, %c0_178], %229 {strides = array<i32>} : memref<288x256xbf16, #tpu.memory_space<vmem>>, vector<32x256xbf16>,
    %c30_i32_179 = arith.constant 30 : i32
    %231 = tpu.dynamic_rotate %214 by %c30_i32_179 dim 1 : vector<32x256xf32>, i32 -> vector<32x256xf32>
    %c2_180 = arith.constant 2 : index
    %c0_181 = arith.constant 0 : index
    %c0_182 = arith.constant 0 : index
    %232 = vector.load %arg10[%c2_180, %c0_181, %c0_182] : memref<9x1x256xf32, #tpu.memory_space<vmem>>, vector<1x1x256xf32>
    %233 = vector.shape_cast %232 : vector<1x1x256xf32> to vector<1x256xf32>
    %234 = vector.broadcast %233 : vector<1x256xf32> to vector<32x256xf32>
    %235 = arith.mulf %231, %234 : vector<32x256xf32>
    %236 = arith.truncf %235 : vector<32x256xf32> to vector<32x256xbf16>
    %c64_183 = arith.constant 64 : index
    %c0_184 = arith.constant 0 : index
    %237 = vector.load %arg13[%c64_183, %c0_184] : memref<288x256xbf16, #tpu.memory_space<vmem>>, vector<32x256xbf16>
    tpu.vector_store %arg13[%c64_183, %c0_184], %236 {strides = array<i32>} : memref<288x256xbf16, #tpu.memory_space<vmem>>, vector<32x256xbf16>,
    %c2_i32_185 = arith.constant 2 : i32
    %238 = tpu.dynamic_rotate %214 by %c2_i32_185 dim 1 : vector<32x256xf32>, i32 -> vector<32x256xf32>
    %c3_186 = arith.constant 3 : index
    %c0_187 = arith.constant 0 : index
    %c0_188 = arith.constant 0 : index
    %239 = vector.load %arg10[%c3_186, %c0_187, %c0_188] : memref<9x1x256xf32, #tpu.memory_space<vmem>>, vector<1x1x256xf32>
    %240 = vector.shape_cast %239 : vector<1x1x256xf32> to vector<1x256xf32>
    %241 = vector.broadcast %240 : vector<1x256xf32> to vector<32x256xf32>
    %242 = arith.mulf %238, %241 : vector<32x256xf32>
    %243 = arith.truncf %242 : vector<32x256xf32> to vector<32x256xbf16>
    %c96_189 = arith.constant 96 : index
    %c0_190 = arith.constant 0 : index
    %244 = vector.load %arg13[%c96_189, %c0_190] : memref<288x256xbf16, #tpu.memory_space<vmem>>, vector<32x256xbf16>
    tpu.vector_store %arg13[%c96_189, %c0_190], %243 {strides = array<i32>} : memref<288x256xbf16, #tpu.memory_space<vmem>>, vector<32x256xbf16>,
    %245 = arith.truncf %214 : vector<32x256xf32> to vector<32x256xbf16>
    %c128_191 = arith.constant 128 : index
    %c0_192 = arith.constant 0 : index
    %246 = vector.load %arg13[%c128_191, %c0_192] : memref<288x256xbf16, #tpu.memory_space<vmem>>, vector<32x256xbf16>
    tpu.vector_store %arg13[%c128_191, %c0_192], %245 {strides = array<i32>} : memref<288x256xbf16, #tpu.memory_space<vmem>>, vector<32x256xbf16>,
    %c254_i32_193 = arith.constant 254 : i32
    %247 = tpu.dynamic_rotate %214 by %c254_i32_193 dim 1 : vector<32x256xf32>, i32 -> vector<32x256xf32>
    %c5_194 = arith.constant 5 : index
    %c0_195 = arith.constant 0 : index
    %c0_196 = arith.constant 0 : index
    %248 = vector.load %arg10[%c5_194, %c0_195, %c0_196] : memref<9x1x256xf32, #tpu.memory_space<vmem>>, vector<1x1x256xf32>
    %249 = vector.shape_cast %248 : vector<1x1x256xf32> to vector<1x256xf32>
    %250 = vector.broadcast %249 : vector<1x256xf32> to vector<32x256xf32>
    %251 = arith.mulf %247, %250 : vector<32x256xf32>
    %252 = arith.truncf %251 : vector<32x256xf32> to vector<32x256xbf16>
    %c160_197 = arith.constant 160 : index
    %c0_198 = arith.constant 0 : index
    %253 = vector.load %arg13[%c160_197, %c0_198] : memref<288x256xbf16, #tpu.memory_space<vmem>>, vector<32x256xbf16>
    tpu.vector_store %arg13[%c160_197, %c0_198], %252 {strides = array<i32>} : memref<288x256xbf16, #tpu.memory_space<vmem>>, vector<32x256xbf16>,
    %c226_i32_199 = arith.constant 226 : i32
    %254 = tpu.dynamic_rotate %214 by %c226_i32_199 dim 1 : vector<32x256xf32>, i32 -> vector<32x256xf32>
    %c6_200 = arith.constant 6 : index
    %c0_201 = arith.constant 0 : index
    %c0_202 = arith.constant 0 : index
    %255 = vector.load %arg10[%c6_200, %c0_201, %c0_202] : memref<9x1x256xf32, #tpu.memory_space<vmem>>, vector<1x1x256xf32>
    %256 = vector.shape_cast %255 : vector<1x1x256xf32> to vector<1x256xf32>
    %257 = vector.broadcast %256 : vector<1x256xf32> to vector<32x256xf32>
    %258 = arith.mulf %254, %257 : vector<32x256xf32>
    %259 = arith.truncf %258 : vector<32x256xf32> to vector<32x256xbf16>
    %c192_203 = arith.constant 192 : index
    %c0_204 = arith.constant 0 : index
    %260 = vector.load %arg13[%c192_203, %c0_204] : memref<288x256xbf16, #tpu.memory_space<vmem>>, vector<32x256xbf16>
    tpu.vector_store %arg13[%c192_203, %c0_204], %259 {strides = array<i32>} : memref<288x256xbf16, #tpu.memory_space<vmem>>, vector<32x256xbf16>,
    %c224_i32_205 = arith.constant 224 : i32
    %261 = tpu.dynamic_rotate %214 by %c224_i32_205 dim 1 : vector<32x256xf32>, i32 -> vector<32x256xf32>
    %c7_206 = arith.constant 7 : index
    %c0_207 = arith.constant 0 : index
    %c0_208 = arith.constant 0 : index
    %262 = vector.load %arg10[%c7_206, %c0_207, %c0_208] : memref<9x1x256xf32, #tpu.memory_space<vmem>>, vector<1x1x256xf32>
    %263 = vector.shape_cast %262 : vector<1x1x256xf32> to vector<1x256xf32>
    %264 = vector.broadcast %263 : vector<1x256xf32> to vector<32x256xf32>
    %265 = arith.mulf %261, %264 : vector<32x256xf32>
    %266 = arith.truncf %265 : vector<32x256xf32> to vector<32x256xbf16>
    %c224_209 = arith.constant 224 : index
    %c0_210 = arith.constant 0 : index
    %267 = vector.load %arg13[%c224_209, %c0_210] : memref<288x256xbf16, #tpu.memory_space<vmem>>, vector<32x256xbf16>
    tpu.vector_store %arg13[%c224_209, %c0_210], %266 {strides = array<i32>} : memref<288x256xbf16, #tpu.memory_space<vmem>>, vector<32x256xbf16>,
    %c222_i32_211 = arith.constant 222 : i32
    %268 = tpu.dynamic_rotate %214 by %c222_i32_211 dim 1 : vector<32x256xf32>, i32 -> vector<32x256xf32>
    %c8_212 = arith.constant 8 : index
    %c0_213 = arith.constant 0 : index
    %c0_214 = arith.constant 0 : index
    %269 = vector.load %arg10[%c8_212, %c0_213, %c0_214] : memref<9x1x256xf32, #tpu.memory_space<vmem>>, vector<1x1x256xf32>
    %270 = vector.shape_cast %269 : vector<1x1x256xf32> to vector<1x256xf32>
    %271 = vector.broadcast %270 : vector<1x256xf32> to vector<32x256xf32>
    %272 = arith.mulf %268, %271 : vector<32x256xf32>
    %273 = arith.truncf %272 : vector<32x256xf32> to vector<32x256xbf16>
    %c256_215 = arith.constant 256 : index
    %c0_216 = arith.constant 0 : index
    %274 = vector.load %arg13[%c256_215, %c0_216] : memref<288x256xbf16, #tpu.memory_space<vmem>>, vector<32x256xbf16>
    tpu.vector_store %arg13[%c256_215, %c0_216], %273 {strides = array<i32>} : memref<288x256xbf16, #tpu.memory_space<vmem>>, vector<32x256xbf16>,
    %c0_217 = arith.constant 0 : index
    %c0_218 = arith.constant 0 : index
    %275 = vector.load %arg13[%c0_217, %c0_218] : memref<288x256xbf16, #tpu.memory_space<vmem>>, vector<288x256xbf16>
    %cst_219 = arith.constant dense<0.000000e+00> : vector<32x256xf32>
    %276 = tpu.matmul %216, %275, %cst_219 {dimension_numbers = #tpu.dot_dimension_numbers<[1], [0], [0], [1], [0, 0, 1, 1], [], []>} : vector<32x288xbf16>, vector<288x256xbf16>, vector<32x256xf32> -> vector<32x256xf32>
    %c1_220 = arith.constant 1 : index
    %c0_221 = arith.constant 0 : index
    %c0_222 = arith.constant 0 : index
    %277 = vector.load %arg7[%c1_220, %c0_221, %c0_222] : memref<2x32x1xf32, #tpu.memory_space<vmem>>, vector<1x32x1xf32>
    %278 = vector.shape_cast %277 : vector<1x32x1xf32> to vector<32x1xf32>
    %279 = vector.broadcast %278 : vector<32x1xf32> to vector<32x256xf32>
    %280 = arith.addf %276, %279 : vector<32x256xf32>
    %281 = arith.addf %280, %146 : vector<32x256xf32>
    %cst_223 = arith.constant 0.000000e+00 : f32
    %282 = vector.broadcast %cst_223 : f32 to vector<32x256xf32>
    %283 = arith.maximumf %281, %282 : vector<32x256xf32>
    %c0_224 = arith.constant 0 : index
    %c0_225 = arith.constant 0 : index
    %284 = vector.load %arg8[%c0_224, %c0_225] : memref<8x288xbf16, #tpu.memory_space<vmem>>, vector<8x288xbf16>
    %c17_i32 = arith.constant 17 : i32
    %285 = tpu.dynamic_rotate %283 by %c17_i32 dim 1 : vector<32x256xf32>, i32 -> vector<32x256xf32>
    %c0_226 = arith.constant 0 : index
    %c0_227 = arith.constant 0 : index
    %c0_228 = arith.constant 0 : index
    %286 = vector.load %arg11[%c0_226, %c0_227, %c0_228] : memref<9x1x256xf32, #tpu.memory_space<vmem>>, vector<1x1x256xf32>
    %287 = vector.shape_cast %286 : vector<1x1x256xf32> to vector<1x256xf32>
    %288 = vector.broadcast %287 : vector<1x256xf32> to vector<32x256xf32>
    %289 = arith.mulf %285, %288 : vector<32x256xf32>
    %290 = arith.truncf %289 : vector<32x256xf32> to vector<32x256xbf16>
    %c0_229 = arith.constant 0 : index
    %c0_230 = arith.constant 0 : index
    %291 = vector.load %arg13[%c0_229, %c0_230] : memref<288x256xbf16, #tpu.memory_space<vmem>>, vector<32x256xbf16>
    tpu.vector_store %arg13[%c0_229, %c0_230], %290 {strides = array<i32>} : memref<288x256xbf16, #tpu.memory_space<vmem>>, vector<32x256xbf16>,
    %c16_i32 = arith.constant 16 : i32
    %292 = tpu.dynamic_rotate %283 by %c16_i32 dim 1 : vector<32x256xf32>, i32 -> vector<32x256xf32>
    %c1_231 = arith.constant 1 : index
    %c0_232 = arith.constant 0 : index
    %c0_233 = arith.constant 0 : index
    %293 = vector.load %arg11[%c1_231, %c0_232, %c0_233] : memref<9x1x256xf32, #tpu.memory_space<vmem>>, vector<1x1x256xf32>
    %294 = vector.shape_cast %293 : vector<1x1x256xf32> to vector<1x256xf32>
    %295 = vector.broadcast %294 : vector<1x256xf32> to vector<32x256xf32>
    %296 = arith.mulf %292, %295 : vector<32x256xf32>
    %297 = arith.truncf %296 : vector<32x256xf32> to vector<32x256xbf16>
    %c32_234 = arith.constant 32 : index
    %c0_235 = arith.constant 0 : index
    %298 = vector.load %arg13[%c32_234, %c0_235] : memref<288x256xbf16, #tpu.memory_space<vmem>>, vector<32x256xbf16>
    tpu.vector_store %arg13[%c32_234, %c0_235], %297 {strides = array<i32>} : memref<288x256xbf16, #tpu.memory_space<vmem>>, vector<32x256xbf16>,
    %c15_i32 = arith.constant 15 : i32
    %299 = tpu.dynamic_rotate %283 by %c15_i32 dim 1 : vector<32x256xf32>, i32 -> vector<32x256xf32>
    %c2_236 = arith.constant 2 : index
    %c0_237 = arith.constant 0 : index
    %c0_238 = arith.constant 0 : index
    %300 = vector.load %arg11[%c2_236, %c0_237, %c0_238] : memref<9x1x256xf32, #tpu.memory_space<vmem>>, vector<1x1x256xf32>
    %301 = vector.shape_cast %300 : vector<1x1x256xf32> to vector<1x256xf32>
    %302 = vector.broadcast %301 : vector<1x256xf32> to vector<32x256xf32>
    %303 = arith.mulf %299, %302 : vector<32x256xf32>
    %304 = arith.truncf %303 : vector<32x256xf32> to vector<32x256xbf16>
    %c64_239 = arith.constant 64 : index
    %c0_240 = arith.constant 0 : index
    %305 = vector.load %arg13[%c64_239, %c0_240] : memref<288x256xbf16, #tpu.memory_space<vmem>>, vector<32x256xbf16>
    tpu.vector_store %arg13[%c64_239, %c0_240], %304 {strides = array<i32>} : memref<288x256xbf16, #tpu.memory_space<vmem>>, vector<32x256xbf16>,
    %c1_i32 = arith.constant 1 : i32
    %306 = tpu.dynamic_rotate %283 by %c1_i32 dim 1 : vector<32x256xf32>, i32 -> vector<32x256xf32>
    %c3_241 = arith.constant 3 : index
    %c0_242 = arith.constant 0 : index
    %c0_243 = arith.constant 0 : index
    %307 = vector.load %arg11[%c3_241, %c0_242, %c0_243] : memref<9x1x256xf32, #tpu.memory_space<vmem>>, vector<1x1x256xf32>
    %308 = vector.shape_cast %307 : vector<1x1x256xf32> to vector<1x256xf32>
    %309 = vector.broadcast %308 : vector<1x256xf32> to vector<32x256xf32>
    %310 = arith.mulf %306, %309 : vector<32x256xf32>
    %311 = arith.truncf %310 : vector<32x256xf32> to vector<32x256xbf16>
    %c96_244 = arith.constant 96 : index
    %c0_245 = arith.constant 0 : index
    %312 = vector.load %arg13[%c96_244, %c0_245] : memref<288x256xbf16, #tpu.memory_space<vmem>>, vector<32x256xbf16>
    tpu.vector_store %arg13[%c96_244, %c0_245], %311 {strides = array<i32>} : memref<288x256xbf16, #tpu.memory_space<vmem>>, vector<32x256xbf16>,
    %313 = arith.truncf %283 : vector<32x256xf32> to vector<32x256xbf16>
    %c128_246 = arith.constant 128 : index
    %c0_247 = arith.constant 0 : index
    %314 = vector.load %arg13[%c128_246, %c0_247] : memref<288x256xbf16, #tpu.memory_space<vmem>>, vector<32x256xbf16>
    tpu.vector_store %arg13[%c128_246, %c0_247], %313 {strides = array<i32>} : memref<288x256xbf16, #tpu.memory_space<vmem>>, vector<32x256xbf16>,
    %c255_i32 = arith.constant 255 : i32
    %315 = tpu.dynamic_rotate %283 by %c255_i32 dim 1 : vector<32x256xf32>, i32 -> vector<32x256xf32>
    %c5_248 = arith.constant 5 : index
    %c0_249 = arith.constant 0 : index
    %c0_250 = arith.constant 0 : index
    %316 = vector.load %arg11[%c5_248, %c0_249, %c0_250] : memref<9x1x256xf32, #tpu.memory_space<vmem>>, vector<1x1x256xf32>
    %317 = vector.shape_cast %316 : vector<1x1x256xf32> to vector<1x256xf32>
    %318 = vector.broadcast %317 : vector<1x256xf32> to vector<32x256xf32>
    %319 = arith.mulf %315, %318 : vector<32x256xf32>
    %320 = arith.truncf %319 : vector<32x256xf32> to vector<32x256xbf16>
    %c160_251 = arith.constant 160 : index
    %c0_252 = arith.constant 0 : index
    %321 = vector.load %arg13[%c160_251, %c0_252] : memref<288x256xbf16, #tpu.memory_space<vmem>>, vector<32x256xbf16>
    tpu.vector_store %arg13[%c160_251, %c0_252], %320 {strides = array<i32>} : memref<288x256xbf16, #tpu.memory_space<vmem>>, vector<32x256xbf16>,
    %c241_i32 = arith.constant 241 : i32
    %322 = tpu.dynamic_rotate %283 by %c241_i32 dim 1 : vector<32x256xf32>, i32 -> vector<32x256xf32>
    %c6_253 = arith.constant 6 : index
    %c0_254 = arith.constant 0 : index
    %c0_255 = arith.constant 0 : index
    %323 = vector.load %arg11[%c6_253, %c0_254, %c0_255] : memref<9x1x256xf32, #tpu.memory_space<vmem>>, vector<1x1x256xf32>
    %324 = vector.shape_cast %323 : vector<1x1x256xf32> to vector<1x256xf32>
    %325 = vector.broadcast %324 : vector<1x256xf32> to vector<32x256xf32>
    %326 = arith.mulf %322, %325 : vector<32x256xf32>
    %327 = arith.truncf %326 : vector<32x256xf32> to vector<32x256xbf16>
    %c192_256 = arith.constant 192 : index
    %c0_257 = arith.constant 0 : index
    %328 = vector.load %arg13[%c192_256, %c0_257] : memref<288x256xbf16, #tpu.memory_space<vmem>>, vector<32x256xbf16>
    tpu.vector_store %arg13[%c192_256, %c0_257], %327 {strides = array<i32>} : memref<288x256xbf16, #tpu.memory_space<vmem>>, vector<32x256xbf16>,
    %c240_i32 = arith.constant 240 : i32
    %329 = tpu.dynamic_rotate %283 by %c240_i32 dim 1 : vector<32x256xf32>, i32 -> vector<32x256xf32>
    %c7_258 = arith.constant 7 : index
    %c0_259 = arith.constant 0 : index
    %c0_260 = arith.constant 0 : index
    %330 = vector.load %arg11[%c7_258, %c0_259, %c0_260] : memref<9x1x256xf32, #tpu.memory_space<vmem>>, vector<1x1x256xf32>
    %331 = vector.shape_cast %330 : vector<1x1x256xf32> to vector<1x256xf32>
    %332 = vector.broadcast %331 : vector<1x256xf32> to vector<32x256xf32>
    %333 = arith.mulf %329, %332 : vector<32x256xf32>
    %334 = arith.truncf %333 : vector<32x256xf32> to vector<32x256xbf16>
    %c224_261 = arith.constant 224 : index
    %c0_262 = arith.constant 0 : index
    %335 = vector.load %arg13[%c224_261, %c0_262] : memref<288x256xbf16, #tpu.memory_space<vmem>>, vector<32x256xbf16>
    tpu.vector_store %arg13[%c224_261, %c0_262], %334 {strides = array<i32>} : memref<288x256xbf16, #tpu.memory_space<vmem>>, vector<32x256xbf16>,
    %c239_i32 = arith.constant 239 : i32
    %336 = tpu.dynamic_rotate %283 by %c239_i32 dim 1 : vector<32x256xf32>, i32 -> vector<32x256xf32>
    %c8_263 = arith.constant 8 : index
    %c0_264 = arith.constant 0 : index
    %c0_265 = arith.constant 0 : index
    %337 = vector.load %arg11[%c8_263, %c0_264, %c0_265] : memref<9x1x256xf32, #tpu.memory_space<vmem>>, vector<1x1x256xf32>
    %338 = vector.shape_cast %337 : vector<1x1x256xf32> to vector<1x256xf32>
    %339 = vector.broadcast %338 : vector<1x256xf32> to vector<32x256xf32>
    %340 = arith.mulf %336, %339 : vector<32x256xf32>
    %341 = arith.truncf %340 : vector<32x256xf32> to vector<32x256xbf16>
    %c256_266 = arith.constant 256 : index
    %c0_267 = arith.constant 0 : index
    %342 = vector.load %arg13[%c256_266, %c0_267] : memref<288x256xbf16, #tpu.memory_space<vmem>>, vector<32x256xbf16>
    tpu.vector_store %arg13[%c256_266, %c0_267], %341 {strides = array<i32>} : memref<288x256xbf16, #tpu.memory_space<vmem>>, vector<32x256xbf16>,
    %c0_268 = arith.constant 0 : index
    %c0_269 = arith.constant 0 : index
    %343 = vector.load %arg13[%c0_268, %c0_269] : memref<288x256xbf16, #tpu.memory_space<vmem>>, vector<288x256xbf16>
    %cst_270 = arith.constant dense<0.000000e+00> : vector<8x256xf32>
    %344 = tpu.matmul %284, %343, %cst_270 {dimension_numbers = #tpu.dot_dimension_numbers<[1], [0], [0], [1], [0, 0, 1, 1], [], []>} : vector<8x288xbf16>, vector<288x256xbf16>, vector<8x256xf32> -> vector<8x256xf32>
    %c0_271 = arith.constant 0 : index
    %c0_272 = arith.constant 0 : index
    %345 = vector.load %arg9[%c0_271, %c0_272] : memref<8x1xf32, #tpu.memory_space<vmem>>, vector<8x1xf32>
    %346 = vector.broadcast %345 : vector<8x1xf32> to vector<8x256xf32>
    %347 = arith.addf %344, %346 : vector<8x256xf32>
    %c0_273 = arith.constant 0 : index
    %c0_274 = arith.constant 0 : index
    %c0_275 = arith.constant 0 : index
    %348 = vector.load %arg12[%c0_273, %c0_274, %c0_275] : memref<1x8x256xf32, #tpu.memory_space<vmem>>, vector<1x8x256xf32>
    %349 = vector.shape_cast %348 : vector<1x8x256xf32> to vector<8x256xf32>
    %350 = vector.shape_cast %347 : vector<8x256xf32> to vector<1x8x256xf32>
    tpu.vector_store %arg12[%c0_273, %c0_274, %c0_275], %350 {strides = array<i32>} : memref<1x8x256xf32, #tpu.memory_space<vmem>>, vector<1x8x256xf32>,
    return
  }
  func.func @transform_0(%arg0: i32) -> (i32, i32, i32) {
    %c0_i32 = arith.constant 0 : i32
    %c0_i32_0 = arith.constant 0 : i32
    %c0_i32_1 = arith.constant 0 : i32
    return %arg0, %c0_i32, %c0_i32_0 : i32, i32, i32
  }
  func.func @transform_1(%arg0: i32) -> (i32, i32) {
    %c0_i32 = arith.constant 0 : i32
    %c0_i32_0 = arith.constant 0 : i32
    %c0_i32_1 = arith.constant 0 : i32
    return %c0_i32, %c0_i32_0 : i32, i32
  }
  func.func @transform_2(%arg0: i32) -> (i32, i32) {
    %c0_i32 = arith.constant 0 : i32
    %c0_i32_0 = arith.constant 0 : i32
    %c0_i32_1 = arith.constant 0 : i32
    return %c0_i32, %c0_i32_0 : i32, i32
  }
  func.func @transform_3(%arg0: i32) -> (i32, i32, i32) {
    %c0_i32 = arith.constant 0 : i32
    %c0_i32_0 = arith.constant 0 : i32
    %c0_i32_1 = arith.constant 0 : i32
    %c0_i32_2 = arith.constant 0 : i32
    return %c0_i32, %c0_i32_0, %c0_i32_1 : i32, i32, i32
  }
  func.func @transform_4(%arg0: i32) -> (i32, i32, i32) {
    %c0_i32 = arith.constant 0 : i32
    %c0_i32_0 = arith.constant 0 : i32
    %c0_i32_1 = arith.constant 0 : i32
    %c0_i32_2 = arith.constant 0 : i32
    return %c0_i32, %c0_i32_0, %c0_i32_1 : i32, i32, i32
  }
  func.func @transform_5(%arg0: i32) -> (i32, i32, i32) {
    %c0_i32 = arith.constant 0 : i32
    %c0_i32_0 = arith.constant 0 : i32
    %c0_i32_1 = arith.constant 0 : i32
    %c0_i32_2 = arith.constant 0 : i32
    return %c0_i32, %c0_i32_0, %c0_i32_1 : i32, i32, i32
  }
  func.func @transform_6(%arg0: i32) -> (i32, i32, i32) {
    %c0_i32 = arith.constant 0 : i32
    %c0_i32_0 = arith.constant 0 : i32
    %c0_i32_1 = arith.constant 0 : i32
    %c0_i32_2 = arith.constant 0 : i32
    return %c0_i32, %c0_i32_0, %c0_i32_1 : i32, i32, i32
  }
  func.func @transform_7(%arg0: i32) -> (i32, i32) {
    %c0_i32 = arith.constant 0 : i32
    %c0_i32_0 = arith.constant 0 : i32
    %c0_i32_1 = arith.constant 0 : i32
    return %c0_i32, %c0_i32_0 : i32, i32
  }
  func.func @transform_8(%arg0: i32) -> (i32, i32) {
    %c0_i32 = arith.constant 0 : i32
    %c0_i32_0 = arith.constant 0 : i32
    %c0_i32_1 = arith.constant 0 : i32
    return %c0_i32, %c0_i32_0 : i32, i32
  }
  func.func @transform_9(%arg0: i32) -> (i32, i32, i32) {
    %c0_i32 = arith.constant 0 : i32
    %c0_i32_0 = arith.constant 0 : i32
    %c0_i32_1 = arith.constant 0 : i32
    %c0_i32_2 = arith.constant 0 : i32
    return %c0_i32, %c0_i32_0, %c0_i32_1 : i32, i32, i32
  }
  func.func @transform_10(%arg0: i32) -> (i32, i32, i32) {
    %c0_i32 = arith.constant 0 : i32
    %c0_i32_0 = arith.constant 0 : i32
    %c0_i32_1 = arith.constant 0 : i32
    %c0_i32_2 = arith.constant 0 : i32
    return %c0_i32, %c0_i32_0, %c0_i32_1 : i32, i32, i32
  }
  func.func @transform_11(%arg0: i32) -> (i32, i32, i32) {
    %c0_i32 = arith.constant 0 : i32
    %c0_i32_0 = arith.constant 0 : i32
    %c0_i32_1 = arith.constant 0 : i32
    return %arg0, %c0_i32, %c0_i32_0 : i32, i32, i32
  }
}

</mosaic_0001>

<bundles_post_ra>
// kernel: tpu_custom_call.1
= control target key start
LH: loop header
LB: loop body
LE: loop exit
PB: predicated region body
PF: predicated region fallthrough
CT: control target
= control target key end

     0   :  { %s8658_s0 = inlined_call_operand.vmem [shape: f32[2,16,256], index: 0, kind: input, shape index: {}]   ;;  %s8659_s1 = inlined_call_operand.vmem [shape: bf16[32,16], index: 1, kind: input, shape index: {}]   ;;  %s8660_s2 = inlined_call_operand.vmem [shape: f32[32,1], index: 2, kind: input, shape index: {}]   ;;  %s8661_s3 = inlined_call_operand.vmem [shape: bf16[2,32,288], index: 3, kind: input, shape index: {}]   ;;  %s8662_s4 = inlined_call_operand.vmem [shape: f32[2,32,1], index: 4, kind: input, shape index: {}]   ;;  %s8663_s5 = inlined_call_operand.hbm [shape: bf16[2,32,288], index: 5, kind: input, shape index: {}]   ;;  %s8664_s6 = inlined_call_operand.vmem [shape: f32[2,32,1], index: 6, kind: input, shape index: {}]   ;;  %s8665_s7 = inlined_call_operand.hbm [shape: bf16[8,288], index: 7, kind: input, shape index: {}]   ;;  %s8666_s8 = inlined_call_operand.vmem [shape: f32[8,1], index: 8, kind: input, shape index: {}]   ;;  %s8667_s9 = inlined_call_operand.vmem [shape: f32[9,1,256], index: 9, kind: input, shape index: {}]   ;;  %s8668_s10 = inlined_call_operand.hbm [shape: f32[9,1,256], index: 10, kind: input, shape index: {}]   ;;  %s8669_s11 = inlined_call_operand.hbm [shape: f32[2,8,256], index: 11, kind: output, shape index: {}]  }
   0x1   :  { %8674 = sst [smem:[#allocation17_spill]] %s8663_s5 }
   0x2   :  { %8675 = sst [smem:[#allocation18_spill]] %s8665_s7 }
   0x3   :  { %16 = vsyncpa [#allocation4], 0 }
   0x4   :  { %17 = vsyncpa [#allocation7], 0 }
   0x5   :  { %18 = vsyncpa [#allocation5], 0 }
   0x6   :  { %20 = vsyncpa [#allocation5 + $0x1], 0  ;;  %s5976_s17 = smov 0   ;;  %s5978_s18 = smov 0  }
   0x7   :  { %s5980_s19 = smov 0   ;;  %s5982_s20 = smov 0  }
   0x8 LB: > { %8676 = sst [smem:[#allocation13_spill]] %s5886_s19  ;;  %s5997_s21 = sadd.s32 4294967295, %s5890_s20   ;;  %s5890_s20 = sphi %s5982_s20, %s8687_s20   ;;  %s5886_s19 = sphi %s5980_s19, %s8689_s19   ;;  %s5882_s18 = sphi %s5978_s18, %s8691_s18   ;;  %s5878_s17 = sphi %s5976_s17, %s8690_s17  }
   0x9   : > { %s4512_s22 = sadd.s32 4294967294, %s5890_s20   ;;  %s6001_s23 = sadd.s32 1, %s5890_s20  }
   0xa   : > { %8677 = sst [smem:[#allocation14_spill]] %s6001_s23  ;;  %s269_s24 = sadd.s32 1, %s5886_s19 }
   0xb   : > { %s266_s25 = ssub.s32 %s5890_s20, %s6001_s23  ;;  %p279_p0 = scmp.ne.s32.totalorder %s5886_s19, %s5882_s18 }
   0xc   : > { %p267_p1 = scmp.eq.s32.totalorder %s266_s25, 0  ;;  %p280_p2 = scmp.eq.s32.totalorder %s5997_s21, 1 }
   0xd   : > { %p285_p3 = scmp.ne.s32.totalorder %s5882_s18, %s5878_s17  ;;  %p286_p4 = scmp.eq.s32.totalorder %s4512_s22, 1 }
   0xe   : > { %s6012_s26 = scalar_select %p267_p1, %s5886_s19, %s269_s24  }
   0xf   : > { %p6014_p5 = por %p280_p2, %p279_p0  ;;  %p6018_p6 = por %p286_p4, %p285_p3 }
  0x10   : > { %8678 = sst [smem:[#allocation15_spill]] %s6012_s26  ;;  %p4513_p7 = scmp.ge.s32.totalorder %s5890_s20, 1 }
  0x11   : > { %s8680_s28 = scalar_select %p6018_p6, 1, 0 }
  0x12   : > { %p293_p8 = scmp.lt.s32.totalorder %s5890_s20, 3  ;;  %p5664_p9 = scmp.eq.s32.totalorder %s5997_s21, 0 }
  0x13   : > { %8681 = sst [smem:[#allocation16_spill]] %s8680_s28  ;;  %s5892_s14 = smov [#allocation6]  }
  0x14   : > { %p6025_p10 = pnand %p4513_p7, %p293_p8  ;;  %s8683_s7 = sld [smem:[#allocation18_spill]] }
  0x15   : > { %s336_s15 = sshll.u32 %s5892_s14, 4  ;;  %s8684_s5 = sld [smem:[#allocation17_spill]]  ;;  %s337_s15 = int_to_ptr.vmem [resolvable:$true] %s336_s15 }
  0x16   : > { %p5650_p11 = pneg %p6025_p10  ;;  %s5893_s30 = smov [#allocation3]  }
  0x17   : > { %s318_s12 = sshll.u32 %s5893_s30, 4  ;;  %s5894_s14 = smov 192   ;;  %s319_s12 = int_to_ptr.vmem [resolvable:$true] %s318_s12 }
  0x18   : > { %p6039_p12 = pnand %p5664_p9, %p5650_p11  ;;  %s5896_s26 = smov [#allocation8]  }
  0x19   : > { %s353_s19 = sshll.u32 %s5896_s26, 4  ;;  %s5897_s23 = smov 32   ;;  %s354_s19 = int_to_ptr.vmem [resolvable:$true] %s353_s19 }
  0x1a   : > { %s334_s13 = sshll.u32 %s8683_s7, 4  ;;  %s5895_s7 = smov 12   ;;  %s335_s13 = int_to_ptr.hbm [resolvable:$true] %s334_s13 }
  0x1b   : > { %s316_s24 = sshll.u32 %s8684_s5, 4  ;;  %s351_s5 = sshll.u32 %s8668_s10, 4  ;;  %s317_s24 = int_to_ptr.hbm [resolvable:$true] %s316_s24  ;;  %s352_s5 = int_to_ptr.hbm [resolvable:$true] %s351_s5 }
  0x1c   : > { %5656 = dma.hbm_to_vmem [thread:$0]  (!%p6039_p12), %s335_s13, 192, %s337_s15, [#allocation7]  }
  0x1d   : > { %5653 = dma.hbm_to_vmem [thread:$0]  (!%p6039_p12), %s317_s24, 1536, %s319_s12, [#allocation4], %s5894_s14, %s5894_s14, %s5895_s7  }
  0x1e   : > { %s5898_s28 = smov 2   ;;  %377 = sbr.rel (%p6025_p10) target bundleno = 2357 (0x935), region = 64 }
  0x1f   : > { %5659 = dma.hbm_to_vmem [thread:$0]  (!%p6039_p12), %s352_s5, 288, %s354_s19, [#allocation7], %s5897_s23, %s5897_s23, %s5898_s28  }
  0x23   : > { %5865 = dma.done.wait (%p5664_p9), [#allocation4], 1536  }
  0x24   : > { %5867 = vsyncadd (%p5664_p9), [#allocation4], 4294965760 }
  0x25   : > { %5869 = dma.done.wait (%p5664_p9), [#allocation7], 480  }
  0x26   : > { %5871 = vsyncadd (%p5664_p9), [#allocation7], 4294966816  ;;  %p428_p13 = scmp.lt.s32.totalorder %s5997_s21, 1  ;;  %v5899_v0 = vmov 0   ;;  %v444_v6 = vld [vmem:[%s8660_s2] sm:$0xff]  ;;  %v446_v9 = vld [vmem:[%s8660_s2 + $0x10] sm:$0xff]  ;;  %v555_v47 = vlaneseq }
  0x27   : > { %5728 = vset.pattern.permute.xlu1 %v5899_v0  ;;  %5727 = vset.pattern.permute.xlu0 %v5899_v0  ;;  %v5421_v8 = vld [vmem:[%s8659_s1] sm:$0xff]  ;;  %vm478_vm0 = vcmask 130048   ;;  %v445_v10 = vld [vmem:[%s8660_s2 + $0x8] sm:$0xff]  ;;  %v447_v11 = vld [vmem:[%s8660_s2 + $0x18] sm:$0xff]  ;;  %s5901_s19 = smov 96   ;;  %s5902_s23 = smov 2  }
  0x28   : > { %s429_s5 = scalar_select %p428_p13, %s5997_s21, 1  ;;  %5729 = vset.pattern.permute.xlu2 %v5899_v0  ;;  %450 = vperm.xlu1 %5728, %v444_v6   ;;  %v5422_v12 = vld [vmem:[%s8659_s1 + $0x8] sm:$0xff]  ;;  %v6195_v49 = vand.u32 127, %v555_v47  ;;  %v4537_v60 = vld [vmem:[%s8667_s9 + $0x2] sm:$0x3]  ;;  %vm1202_vm9 = vcmask 261120  }
  0x29   : > { %460 = vperm.xlu0 %5727, %v446_v9   ;;  %s5904_s28 = smov 30   ;;  %s5905_s29 = smov 126   ;;  %v4541_v50 = vld [vmem:[%s8667_s9 + $0xc] sm:$0x3]  ;;  %v6225_v62 = vperm.slane %v4537_v60, 0  ;;  %v6227_v63 = vperm.slane %v4537_v60, 1 }
  0x2a   : > { %s5420_s7 = sshll.u32 %s429_s5, 5  ;;  %s5906_s13 = smov 34   ;;  %vm804_vm1 = vcmp.lt.s32.totalorder %v6195_v49, 98  ;;  %v6205_v51 = vperm.slane %v4541_v50, 0  ;;  %v6207_v52 = vperm.slane %v4541_v50, 1  ;;  %vm604_vm2 = vcmp.lt.s32.totalorder %v6195_v49, 32 }
  0x2b   : > { %s432_s26 = scalar_lea.vmem %s8658_s0, %s5420_s7  ;;  %s5900_s7 = smov 98   ;;  %vm852_vm3 = vcmp.lt.s32.totalorder %v6195_v49, 96  ;;  %vm700_vm4 = vcmp.lt.s32.totalorder %v6195_v49, 2  ;;  %vm652_vm5 = vcmp.lt.s32.totalorder %v6195_v49, 30  ;;  %vm756_vm6 = vcmp.lt.s32.totalorder %v6195_v49, 126 }
  0x2c   : > { %v434_v1 = vld [vmem:[%s432_s26] sm:$0xff]  ;;  %v436_v2 = vld [vmem:[%s432_s26 + $0x10] sm:$0xff]  ;;  %v435_v3 = vld [vmem:[%s432_s26 + $0x8] sm:$0xff]  ;;  %s5907_s30 = smov 94   ;;  %vm557_vm7 = vcmp.lt.s32.totalorder %v6195_v49, 34  ;;  %vm900_vm8 = vcmp.lt.s32.totalorder %v6195_v49, 94 }
  0x2d   : > { %v438_v4 = vpack.c.bf16 %v436_v2, %v434_v1  ;;  %v437_v5 = vld [vmem:[%s432_s26 + $0x18] sm:$0xff]  ;;  %s5903_s26 = smov 32   ;;  %s5908_s15 = smov 127   ;;  %vm3914_vm10 = vcmp.lt.s32.totalorder %v6195_v49, 127  ;;  %vm3962_vm11 = vcmp.lt.s32.totalorder %v6195_v49, 113  ;;  %vm3810_vm12 = vcmp.lt.s32.totalorder %v6195_v49, 15 }
  0x2e   : > { %v439_v7 = vpack.c.bf16 %v437_v5, %v435_v3  ;;  %s5909_s24 = smov 113   ;;  %s5910_s25 = smov 112   ;;  %vm3762_vm13 = vcmp.lt.s32.totalorder %v6195_v49, 16  ;;  %vm4010_vm14 = vcmp.lt.s32.totalorder %v6195_v49, 112  ;;  %vm3858_vm15 = vcmp.lt.s32.totalorder %v6195_v49, 1 }
  0x2f   : > { %492 = vmatpush.bf16.msra.mxu2 %v438_v4  ;;  %s5911_s12 = smov 15   ;;  %s5913_s14 = smov 16  }
  0x30   : > { %511 = vmatpush.bf16.msra.mxu1 %v439_v7  ;;  %455 = vperm.xlu1 %5728, %v445_v10   ;;  %v4542_v7 = vld [vmem:[%s8667_s9 + $0xe] sm:$0x3]  ;;  %s5914_s16 = smov 17   ;;  %s5915_s22 = smov 111  }
  0x31   : > { %465 = vperm.xlu0 %5727, %v447_v11   ;;  %v6246_v10 = vperm.slane %v4542_v7, 0  ;;  %v6252_v11 = vperm.slane %v4542_v7, 1 }
  0x32   : > { %4533 = vmatmul.msk.bf16.vlgmr.msra.gmra.mxu2 %vm478_vm0, %v5421_v8 }
  0x33   : > { %4535 = vmatmul.msk.bf16.vlgmr.msra.gmra.mxu1 %vm478_vm0, %v5421_v8  ;;  %v4539_v8 = vld [vmem:[%s8667_s9 + $0x6] sm:$0x3] }
  0x42   : > { %4534 = vmatmul.msk.bf16.gmra.mxu2 %vm478_vm0, %v5422_v12 }
  0x43   : > { %4536 = vmatmul.msk.bf16.gmra.mxu1 %vm478_vm0, %v5422_v12  ;;  %v6255_v12 = vperm.slane %v4539_v8, 0  ;;  %vm3715_vm0 = vcmp.lt.s32.totalorder %v6195_v49, 17 }
  0x9a   : > { %v451_v13 = vpop.permute.xlu1 %450 }
  0x9b   : > { %v461_v26 = vpop.permute.xlu0 %460 }
  0xa2   : > { %v456_v22 = vpop.permute.xlu1 %455 }
  0xa3   : > { %v466_v34 = vpop.permute.xlu0 %465 }
  0xb0   : > { %v513_v14 = vpop.f32.mrf.mxu1 }
  0xb1   : > { %v514_v15 = vadd.f32 %v513_v14, %v451_v13 }
  0xb3   : > { %v6085_v16 = vmax.f32 %v514_v15, 0.0 }
  0xb5   : > { %796 = vrot.lane.b32.xlu1 %v6085_v16, %s5900_s7  ;;  %844 = vrot.lane.b32.xlu0 %v6085_v16, %s5901_s19  ;;  %v494_v17 = vpop.f32.mrf.mxu2 }
  0xb6   : > { %692 = vrot.lane.b32.xlu2 %v6085_v16, %s5902_s23  ;;  %v495_v18 = vadd.f32 %v494_v17, %v451_v13  ;;  %v6257_v13 = vperm.slane %v4539_v8, 1 }
  0xb8   : > { %v6093_v19 = vmax.f32 %v495_v18, 0.0  ;;  %v515_v20 = vpop.f32.mrf.mxu1 }
  0xb9   : > { %v516_v23 = vadd.f32 %v515_v20, %v456_v22 }
  0xba   : > { %v732_v21 = vpack.c.bf16 %v6085_v16, %v6093_v19 }
  0xbb   : > { %v6103_v27 = vmax.f32 %v516_v23, 0.0 }
  0xbc   : > { %736 = vst [vmem:[#allocation2 + $0x80] sm:$0xff] %v732_v21 }
  0xbd   : > { %596 = vrot.lane.b32.xlu1 %v6085_v16, %s5903_s26  ;;  %644 = vrot.lane.b32.xlu0 %v6085_v16, %s5904_s28  ;;  %v496_v24 = vpop.f32.mrf.mxu2 }
  0xbe   : > { %748 = vrot.lane.b32.xlu2 %v6085_v16, %s5905_s29  ;;  %v497_v25 = vadd.f32 %v496_v24, %v456_v22 }
  0xc0   : > { %v6105_v28 = vmax.f32 %v497_v25, 0.0  ;;  %v518_v29 = vpop.f32.mrf.mxu1 }
  0xc1   : > { %v519_v33 = vadd.f32 %v518_v29, %v461_v26  ;;  %v4538_v29 = vld [vmem:[%s8667_s9 + $0x4] sm:$0x3] }
  0xc2   : > { %v733_v30 = vpack.c.bf16 %v6103_v27, %v6105_v28 }
  0xc3   : > { %v6117_v38 = vmax.f32 %v519_v33, 0.0  ;;  %v6282_v33 = vperm.slane %v4538_v29, 0 }
  0xc4   : > { %737 = vst [vmem:[#allocation2 + $0x88] sm:$0xff] %v733_v30  ;;  %v4540_v30 = vld [vmem:[%s8667_s9 + $0xa] sm:$0x3] }
  0xc5   : > { %836 = vrot.lane.b32.xlu1 %v6093_v19, %s5901_s19  ;;  %684 = vrot.lane.b32.xlu0 %v6093_v19, %s5902_s23  ;;  %v499_v31 = vpop.f32.mrf.mxu2 }
  0xc6   : > { %788 = vrot.lane.b32.xlu2 %v6093_v19, %s5900_s7  ;;  %v500_v32 = vadd.f32 %v499_v31, %v461_v26 }
  0xc8   : > { %v520_v35 = vpop.f32.mrf.mxu1  ;;  %v6115_v37 = vmax.f32 %v500_v32, 0.0 }
  0xc9   : > { %v521_v36 = vadd.f32 %v520_v35, %v466_v34  ;;  %v6291_v35 = vperm.slane %v4540_v30, 0 }
  0xca   : > { %v734_v42 = vpack.c.bf16 %v6117_v38, %v6115_v37 }
  0xcb   : > { %v6125_v41 = vmax.f32 %v521_v36, 0.0  ;;  %v6293_v36 = vperm.slane %v4540_v30, 1 }
  0xcc   : > { %738 = vst [vmem:[#allocation2 + $0x90] sm:$0xff] %v734_v42 }
  0xcd   : > { %636 = vrot.lane.b32.xlu1 %v6093_v19, %s5904_s28  ;;  %740 = vrot.lane.b32.xlu0 %v6093_v19, %s5905_s29  ;;  %v501_v39 = vpop.f32.mrf.mxu2 }
  0xce   : > { %588 = vrot.lane.b32.xlu2 %v6093_v19, %s5903_s26  ;;  %v502_v40 = vadd.f32 %v501_v39, %v466_v34  ;;  %v6288_v34 = vperm.slane %v4538_v29, 1 }
  0xd0   : > { %v6129_v43 = vmax.f32 %v502_v40, 0.0 }
  0xd2   : > { %v735_v44 = vpack.c.bf16 %v6125_v41, %v6129_v43 }
  0xd4   : > { %739 = vst [vmem:[#allocation2 + $0x98] sm:$0xff] %v735_v44 }
  0xd5   : > { %846 = vrot.lane.b32.xlu1 %v6103_v27, %s5901_s19  ;;  %694 = vrot.lane.b32.xlu0 %v6103_v27, %s5902_s23 }
  0xd6   : > { %798 = vrot.lane.b32.xlu2 %v6103_v27, %s5900_s7 }
  0xdd   : > { %646 = vrot.lane.b32.xlu1 %v6103_v27, %s5904_s28  ;;  %790 = vrot.lane.b32.xlu0 %v6105_v28, %s5900_s7 }
  0xde   : > { %598 = vrot.lane.b32.xlu2 %v6103_v27, %s5903_s26 }
  0xe5   : > { %686 = vrot.lane.b32.xlu1 %v6105_v28, %s5902_s23  ;;  %590 = vrot.lane.b32.xlu0 %v6105_v28, %s5903_s26 }
  0xe6   : > { %838 = vrot.lane.b32.xlu2 %v6105_v28, %s5901_s19 }
  0xed   : > { %742 = vrot.lane.b32.xlu1 %v6105_v28, %s5905_s29  ;;  %696 = vrot.lane.b32.xlu0 %v6117_v38, %s5902_s23 }
  0xee   : > { %638 = vrot.lane.b32.xlu2 %v6105_v28, %s5904_s28 }
  0xf5   : > { %848 = vrot.lane.b32.xlu1 %v6117_v38, %s5901_s19  ;;  %752 = vrot.lane.b32.xlu0 %v6117_v38, %s5905_s29 }
  0xf6   : > { %800 = vrot.lane.b32.xlu2 %v6117_v38, %s5900_s7 }
  0xfd   : > { %648 = vrot.lane.b32.xlu1 %v6117_v38, %s5904_s28  ;;  %792 = vrot.lane.b32.xlu0 %v6115_v37, %s5900_s7 }
  0xfe   : > { %600 = vrot.lane.b32.xlu2 %v6117_v38, %s5903_s26 }
 0x105   : > { %744 = vrot.lane.b32.xlu1 %v6115_v37, %s5905_s29  ;;  %592 = vrot.lane.b32.xlu0 %v6115_v37, %s5903_s26 }
 0x106   : > { %688 = vrot.lane.b32.xlu2 %v6115_v37, %s5902_s23 }
 0x10d   : > { %698 = vrot.lane.b32.xlu1 %v6125_v41, %s5902_s23  ;;  %802 = vrot.lane.b32.xlu0 %v6125_v41, %s5900_s7 }
 0x10e   : > { %840 = vrot.lane.b32.xlu2 %v6115_v37, %s5901_s19 }
 0x110   : > { %v693_v45 = vpop.permute.xlu2 %692 }
 0x115   : > { %754 = vrot.lane.b32.xlu1 %v6125_v41, %s5905_s29  ;;  %602 = vrot.lane.b32.xlu0 %v6125_v41, %s5903_s26 }
 0x116   : > { %640 = vrot.lane.b32.xlu2 %v6115_v37, %s5904_s28 }
 0x118   : > { %v6187_v46 = vpop.permute.xlu2 %748 }
 0x11d   : > { %543 = vrot.lane.b32.xlu1 %v6115_v37, %s5906_s13  ;;  %842 = vrot.lane.b32.xlu0 %v6129_v43, %s5901_s19 }
 0x11e   : > { %850 = vrot.lane.b32.xlu2 %v6125_v41, %s5901_s19 }
 0x120   : > { %v789_v48 = vpop.permute.xlu2 %788 }
 0x125   : > { %794 = vrot.lane.b32.xlu1 %v6129_v43, %s5900_s7  ;;  %642 = vrot.lane.b32.xlu0 %v6129_v43, %s5904_s28 }
 0x126   : > { %650 = vrot.lane.b32.xlu2 %v6125_v41, %s5904_s28 }
 0x127   : > { %v797_v53 = vpop.permute.xlu1 %796  ;;  %v845_v54 = vpop.permute.xlu0 %844 }
 0x128   : > { %v805_v55 = vsel %vm804_vm1, %v789_v48, %v797_v53  ;;  %v809_v56 = vsel %vm804_vm1, %v797_v53, %v789_v48  ;;  %v589_v57 = vpop.permute.xlu2 %588 }
 0x129   : > { %v820_v58 = vmul.f32 %v6205_v51, %v805_v55  ;;  %v821_v59 = vmul.f32 %v6207_v52, %v809_v56 }
 0x12b   : > { %v828_v61 = vpack.c.bf16 %v821_v59, %v820_v58 }
 0x12d   : > { %832 = vst [vmem:[#allocation2 + $0xc0] sm:$0xff] %v828_v61  ;;  %594 = vrot.lane.b32.xlu1 %v6129_v43, %s5903_s26  ;;  %750 = vrot.lane.b32.xlu0 %v6103_v27, %s5905_s29 }
 0x12e   : > { %690 = vrot.lane.b32.xlu2 %v6129_v43, %s5902_s23 }
 0x12f   : > { %v597_v0 = vpop.permute.xlu1 %596  ;;  %v645_v1 = vpop.permute.xlu0 %644 }
 0x130   : > { %v605_v2 = vsel %vm604_vm2, %v589_v57, %v597_v0  ;;  %v609_v3 = vsel %vm604_vm2, %v597_v0, %v589_v57  ;;  %v6235_v4 = vpop.permute.xlu2 %798 }
 0x131   : > { %v620_v5 = vmul.f32 %v6225_v62, %v609_v3  ;;  %v621_v6 = vmul.f32 %v6227_v63, %v605_v2 }
 0x133   : > { %v628_v9 = vpack.c.bf16 %v621_v6, %v620_v5 }
 0x135   : > { %632 = vst [vmem:[#allocation2 + $0x20] sm:$0xff] %v628_v9  ;;  %553 = vrot.lane.b32.xlu1 %v6125_v41, %s5906_s13  ;;  %551 = vrot.lane.b32.xlu0 %v6117_v38, %s5906_s13 }
 0x136   : > { %539 = vrot.lane.b32.xlu2 %v6093_v19, %s5906_s13 }
 0x137   : > { %v837_v14 = vpop.permute.xlu1 %836  ;;  %v685_v15 = vpop.permute.xlu0 %684 }
 0x138   : > { %v6261_v17 = vpop.permute.xlu2 %598  ;;  %v853_v18 = vsel %vm852_vm3, %v837_v14, %v845_v54  ;;  %v857_v20 = vsel %vm852_vm3, %v845_v54, %v837_v14  ;;  %v701_v21 = vsel %vm700_vm4, %v685_v15, %v693_v45  ;;  %v705_v22 = vsel %vm700_vm4, %v693_v45, %v685_v15 }
 0x139   : > { %v868_v23 = vmul.f32 %v6246_v10, %v853_v18  ;;  %v869_v24 = vmul.f32 %v6252_v11, %v857_v20  ;;  %v716_v25 = vmul.f32 %v6255_v12, %v705_v22  ;;  %v717_v26 = vmul.f32 %v6257_v13, %v701_v21 }
 0x13b   : > { %v876_v31 = vpack.c.bf16 %v869_v24, %v868_v23  ;;  %v724_v32 = vpack.c.bf16 %v717_v26, %v716_v25 }
 0x13d   : > { %880 = vst [vmem:[#allocation2 + $0xe0] sm:$0xff] %v876_v31  ;;  %547 = vrot.lane.b32.xlu1 %v6085_v16, %s5906_s13  ;;  %541 = vrot.lane.b32.xlu0 %v6105_v28, %s5906_s13 }
 0x13e   : > { %728 = vst [vmem:[#allocation2 + $0x60] sm:$0xff] %v724_v32  ;;  %746 = vrot.lane.b32.xlu2 %v6129_v43, %s5905_s29 }
 0x13f   : > { %v637_v39 = vpop.permute.xlu1 %636  ;;  %v741_v40 = vpop.permute.xlu0 %740 }
 0x140   : > { %v839_v42 = vpop.permute.xlu2 %838  ;;  %v653_v44 = vsel %vm652_vm5, %v637_v39, %v645_v1  ;;  %v657_v45 = vsel %vm652_vm5, %v645_v1, %v637_v39  ;;  %v757_v47 = vsel %vm756_vm6, %v741_v40, %v6187_v46  ;;  %v761_v48 = vsel %vm756_vm6, %v6187_v46, %v741_v40 }
 0x141   : > { %v668_v50 = vmul.f32 %v6282_v33, %v657_v45  ;;  %v669_v53 = vmul.f32 %v6288_v34, %v653_v44  ;;  %v772_v54 = vmul.f32 %v6291_v35, %v757_v47  ;;  %v773_v55 = vmul.f32 %v6293_v36, %v761_v48  ;;  %v968_v44 = vld [vmem:[%s8662_s4] sm:$0xff]  ;;  %v971_v45 = vld [vmem:[%s8662_s4 + $0x18] sm:$0xff] }
 0x143   : > { %v676_v56 = vpack.c.bf16 %v669_v53, %v668_v50  ;;  %v780_v57 = vpack.c.bf16 %v773_v55, %v772_v54 }
 0x145   : > { %680 = vst [vmem:[#allocation2 + $0x40] sm:$0xff] %v676_v56  ;;  %884 = vrot.lane.b32.xlu1 %v6093_v19, %s5907_s30  ;;  %888 = vrot.lane.b32.xlu0 %v6115_v37, %s5907_s30 }
 0x146   : > { %784 = vst [vmem:[#allocation2 + $0xa0] sm:$0xff] %v780_v57  ;;  %545 = vrot.lane.b32.xlu2 %v6129_v43, %s5906_s13 }
 0x147   : > { %v847_v46 = vpop.permute.xlu1 %846  ;;  %v695_v58 = vpop.permute.xlu0 %694 }
 0x148   : > { %v639_v59 = vpop.permute.xlu2 %638  ;;  %v854_v60 = vsel %vm852_vm3, %v839_v42, %v847_v46  ;;  %v858_v61 = vsel %vm852_vm3, %v847_v46, %v839_v42 }
 0x149   : > { %v870_v0 = vmul.f32 %v6246_v10, %v854_v60  ;;  %v871_v1 = vmul.f32 %v6252_v11, %v858_v61 }
 0x14b   : > { %v877_v2 = vpack.c.bf16 %v871_v1, %v870_v0 }
 0x14d   : > { %881 = vst [vmem:[#allocation2 + $0xe8] sm:$0xff] %v877_v2  ;;  %890 = vrot.lane.b32.xlu1 %v6129_v43, %s5907_s30  ;;  %898 = vrot.lane.b32.xlu0 %v6125_v41, %s5907_s30 }
 0x14e   : > { %549 = vrot.lane.b32.xlu2 %v6103_v27, %s5906_s13 }
 0x14f   : > { %v647_v3 = vpop.permute.xlu1 %646  ;;  %v791_v5 = vpop.permute.xlu0 %790 }
 0x150   : > { %v801_v6 = vpop.permute.xlu2 %800  ;;  %v654_v7 = vsel %vm652_vm5, %v639_v59, %v647_v3  ;;  %v658_v8 = vsel %vm652_vm5, %v647_v3, %v639_v59  ;;  %v806_v9 = vsel %vm804_vm1, %v791_v5, %v6235_v4  ;;  %v810_v14 = vsel %vm804_vm1, %v6235_v4, %v791_v5 }
 0x151   : > { %v670_v15 = vmul.f32 %v6282_v33, %v658_v8  ;;  %v671_v18 = vmul.f32 %v6288_v34, %v654_v7  ;;  %v822_v20 = vmul.f32 %v6205_v51, %v806_v9  ;;  %v823_v21 = vmul.f32 %v6207_v52, %v810_v14 }
 0x153   : > { %v677_v22 = vpack.c.bf16 %v671_v18, %v670_v15  ;;  %v829_v23 = vpack.c.bf16 %v823_v21, %v822_v20 }
 0x155   : > { %681 = vst [vmem:[#allocation2 + $0x48] sm:$0xff] %v677_v22  ;;  %894 = vrot.lane.b32.xlu1 %v6103_v27, %s5907_s30  ;;  %892 = vrot.lane.b32.xlu0 %v6085_v16, %s5907_s30 }
 0x156   : > { %833 = vst [vmem:[#allocation2 + $0xc8] sm:$0xff] %v829_v23  ;;  %896 = vrot.lane.b32.xlu2 %v6117_v38, %s5907_s30 }
 0x157   : > { %v687_v4 = vpop.permute.xlu1 %686  ;;  %v591_v24 = vpop.permute.xlu0 %590 }
 0x158   : > { %v601_v25 = vpop.permute.xlu2 %600  ;;  %v702_v26 = vsel %vm700_vm4, %v687_v4, %v695_v58  ;;  %v706_v29 = vsel %vm700_vm4, %v695_v58, %v687_v4  ;;  %v606_v30 = vsel %vm604_vm2, %v591_v24, %v6261_v17  ;;  %v610_v31 = vsel %vm604_vm2, %v6261_v17, %v591_v24 }
 0x159   : > { %v718_v32 = vmul.f32 %v6255_v12, %v706_v29  ;;  %v719_v39 = vmul.f32 %v6257_v13, %v702_v26  ;;  %v622_v40 = vmul.f32 %v6225_v62, %v610_v31  ;;  %v623_v42 = vmul.f32 %v6227_v63, %v606_v30 }
 0x15b   : > { %v725_v47 = vpack.c.bf16 %v719_v39, %v718_v32  ;;  %v629_v48 = vpack.c.bf16 %v623_v42, %v622_v40 }
 0x15d   : > { %729 = vst [vmem:[#allocation2 + $0x68] sm:$0xff] %v725_v47  ;;  %974 = vperm.xlu1 %5728, %v968_v44   ;;  %989 = vperm.xlu0 %5727, %v971_v45  }
 0x15e   : > { %633 = vst [vmem:[#allocation2 + $0x28] sm:$0xff] %v629_v48  ;;  %886 = vrot.lane.b32.xlu2 %v6105_v28, %s5907_s30 }
 0x15f   : > { %v6371_v17 = vpop.permute.xlu1 %742  ;;  %v697_v50 = vpop.permute.xlu0 %696 }
 0x160   : > { %v689_v53 = vpop.permute.xlu2 %688 }
 0x161   : > { %v703_v54 = vsel %vm700_vm4, %v689_v53, %v697_v50  ;;  %v707_v55 = vsel %vm700_vm4, %v697_v50, %v689_v53 }
 0x162   : > { %v720_v56 = vmul.f32 %v6255_v12, %v707_v55  ;;  %v721_v57 = vmul.f32 %v6257_v13, %v703_v54 }
 0x164   : > { %v726_v46 = vpack.c.bf16 %v721_v57, %v720_v56 }
 0x166   : > { %730 = vst [vmem:[#allocation2 + $0x70] sm:$0xff] %v726_v46 }
 0x167   : > { %v849_v58 = vpop.permute.xlu1 %848  ;;  %v753_v59 = vpop.permute.xlu0 %752 }
 0x168   : > { %v841_v60 = vpop.permute.xlu2 %840 }
 0x169   : > { %v855_v61 = vsel %vm852_vm3, %v841_v60, %v849_v58  ;;  %v859_v0 = vsel %vm852_vm3, %v849_v58, %v841_v60 }
 0x16a   : > { %v872_v1 = vmul.f32 %v6246_v10, %v855_v61  ;;  %v873_v2 = vmul.f32 %v6252_v11, %v859_v0 }
 0x16c   : > { %v878_v3 = vpack.c.bf16 %v873_v2, %v872_v1 }
 0x16e   : > { %882 = vst [vmem:[#allocation2 + $0xf0] sm:$0xff] %v878_v3 }
 0x16f   : > { %v649_v5 = vpop.permute.xlu1 %648  ;;  %v793_v7 = vpop.permute.xlu0 %792 }
 0x170   : > { %v641_v8 = vpop.permute.xlu2 %640  ;;  %v807_v9 = vsel %vm804_vm1, %v793_v7, %v801_v6  ;;  %v811_v14 = vsel %vm804_vm1, %v801_v6, %v793_v7 }
 0x171   : > { %v655_v15 = vsel %vm652_vm5, %v641_v8, %v649_v5  ;;  %v659_v18 = vsel %vm652_vm5, %v649_v5, %v641_v8  ;;  %v824_v20 = vmul.f32 %v6205_v51, %v807_v9  ;;  %v825_v21 = vmul.f32 %v6207_v52, %v811_v14  ;;  %v5442_v8 = vld [vmem:[#allocation2 + $0x64] sm:$0xf0]  ;;  %v5443_v9 = vld [vmem:[#allocation2 + $0x74] sm:$0xf]  ;;  %v4620_v14 = vld [vmem:[#allocation2 + $0x68] sm:$0xf0] }
 0x172   : > { %v672_v22 = vmul.f32 %v6282_v33, %v659_v18  ;;  %v673_v23 = vmul.f32 %v6288_v34, %v655_v15 }
 0x173   : > { %v830_v4 = vpack.c.bf16 %v825_v21, %v824_v20 }
 0x174   : > { %v678_v24 = vpack.c.bf16 %v673_v23, %v672_v22  ;;  %v4618_v22 = vld [vmem:[#allocation2 + $0x60] sm:$0xf]  ;;  %v5441_v23 = vld [vmem:[#allocation2 + $0x64] sm:$0xf] }
 0x175   : > { %834 = vst [vmem:[#allocation2 + $0xd0] sm:$0xff] %v830_v4 }
 0x176   : > { %682 = vst [vmem:[#allocation2 + $0x50] sm:$0xff] %v678_v24 }
 0x177   : > { %v745_v26 = vpop.permute.xlu1 %744  ;;  %v593_v6 = vpop.permute.xlu0 %592 }
 0x178   : > { %v851_v29 = vpop.permute.xlu2 %850  ;;  %v759_v30 = vsel %vm756_vm6, %v745_v26, %v753_v59  ;;  %v763_v31 = vsel %vm756_vm6, %v753_v59, %v745_v26  ;;  %v607_v32 = vsel %vm604_vm2, %v593_v6, %v601_v25  ;;  %v611_v39 = vsel %vm604_vm2, %v601_v25, %v593_v6 }
 0x179   : > { %v776_v40 = vmul.f32 %v6291_v35, %v759_v30  ;;  %v777_v42 = vmul.f32 %v6293_v36, %v763_v31  ;;  %v624_v44 = vmul.f32 %v6225_v62, %v611_v39  ;;  %v625_v45 = vmul.f32 %v6227_v63, %v607_v32 }
 0x17a   : > { %v4619_v26 = vor.u32 %v5442_v8, %v4618_v22  ;;  %v4623_v6 = vor.u32 %v5441_v23, %v4620_v14 }
 0x17b   : > { %v782_v47 = vpack.c.bf16 %v777_v42, %v776_v40  ;;  %v630_v48 = vpack.c.bf16 %v625_v45, %v624_v44 }
 0x17d   : > { %786 = vst [vmem:[#allocation2 + $0xb0] sm:$0xff] %v782_v47  ;;  %v4610_v14 = vld [vmem:[#allocation2 + $0x50] sm:$0xf] }
 0x17e   : > { %634 = vst [vmem:[#allocation2 + $0x30] sm:$0xff] %v630_v48 }
 0x17f   : > { %v699_v50 = vpop.permute.xlu1 %698  ;;  %v803_v53 = vpop.permute.xlu0 %802 }
 0x180   : > { %v651_v54 = vpop.permute.xlu2 %650 }
 0x187   : > { %v755_v55 = vpop.permute.xlu1 %754  ;;  %v6409_v56 = vpop.permute.xlu0 %602 }
 0x188   : > { %v691_v57 = vpop.permute.xlu2 %690 }
 0x189   : > { %v704_v25 = vsel %vm700_vm4, %v691_v57, %v699_v50  ;;  %v708_v46 = vsel %vm700_vm4, %v699_v50, %v691_v57 }
 0x18a   : > { %v722_v58 = vmul.f32 %v6255_v12, %v708_v46  ;;  %v723_v59 = vmul.f32 %v6257_v13, %v704_v25  ;;  %v4626_v13 = vld [vmem:[#allocation2 + $0x70] sm:$0xf]  ;;  %v4682_v46 = vld [vmem:[#allocation2 + $0xe0] sm:$0xf] }
 0x18c   : > { %v727_v60 = vpack.c.bf16 %v723_v59, %v722_v58 }
 0x18e   : > { %731 = vst [vmem:[#allocation2 + $0x78] sm:$0xff] %v727_v60 }
 0x18f   : > { %v6417_v61 = vpop.permute.xlu1 %543  ;;  %v843_v0 = vpop.permute.xlu0 %842 }
 0x190   : > { %v6419_v1 = vpop.permute.xlu2 %539  ;;  %v856_v2 = vsel %vm852_vm3, %v843_v0, %v851_v29  ;;  %v860_v3 = vsel %vm852_vm3, %v851_v29, %v843_v0 }
 0x191   : > { %v874_v5 = vmul.f32 %v6246_v10, %v856_v2  ;;  %v875_v7 = vmul.f32 %v6252_v11, %v860_v3 }
 0x193   : > { %v879_v12 = vpack.c.bf16 %v875_v7, %v874_v5 }
 0x195   : > { %883 = vst [vmem:[#allocation2 + $0xf8] sm:$0xff] %v879_v12  ;;  %v5444_v15 = vld [vmem:[#allocation2 + $0x74] sm:$0xf0]  ;;  %v4628_v18 = vld [vmem:[#allocation2 + $0x78] sm:$0xf0] }
 0x196   : > { %v4627_v20 = vor.u32 %v5444_v15, %v4626_v13  ;;  %v4631_v21 = vor.u32 %v5443_v9, %v4628_v18  ;;  %v5454_v9 = vld [vmem:[#allocation2 + $0xc4] sm:$0xf0]  ;;  %v4674_v15 = vld [vmem:[#allocation2 + $0xd0] sm:$0xf]  ;;  %v4666_v18 = vld [vmem:[#allocation2 + $0xc0] sm:$0xf] }
 0x197   : > { %v795_v4 = vpop.permute.xlu1 %794  ;;  %v643_v24 = vpop.permute.xlu0 %642 }
 0x198   : > { %v747_v29 = vpop.permute.xlu2 %746  ;;  %v808_v10 = vsel %vm804_vm1, %v795_v4, %v803_v53  ;;  %v812_v11 = vsel %vm804_vm1, %v803_v53, %v795_v4  ;;  %1209 = vmatpush.bf16.msrb.mxu2 %v4627_v20  ;;  %1266 = vmatpush.bf16.msrb.mxu1 %v4631_v21  ;;  %v656_v30 = vsel %vm652_vm5, %v643_v24, %v651_v54 }
 0x199   : > { %v760_v31 = vsel %vm756_vm6, %v747_v29, %v755_v55  ;;  %v764_v32 = vsel %vm756_vm6, %v755_v55, %v747_v29  ;;  %v826_v39 = vmul.f32 %v6205_v51, %v808_v10  ;;  %v827_v40 = vmul.f32 %v6207_v52, %v812_v11  ;;  %v4690_v55 = vld [vmem:[#allocation2 + $0xf0] sm:$0xf]  ;;  %v5458_v51 = vld [vmem:[#allocation2 + $0xe4] sm:$0xf0] }
 0x19a   : > { %v778_v42 = vmul.f32 %v6291_v35, %v760_v31  ;;  %v779_v44 = vmul.f32 %v6293_v36, %v764_v32  ;;  %v660_v45 = vsel %vm652_vm5, %v651_v54, %v643_v24  ;;  %v675_v47 = vmul.f32 %v6288_v34, %v656_v30  ;;  %v5438_v30 = vld [vmem:[#allocation2 + $0x44] sm:$0xf0]  ;;  %v4604_v31 = vld [vmem:[#allocation2 + $0x48] sm:$0xf0] }
 0x19b   : > { %v831_v48 = vpack.c.bf16 %v827_v40, %v826_v39  ;;  %v674_v50 = vmul.f32 %v6282_v33, %v660_v45  ;;  %v4683_v59 = vor.u32 %v5458_v51, %v4682_v46  ;;  %v5437_v45 = vld [vmem:[#allocation2 + $0x44] sm:$0xf] }
 0x19c   : > { %v783_v53 = vpack.c.bf16 %v779_v44, %v778_v42  ;;  %1210 = vmatpush.bf16.msrb.mxu2 %v4619_v26  ;;  %1267 = vmatpush.bf16.msrb.mxu1 %v4623_v6  ;;  %v5460_v57 = vld [vmem:[#allocation2 + $0xf4] sm:$0xf0]  ;;  %v4667_v26 = vor.u32 %v5454_v9, %v4666_v18  ;;  %v4602_v44 = vld [vmem:[#allocation2 + $0x40] sm:$0xf] }
 0x19d   : > { %835 = vst [vmem:[#allocation2 + $0xd8] sm:$0xff] %v831_v48  ;;  %v679_v52 = vpack.c.bf16 %v675_v47, %v674_v50  ;;  %v4691_v25 = vor.u32 %v5460_v57, %v4690_v55  ;;  %v4603_v50 = vor.u32 %v5438_v30, %v4602_v44  ;;  %v4594_v55 = vld [vmem:[#allocation2 + $0x30] sm:$0xf]  ;;  %v4586_v18 = vld [vmem:[#allocation2 + $0x20] sm:$0xf] }
 0x19e   : > { %787 = vst [vmem:[#allocation2 + $0xb8] sm:$0xff] %v783_v53  ;;  %v4607_v53 = vor.u32 %v5437_v45, %v4604_v31  ;;  %v4658_v57 = vld [vmem:[#allocation2 + $0xb0] sm:$0xf]  ;;  %v5446_v31 = vld [vmem:[#allocation2 + $0x84] sm:$0xf0] }
 0x19f   : > { %683 = vst [vmem:[#allocation2 + $0x58] sm:$0xff] %v679_v52  ;;  %v595_v58 = vpop.permute.xlu1 %594  ;;  %1228 = vmatpush.bf16.msra.mxu3 %v4691_v25  ;;  %v751_v54 = vpop.permute.xlu0 %750  ;;  %v5435_v25 = vld [vmem:[#allocation2 + $0x34] sm:$0xf] }
 0x1a0   : > { %v608_v33 = vsel %vm604_vm2, %v595_v58, %v6409_v56  ;;  %v612_v34 = vsel %vm604_vm2, %v6409_v56, %v595_v58  ;;  %v758_v60 = vsel %vm756_vm6, %v6371_v17, %v751_v54  ;;  %v762_v0 = vsel %vm756_vm6, %v751_v54, %v6371_v17  ;;  %v546_v12 = vpop.permute.xlu2 %545  ;;  %v566_v56 = vld [vmem:[%s8667_s9] sm:$0x3] }
 0x1a1   : > { %v626_v2 = vmul.f32 %v6225_v62, %v612_v34  ;;  %v627_v3 = vmul.f32 %v6227_v63, %v608_v33  ;;  %v774_v5 = vmul.f32 %v6291_v35, %v758_v60  ;;  %v775_v7 = vmul.f32 %v6293_v36, %v762_v0  ;;  %v5439_v36 = vld [vmem:[#allocation2 + $0x54] sm:$0xf]  ;;  %v4650_v34 = vld [vmem:[#allocation2 + $0xa0] sm:$0xf] }
 0x1a2   : > { %v568_v62 = vperm.slane %v566_v56, 0  ;;  %v6465_v63 = vperm.slane %v566_v56, 1  ;;  %v5434_v56 = vld [vmem:[#allocation2 + $0x24] sm:$0xf0] }
 0x1a3   : > { %v631_v8 = vpack.c.bf16 %v627_v3, %v626_v2  ;;  %v781_v13 = vpack.c.bf16 %v775_v7, %v774_v5  ;;  %1229 = vmatpush.bf16.msra.mxu3 %v4683_v59 }
 0x1a4   : > { %v5456_v17 = vld [vmem:[#allocation2 + $0xd4] sm:$0xf0] }
 0x1a5   : > { %635 = vst [vmem:[#allocation2 + $0x38] sm:$0xff] %v631_v8  ;;  %v4675_v35 = vor.u32 %v5456_v17, %v4674_v15  ;;  %v5452_v47 = vld [vmem:[#allocation2 + $0xb4] sm:$0xf0]  ;;  %v4588_v8 = vld [vmem:[#allocation2 + $0x28] sm:$0xf0] }
 0x1a6   : > { %785 = vst [vmem:[#allocation2 + $0xa8] sm:$0xff] %v781_v13  ;;  %v5440_v20 = vld [vmem:[#allocation2 + $0x54] sm:$0xf0]  ;;  %v4612_v21 = vld [vmem:[#allocation2 + $0x58] sm:$0xf0]  ;;  %v4659_v54 = vor.u32 %v5452_v47, %v4658_v57 }
 0x1a7   : > { %v554_v22 = vpop.permute.xlu1 %553  ;;  %v4611_v23 = vor.u32 %v5440_v20, %v4610_v14  ;;  %1230 = vmatpush.bf16.msra.mxu3 %v4675_v35  ;;  %v4615_v4 = vor.u32 %v5439_v36, %v4612_v21  ;;  %v552_v24 = vpop.permute.xlu0 %551  ;;  %v4642_v15 = vld [vmem:[#allocation2 + $0x90] sm:$0xf]  ;;  %v5433_v35 = vld [vmem:[#allocation2 + $0x24] sm:$0xf]  ;;  %v5448_v36 = vld [vmem:[#allocation2 + $0x94] sm:$0xf0]  ;;  %v4587_v21 = vor.u32 %v5434_v56, %v4586_v18 }
 0x1a8   : > { %v561_v6 = vsel %vm557_vm7, %v546_v12, %v554_v22  ;;  %v565_v29 = vsel %vm557_vm7, %v554_v22, %v546_v12  ;;  %v560_v10 = vsel %vm557_vm7, %v6417_v61, %v552_v24  ;;  %v564_v11 = vsel %vm557_vm7, %v552_v24, %v6417_v61  ;;  %v550_v61 = vpop.permute.xlu2 %549  ;;  %v4543_v17 = vld [vmem:[%s8667_s9 + $0x10] sm:$0x3]  ;;  %v4634_v47 = vld [vmem:[#allocation2 + $0x80] sm:$0xf] }
 0x1a9   : > { %v578_v32 = vmul.f32 %v568_v62, %v565_v29  ;;  %v579_v39 = vmul.f32 %v6465_v63, %v561_v6  ;;  %1211 = vmatpush.bf16.msrb.mxu2 %v4611_v23  ;;  %1268 = vmatpush.bf16.msrb.mxu1 %v4615_v4  ;;  %v576_v40 = vmul.f32 %v568_v62, %v564_v11  ;;  %v6497_v29 = vperm.slane %v4543_v17, 1 }
 0x1aa   : > { %v577_v42 = vmul.f32 %v6465_v63, %v560_v10  ;;  %v4591_v22 = vor.u32 %v5433_v35, %v4588_v8  ;;  %v4643_v6 = vor.u32 %v5448_v36, %v4642_v15  ;;  %v4676_v15 = vld [vmem:[#allocation2 + $0xd8] sm:$0xf0] }
 0x1ab   : > { %v583_v48 = vpack.c.bf16 %v579_v39, %v578_v32  ;;  %1231 = vmatpush.bf16.msra.mxu3 %v4667_v26 }
 0x1ac   : > { %v582_v51 = vpack.c.bf16 %v577_v42, %v576_v40  ;;  %v5436_v52 = vld [vmem:[#allocation2 + $0x34] sm:$0xf0]  ;;  %v4596_v46 = vld [vmem:[#allocation2 + $0x38] sm:$0xf0]  ;;  %v5423_v40 = vld [vmem:[%s8661_s3 + $0x4] sm:$0xf] }
 0x1ad   : > { %587 = vst [vmem:[#allocation2 + $0x18] sm:$0xff] %v583_v48  ;;  %1212 = vmatpush.bf16.msrb.mxu2 %v4603_v50  ;;  %1269 = vmatpush.bf16.msrb.mxu1 %v4607_v53  ;;  %v4595_v58 = vor.u32 %v5436_v52, %v4594_v55  ;;  %v4599_v59 = vor.u32 %v5435_v25, %v4596_v46  ;;  %v5450_v33 = vld [vmem:[#allocation2 + $0xa4] sm:$0xf0]  ;;  %v4548_v42 = vld [vmem:[%s8661_s3 + $0xc] sm:$0xf0] }
 0x1ae   : > { %586 = vst [vmem:[#allocation2 + $0x10] sm:$0xff] %v582_v51  ;;  %v4651_v2 = vor.u32 %v5450_v33, %v4650_v34  ;;  %v4635_v53 = vor.u32 %v5446_v31, %v4634_v47  ;;  %v6511_v55 = vor.u32 %v5423_v40, %v4548_v42  ;;  %v4546_v51 = vld [vmem:[%s8661_s3] sm:$0xf]  ;;  %v5424_v46 = vld [vmem:[%s8661_s3 + $0x8] sm:$0xf0] }
 0x1af   : > { %v548_v60 = vpop.permute.xlu1 %547  ;;  %1232 = vmatpush.bf16.msra.mxu3 %v4659_v54  ;;  %v542_v0 = vpop.permute.xlu0 %541  ;;  %v5459_v34 = vld [vmem:[#allocation2 + $0xf4] sm:$0xf]  ;;  %v4660_v31 = vld [vmem:[#allocation2 + $0xb8] sm:$0xf0]  ;;  %v5427_v47 = vld [vmem:[%s8661_s3 + $0x20] sm:$0xf0] }
 0x1b0   : > { %v558_v3 = vsel %vm557_vm7, %v6419_v1, %v548_v60  ;;  %v562_v5 = vsel %vm557_vm7, %v548_v60, %v6419_v1  ;;  %v559_v7 = vsel %vm557_vm7, %v542_v0, %v550_v61  ;;  %v563_v12 = vsel %vm557_vm7, %v550_v61, %v542_v0  ;;  %v897_v10 = vpop.permute.xlu2 %896  ;;  %v4692_v61 = vld [vmem:[#allocation2 + $0xf8] sm:$0xf0] }
 0x1b1   : > { %v572_v13 = vmul.f32 %v568_v62, %v562_v5  ;;  %v573_v9 = vmul.f32 %v6465_v63, %v558_v3  ;;  %1213 = vmatpush.bf16.msrb.mxu2 %v4595_v58  ;;  %1270 = vmatpush.bf16.msrb.mxu1 %v4599_v59  ;;  %v574_v14 = vmul.f32 %v568_v62, %v563_v12  ;;  %v6495_v62 = vperm.slane %v4543_v17, 0  ;;  %v4684_v12 = vld [vmem:[#allocation2 + $0xe8] sm:$0xf0] }
 0x1b2   : > { %v575_v1 = vmul.f32 %v6465_v63, %v559_v7  ;;  %v4547_v3 = vor.u32 %v5424_v46, %v4546_v51  ;;  %v5449_v46 = vld [vmem:[#allocation2 + $0xa4] sm:$0xf] }
 0x1b3   : > { %v580_v20 = vpack.c.bf16 %v573_v9, %v572_v13  ;;  %1233 = vmatpush.bf16.msra.mxu3 %v4651_v2  ;;  %v4695_v2 = vor.u32 %v5459_v34, %v4692_v61  ;;  %v5457_v13 = vld [vmem:[#allocation2 + $0xe4] sm:$0xf]  ;;  %v5451_v61 = vld [vmem:[#allocation2 + $0xb4] sm:$0xf]  ;;  %v969_v34 = vld [vmem:[%s8662_s4 + $0x8] sm:$0xff] }
 0x1b4   : > { %v581_v23 = vpack.c.bf16 %v575_v1, %v574_v14  ;;  %v5432_v4 = vld [vmem:[#allocation2 + $0x14] sm:$0xf0]  ;;  %v4580_v24 = vld [vmem:[#allocation2 + $0x18] sm:$0xf0]  ;;  %v4687_v14 = vor.u32 %v5457_v13, %v4684_v12  ;;  %v5455_v1 = vld [vmem:[#allocation2 + $0xd4] sm:$0xf]  ;;  %v4663_v51 = vor.u32 %v5451_v61, %v4660_v31 }
 0x1b5   : > { %584 = vst [vmem:[#allocation2] sm:$0xff] %v580_v20  ;;  %1214 = vmatpush.bf16.msrb.mxu2 %v4587_v21  ;;  %1271 = vmatpush.bf16.msrb.mxu1 %v4591_v22  ;;  %v4578_v26 = vld [vmem:[#allocation2 + $0x10] sm:$0xf]  ;;  %v5431_v63 = vld [vmem:[#allocation2 + $0x14] sm:$0xf]  ;;  %v4679_v36 = vor.u32 %v5455_v1, %v4676_v15 }
 0x1b6   : > { %585 = vst [vmem:[#allocation2 + $0x8] sm:$0xff] %v581_v23  ;;  %v4579_v11 = vor.u32 %v5432_v4, %v4578_v26  ;;  %v4583_v30 = vor.u32 %v5431_v63, %v4580_v24  ;;  %v5426_v20 = vld [vmem:[%s8661_s3 + $0x1c] sm:$0xf]  ;;  %v4560_v21 = vld [vmem:[%s8661_s3 + $0x24] sm:$0xf0] }
 0x1b7   : > { %v885_v32 = vpop.permute.xlu1 %884  ;;  %1234 = vmatpush.bf16.msra.mxu3 %v4643_v6  ;;  %v889_v39 = vpop.permute.xlu0 %888  ;;  %v4668_v26 = vld [vmem:[#allocation2 + $0xc8] sm:$0xf0]  ;;  %v4563_v40 = vor.u32 %v5426_v20, %v4560_v21  ;;  %v4566_v15 = vld [vmem:[%s8661_s3 + $0x20] sm:$0xf] }
 0x1b8   : > { %v903_v44 = vsel %vm900_vm8, %v889_v39, %v897_v10  ;;  %v907_v45 = vsel %vm900_vm8, %v897_v10, %v889_v39  ;;  %v887_v17 = vpop.permute.xlu2 %886  ;;  %v4558_v39 = vld [vmem:[%s8661_s3 + $0x18] sm:$0xf]  ;;  %v4636_v13 = vld [vmem:[#allocation2 + $0x88] sm:$0xf0] }
 0x1b9   : > { %1215 = vmatpush.bf16.msrb.mxu2 %v4579_v11  ;;  %1272 = vmatpush.bf16.msrb.mxu1 %v4583_v30  ;;  %v920_v48 = vmul.f32 %v6495_v62, %v903_v44  ;;  %v921_v50 = vmul.f32 %v6497_v29, %v907_v45  ;;  %v5453_v30 = vld [vmem:[#allocation2 + $0xc4] sm:$0xf] }
 0x1bb   : > { %v926_v57 = vpack.c.bf16 %v921_v50, %v920_v48  ;;  %1235 = vmatpush.bf16.msra.mxu3 %v4635_v53 }
 0x1bc   : > { %v4570_v52 = vld [vmem:[#allocation2] sm:$0xf]  ;;  %v5429_v25 = vld [vmem:[#allocation2 + $0x4] sm:$0xf] }
 0x1bd   : > { %930 = vst [vmem:[#allocation2 + $0x110] sm:$0xff] %v926_v57  ;;  %v5430_v58 = vld [vmem:[#allocation2 + $0x4] sm:$0xf0]  ;;  %v4572_v54 = vld [vmem:[#allocation2 + $0x8] sm:$0xf0] }
 0x1be   : > { %v4571_v59 = vor.u32 %v5430_v58, %v4570_v52  ;;  %v4575_v33 = vor.u32 %v5429_v25, %v4572_v54  ;;  %1236 = vmatmul.bf16.vlgmr.msra.gmra.mxu3 %v6511_v55  ;;  %v4559_v52 = vor.u32 %v5427_v47, %v4558_v39  ;;  %v4652_v25 = vld [vmem:[#allocation2 + $0xa8] sm:$0xf0]  ;;  %v5447_v58 = vld [vmem:[#allocation2 + $0x94] sm:$0xf] }
 0x1bf   : > { %v891_v60 = vpop.permute.xlu1 %890  ;;  %v899_v0 = vpop.permute.xlu0 %898  ;;  %v4655_v54 = vor.u32 %v5449_v46, %v4652_v25 }
 0x1c0   : > { %1216 = vmatpush.bf16.msrb.mxu2 %v4571_v59  ;;  %1273 = vmatpush.bf16.msrb.mxu1 %v4575_v33  ;;  %v904_v5 = vsel %vm900_vm8, %v891_v60, %v899_v0  ;;  %v908_v7 = vsel %vm900_vm8, %v899_v0, %v891_v60  ;;  %v4644_v59 = vld [vmem:[#allocation2 + $0x98] sm:$0xf0]  ;;  %v4554_v33 = vld [vmem:[%s8661_s3 + $0x8] sm:$0xf] }
 0x1c1   : > { %v922_v56 = vmul.f32 %v6495_v62, %v904_v5  ;;  %v923_v8 = vmul.f32 %v6497_v29, %v908_v7 }
 0x1c3   : > { %v927_v9 = vpack.c.bf16 %v923_v8, %v922_v56  ;;  %1217 = vmatmul.bf16.vlgmr.msrb.gmra.mxu2 %v4547_v3  ;;  %1274 = vmatmul.bf16.vlgmr.msrb.gmra.mxu1 %v4547_v3  ;;  %v4647_v56 = vor.u32 %v5447_v58, %v4644_v59 }
 0x1c4   : > { %1285 = vmatpush.bf16.msra.mxu2 %v4695_v2  ;;  %v4706_v45 = vld [vmem:[#allocation2 + $0x110] sm:$0xf]  ;;  %v5463_v48 = vld [vmem:[#allocation2 + $0x114] sm:$0xf] }
 0x1c5   : > { %931 = vst [vmem:[#allocation2 + $0x118] sm:$0xff] %v927_v9  ;;  %v5425_v2 = vld [vmem:[%s8661_s3 + $0x10] sm:$0xf0]  ;;  %v5445_v9 = vld [vmem:[#allocation2 + $0x84] sm:$0xf] }
 0x1c6   : > { %v4555_v8 = vor.u32 %v5425_v2, %v4554_v33 }
 0x1c7   : > { %v895_v18 = vpop.permute.xlu1 %894  ;;  %v893_v35 = vpop.permute.xlu0 %892 }
 0x1c8   : > { %1286 = vmatpush.bf16.msra.mxu2 %v4687_v14  ;;  %v902_v22 = vsel %vm900_vm8, %v887_v17, %v895_v18  ;;  %v906_v23 = vsel %vm900_vm8, %v895_v18, %v887_v17  ;;  %v901_v4 = vsel %vm900_vm8, %v885_v32, %v893_v35  ;;  %v905_v24 = vsel %vm900_vm8, %v893_v35, %v885_v32  ;;  %v5428_v17 = vld [vmem:[%s8661_s3 + $0x28] sm:$0xf0] }
 0x1c9   : > { %v918_v6 = vmul.f32 %v6495_v62, %v902_v22  ;;  %v919_v63 = vmul.f32 %v6497_v29, %v906_v23  ;;  %v916_v10 = vmul.f32 %v6495_v62, %v901_v4  ;;  %v917_v11 = vmul.f32 %v6497_v29, %v905_v24  ;;  %v970_v62 = vld [vmem:[%s8662_s4 + $0x10] sm:$0xff] }
 0x1ca   : > { %v4671_v32 = vor.u32 %v5453_v30, %v4668_v26  ;;  %984 = vperm.xlu2 %5729, %v970_v62   ;;  %v4639_v14 = vor.u32 %v5445_v9, %v4636_v13  ;;  %v4567_v1 = vor.u32 %v5428_v17, %v4566_v15 }
 0x1cb   : > { %v925_v42 = vpack.c.bf16 %v919_v63, %v918_v6  ;;  %v924_v44 = vpack.c.bf16 %v917_v11, %v916_v10 }
 0x1cc   : > { %1287 = vmatpush.bf16.msra.mxu2 %v4679_v36  ;;  %v5464_v29 = vld [vmem:[#allocation2 + $0x114] sm:$0xf0]  ;;  %v4708_v50 = vld [vmem:[#allocation2 + $0x118] sm:$0xf0] }
 0x1cd   : > { %929 = vst [vmem:[#allocation2 + $0x108] sm:$0xff] %v925_v42  ;;  %v4707_v53 = vor.u32 %v5464_v29, %v4706_v45  ;;  %v4711_v57 = vor.u32 %v5463_v48, %v4708_v50 }
 0x1ce   : > { %928 = vst [vmem:[#allocation2 + $0x100] sm:$0xff] %v924_v44  ;;  %1241 = vmatmul.bf16.gmra.mxu3 %v4563_v40 }
 0x1cf   : > { %1253 = vmatpush.bf16.msra.mxu0 %v4707_v53  ;;  %1310 = vmatpush.bf16.msrb.mxu3 %v4711_v57 }
 0x1d0   : > { %1288 = vmatpush.bf16.msra.mxu2 %v4671_v32 }
 0x1d2   : > { %979 = vperm.xlu2 %5729, %v969_v34  }
 0x1d3   : > { %1222 = vmatmul.bf16.gmra.mxu2 %v4559_v52  ;;  %1279 = vmatmul.bf16.gmra.mxu1 %v4559_v52 }
 0x1d4   : > { %1289 = vmatpush.bf16.msra.mxu2 %v4663_v51  ;;  %v5462_v60 = vld [vmem:[#allocation2 + $0x104] sm:$0xf0]  ;;  %v4700_v0 = vld [vmem:[#allocation2 + $0x108] sm:$0xf0] }
 0x1d5   : > { %v4698_v3 = vld [vmem:[#allocation2 + $0x100] sm:$0xf]  ;;  %v5461_v5 = vld [vmem:[#allocation2 + $0x104] sm:$0xf] }
 0x1d6   : > { %v4699_v7 = vor.u32 %v5462_v60, %v4698_v3  ;;  %v4703_v12 = vor.u32 %v5461_v5, %v4700_v0 }
 0x1d8   : > { %1290 = vmatpush.bf16.msra.mxu2 %v4655_v54  ;;  %1254 = vmatpush.bf16.msra.mxu0 %v4699_v7 }
 0x1d9   : > { %1311 = vmatpush.bf16.msrb.mxu3 %v4703_v12  ;;  %v990_v12 = vpop.permute.xlu0 %989 }
 0x1db   : > { %4712 = vmatmul.msk.bf16.vlgmr.msra.gmra.mxu0 %vm1202_vm9, %v4555_v8 }
 0x1dc   : > { %1291 = vmatpush.bf16.msra.mxu2 %v4647_v56 }
 0x1de   : > { %4714 = vmatmul.msk.bf16.vlgmr.msrb.gmra.mxu3 %vm1202_vm9, %v4555_v8 }
 0x1e0   : > { %1292 = vmatpush.bf16.msra.mxu2 %v4639_v14 }
 0x1e3   : > { %1293 = vmatmul.bf16.vlgmr.msra.gmra.mxu2 %v6511_v55  ;;  %v975_v55 = vpop.permute.xlu1 %974 }
 0x1eb   : > { %4713 = vmatmul.msk.bf16.gmra.mxu0 %vm1202_vm9, %v4567_v1 }
 0x1ee   : > { %4715 = vmatmul.msk.bf16.gmra.mxu3 %vm1202_vm9, %v4567_v1 }
 0x1f3   : > { %1298 = vmatmul.bf16.gmra.mxu2 %v4563_v40 }
 0x224   : > { %v985_v23 = vpop.permute.xlu2 %984 }
 0x22c   : > { %v980_v30 = vpop.permute.xlu2 %979 }
 0x240   : > { %v1275_v11 = vpop.f32.mrf.mxu1 }
 0x241   : > { %v1237_v18 = vpop.f32.mrf.mxu3  ;;  %v1276_v44 = vadd.f32 %v1275_v11, %v975_v55 }
 0x246   : > { %v1218_v35 = vpop.f32.mrf.mxu2 }
 0x247   : > { %v1219_v22 = vadd.f32 %v1218_v35, %v975_v55 }
 0x248   : > { %v1277_v45 = vpop.f32.mrf.mxu1 }
 0x249   : > { %v1239_v36 = vpop.f32.mrf.mxu3  ;;  %v1238_v24 = vadd.f32 %v1237_v18, %v1219_v22  ;;  %v1278_v51 = vadd.f32 %v1277_v45, %v980_v30 }
 0x24e   : > { %v1220_v20 = vpop.f32.mrf.mxu2 }
 0x24f   : > { %v1221_v39 = vadd.f32 %v1220_v20, %v980_v30 }
 0x250   : > { %v1280_v46 = vpop.f32.mrf.mxu1 }
 0x251   : > { %v1242_v21 = vpop.f32.mrf.mxu3  ;;  %v1240_v32 = vadd.f32 %v1239_v36, %v1221_v39  ;;  %v1281_v60 = vadd.f32 %v1280_v46, %v985_v23 }
 0x256   : > { %v1223_v4 = vpop.f32.mrf.mxu2 }
 0x257   : > { %v1224_v58 = vadd.f32 %v1223_v4, %v985_v23 }
 0x258   : > { %v1256_v26 = vpop.f32.mrf.mxu0  ;;  %v1282_v13 = vpop.f32.mrf.mxu1 }
 0x259   : > { %v1257_v6 = vadd.f32 %v1256_v26, %v1238_v24  ;;  %v1244_v63 = vpop.f32.mrf.mxu3  ;;  %v1243_v0 = vadd.f32 %v1242_v21, %v1224_v58  ;;  %v1283_v17 = vadd.f32 %v1282_v13, %v990_v12 }
 0x25b   : > { %v6573_v10 = vmax.f32 %v1257_v6, 0.0 }
 0x25d   : > { %1577 = vrot.lane.b32.xlu1 %v6573_v10, %s5900_s7  ;;  %1623 = vrot.lane.b32.xlu0 %v6573_v10, %s5901_s19 }
 0x25e   : > { %1477 = vrot.lane.b32.xlu2 %v6573_v10, %s5902_s23  ;;  %v1225_v31 = vpop.f32.mrf.mxu2 }
 0x25f   : > { %v1226_v56 = vadd.f32 %v1225_v31, %v990_v12 }
 0x260   : > { %v1258_v42 = vpop.f32.mrf.mxu0 }
 0x261   : > { %v1313_v40 = vpop.f32.mrf.mxu3  ;;  %v1259_v62 = vadd.f32 %v1258_v42, %v1240_v32  ;;  %v1245_v1 = vadd.f32 %v1244_v63, %v1226_v56 }
 0x263   : > { %v6587_v53 = vmax.f32 %v1259_v62, 0.0 }
 0x265   : > { %1385 = vrot.lane.b32.xlu1 %v6573_v10, %s5903_s26  ;;  %1431 = vrot.lane.b32.xlu0 %v6573_v10, %s5904_s28 }
 0x266   : > { %1531 = vrot.lane.b32.xlu2 %v6573_v10, %s5905_s29  ;;  %v1294_v47 = vpop.f32.mrf.mxu2 }
 0x267   : > { %v1295_v29 = vadd.f32 %v1294_v47, %v1276_v44 }
 0x268   : > { %v1261_v59 = vpop.f32.mrf.mxu0 }
 0x269   : > { %v1314_v48 = vadd.f32 %v1313_v40, %v1295_v29  ;;  %v1315_v50 = vpop.f32.mrf.mxu3  ;;  %v1262_v5 = vadd.f32 %v1261_v59, %v1243_v0  ;;  %v4717_v0 = vld [vmem:[%s8667_s9 + $0x4] sm:$0x3] }
 0x26b   : > { %v6589_v57 = vmax.f32 %v1314_v48, 0.0  ;;  %v6609_v9 = vmax.f32 %v1262_v5, 0.0  ;;  %v6775_v5 = vperm.slane %v4717_v0, 1 }
 0x26d   : > { %v1523_v61 = vpack.c.bf16 %v6589_v57, %v6573_v10  ;;  %1625 = vrot.lane.b32.xlu1 %v6587_v53, %s5901_s19  ;;  %1479 = vrot.lane.b32.xlu0 %v6587_v53, %s5902_s23 }
 0x26e   : > { %1579 = vrot.lane.b32.xlu2 %v6587_v53, %s5900_s7  ;;  %v1296_v52 = vpop.f32.mrf.mxu2 }
 0x26f   : > { %1527 = vst [vmem:[#allocation2 + $0x80] sm:$0xff] %v1523_v61  ;;  %v1297_v25 = vadd.f32 %v1296_v52, %v1278_v51  ;;  %v4721_v61 = vld [vmem:[%s8667_s9 + $0xe] sm:$0x3] }
 0x270   : > { %v1263_v15 = vpop.f32.mrf.mxu0  ;;  %v6750_v51 = vperm.slane %v4721_v61, 0  ;;  %v6752_v52 = vperm.slane %v4721_v61, 1 }
 0x271   : > { %v1316_v54 = vadd.f32 %v1315_v50, %v1297_v25  ;;  %v1318_v34 = vpop.f32.mrf.mxu3  ;;  %v1264_v20 = vadd.f32 %v1263_v15, %v1245_v1 }
 0x273   : > { %v6599_v33 = vmax.f32 %v1316_v54, 0.0  ;;  %v6621_v22 = vmax.f32 %v1264_v20, 0.0 }
 0x275   : > { %v1524_v2 = vpack.c.bf16 %v6599_v33, %v6587_v53  ;;  %1433 = vrot.lane.b32.xlu1 %v6587_v53, %s5904_s28  ;;  %1533 = vrot.lane.b32.xlu0 %v6587_v53, %s5905_s29 }
 0x276   : > { %1387 = vrot.lane.b32.xlu2 %v6587_v53, %s5903_s26  ;;  %v1299_v3 = vpop.f32.mrf.mxu2 }
 0x277   : > { %1528 = vst [vmem:[#allocation2 + $0x88] sm:$0xff] %v1524_v2  ;;  %v1300_v7 = vadd.f32 %v1299_v3, %v1281_v60  ;;  %v6773_v3 = vperm.slane %v4717_v0, 0 }
 0x279   : > { %v1319_v8 = vadd.f32 %v1318_v34, %v1300_v7  ;;  %v1320_v36 = vpop.f32.mrf.mxu3 }
 0x27b   : > { %v6611_v14 = vmax.f32 %v1319_v8, 0.0 }
 0x27d   : > { %v1525_v18 = vpack.c.bf16 %v6611_v14, %v6609_v9  ;;  %1627 = vrot.lane.b32.xlu1 %v6609_v9, %s5901_s19  ;;  %1481 = vrot.lane.b32.xlu0 %v6609_v9, %s5902_s23 }
 0x27e   : > { %1581 = vrot.lane.b32.xlu2 %v6609_v9, %s5900_s7  ;;  %v1301_v35 = vpop.f32.mrf.mxu2 }
 0x27f   : > { %1529 = vst [vmem:[#allocation2 + $0x90] sm:$0xff] %v1525_v18  ;;  %v1302_v21 = vadd.f32 %v1301_v35, %v1283_v17 }
 0x281   : > { %v1321_v55 = vadd.f32 %v1320_v36, %v1302_v21 }
 0x283   : > { %v6623_v23 = vmax.f32 %v1321_v55, 0.0 }
 0x285   : > { %v1526_v4 = vpack.c.bf16 %v6623_v23, %v6621_v22  ;;  %1435 = vrot.lane.b32.xlu1 %v6609_v9, %s5904_s28  ;;  %1535 = vrot.lane.b32.xlu0 %v6609_v9, %s5905_s29 }
 0x286   : > { %1389 = vrot.lane.b32.xlu2 %v6609_v9, %s5903_s26 }
 0x287   : > { %1530 = vst [vmem:[#allocation2 + $0x98] sm:$0xff] %v1526_v4  ;;  %v4720_v4 = vld [vmem:[%s8667_s9 + $0xc] sm:$0x3] }
 0x288   : > { %v6826_v61 = vperm.slane %v4720_v4, 1 }
 0x28d   : > { %1483 = vrot.lane.b32.xlu1 %v6621_v22, %s5902_s23  ;;  %1583 = vrot.lane.b32.xlu0 %v6621_v22, %s5900_s7 }
 0x28e   : > { %1629 = vrot.lane.b32.xlu2 %v6621_v22, %s5901_s19 }
 0x295   : > { %1537 = vrot.lane.b32.xlu1 %v6621_v22, %s5905_s29  ;;  %1391 = vrot.lane.b32.xlu0 %v6621_v22, %s5903_s26 }
 0x296   : > { %1437 = vrot.lane.b32.xlu2 %v6621_v22, %s5904_s28 }
 0x29d   : > { %1585 = vrot.lane.b32.xlu0 %v6589_v57, %s5900_s7  ;;  %1485 = vrot.lane.b32.xlu1 %v6589_v57, %s5902_s23 }
 0x29e   : > { %1631 = vrot.lane.b32.xlu2 %v6589_v57, %s5901_s19 }
 0x2a5   : > { %1393 = vrot.lane.b32.xlu0 %v6589_v57, %s5903_s26  ;;  %1539 = vrot.lane.b32.xlu1 %v6589_v57, %s5905_s29 }
 0x2a6   : > { %1439 = vrot.lane.b32.xlu2 %v6589_v57, %s5904_s28 }
 0x2ad   : > { %1633 = vrot.lane.b32.xlu0 %v6599_v33, %s5901_s19  ;;  %1587 = vrot.lane.b32.xlu1 %v6599_v33, %s5900_s7 }
 0x2ae   : > { %1487 = vrot.lane.b32.xlu2 %v6599_v33, %s5902_s23 }
 0x2b5   : > { %1441 = vrot.lane.b32.xlu0 %v6599_v33, %s5904_s28  ;;  %1395 = vrot.lane.b32.xlu1 %v6599_v33, %s5903_s26 }
 0x2b6   : > { %1541 = vrot.lane.b32.xlu2 %v6599_v33, %s5905_s29 }
 0x2b8   : > { %v6669_v24 = vpop.permute.xlu2 %1477 }
 0x2bd   : > { %1635 = vrot.lane.b32.xlu0 %v6611_v14, %s5901_s19  ;;  %1589 = vrot.lane.b32.xlu1 %v6611_v14, %s5900_s7 }
 0x2be   : > { %1489 = vrot.lane.b32.xlu2 %v6611_v14, %s5902_s23 }
 0x2c0   : > { %v6677_v26 = vpop.permute.xlu2 %1531 }
 0x2c5   : > { %1443 = vrot.lane.b32.xlu0 %v6611_v14, %s5904_s28  ;;  %1397 = vrot.lane.b32.xlu1 %v6611_v14, %s5903_s26 }
 0x2c6   : > { %1543 = vrot.lane.b32.xlu2 %v6611_v14, %s5905_s29 }
 0x2c8   : > { %v6685_v6 = vpop.permute.xlu2 %1579 }
 0x2cd   : > { %1491 = vrot.lane.b32.xlu0 %v6623_v23, %s5902_s23  ;;  %1637 = vrot.lane.b32.xlu1 %v6623_v23, %s5901_s19 }
 0x2ce   : > { %1591 = vrot.lane.b32.xlu2 %v6623_v23, %s5900_s7 }
 0x2cf   : > { %v6693_v63 = vpop.permute.xlu1 %1577  ;;  %v1624_v11 = vpop.permute.xlu0 %1623 }
 0x2d0   : > { %v6695_v30 = vpop.permute.xlu2 %1387 }
 0x2d5   : > { %1343 = vrot.lane.b32.xlu0 %v6609_v9, %s5906_s13  ;;  %1445 = vrot.lane.b32.xlu1 %v6623_v23, %s5904_s28 }
 0x2d6   : > { %1399 = vrot.lane.b32.xlu2 %v6623_v23, %s5903_s26 }
 0x2d7   : > { %v6703_v31 = vpop.permute.xlu1 %1385  ;;  %v1432_v39 = vpop.permute.xlu0 %1431 }
 0x2d8   : > { %v6705_v40 = vpop.permute.xlu2 %1581 }
 0x2dd   : > { %1545 = vrot.lane.b32.xlu0 %v6623_v23, %s5905_s29  ;;  %1345 = vrot.lane.b32.xlu1 %v6621_v22, %s5906_s13 }
 0x2de   : > { %1351 = vrot.lane.b32.xlu2 %v6611_v14, %s5906_s13 }
 0x2df   : > { %v6713_v42 = vpop.permute.xlu1 %1625  ;;  %v1480_v44 = vpop.permute.xlu0 %1479 }
 0x2e0   : > { %v6715_v32 = vpop.permute.xlu2 %1389 }
 0x2e5   : > { %1353 = vrot.lane.b32.xlu0 %v6623_v23, %s5906_s13  ;;  %1339 = vrot.lane.b32.xlu1 %v6573_v10, %s5906_s13 }
 0x2e6   : > { %1341 = vrot.lane.b32.xlu2 %v6587_v53, %s5906_s13 }
 0x2e7   : > { %v6723_v45 = vpop.permute.xlu1 %1433  ;;  %v6725_v47 = vpop.permute.xlu0 %1533 }
 0x2e8   : > { %v6727_v62 = vpop.permute.xlu2 %1629 }
 0x2ed   : > { %1347 = vrot.lane.b32.xlu0 %v6589_v57, %s5906_s13  ;;  %1349 = vrot.lane.b32.xlu1 %v6599_v33, %s5906_s13 }
 0x2ee   : > { %1673 = vrot.lane.b32.xlu2 %v6609_v9, %s5907_s30  ;;  %v1754_v9 = vld [vmem:[%s8664_s6 + $0x18] sm:$0xff] }
 0x2ef   : > { %v6735_v29 = vpop.permute.xlu1 %1627  ;;  %v6737_v48 = vpop.permute.xlu0 %1481 }
 0x2f0   : > { %v6739_v50 = vpop.permute.xlu2 %1437 }
 0x2f5   : > { %1675 = vrot.lane.b32.xlu0 %v6621_v22, %s5907_s30  ;;  %1681 = vrot.lane.b32.xlu1 %v6611_v14, %s5907_s30  ;;  %v4718_v14 = vld [vmem:[%s8667_s9 + $0x6] sm:$0x3] }
 0x2f6   : > { %1683 = vrot.lane.b32.xlu2 %v6623_v23, %s5907_s30  ;;  %v6798_v17 = vperm.slane %v4718_v14, 0  ;;  %v6800_v1 = vperm.slane %v4718_v14, 1  ;;  %v1751_v22 = vld [vmem:[%s8664_s6] sm:$0xff]  ;;  %v1752_v23 = vld [vmem:[%s8664_s6 + $0x8] sm:$0xff] }
 0x2f7   : > { %v6754_v25 = vpop.permute.xlu1 %1435  ;;  %v6756_v46 = vpop.permute.xlu0 %1535 }
 0x2f8   : > { %v1632_v58 = vpop.permute.xlu2 %1631 }
 0x2f9   : > { %v1639_v54 = vsel %vm852_vm3, %v1624_v11, %v1632_v58  ;;  %v1643_v59 = vsel %vm852_vm3, %v1632_v58, %v1624_v11  ;;  %v4719_v11 = vld [vmem:[%s8667_s9 + $0xa] sm:$0x3] }
 0x2fa   : > { %v1653_v34 = vmul.f32 %v6750_v51, %v1639_v54  ;;  %v1654_v60 = vmul.f32 %v6752_v52, %v1643_v59  ;;  %v6828_v58 = vperm.slane %v4719_v11, 0  ;;  %v6830_v54 = vperm.slane %v4719_v11, 1 }
 0x2fc   : > { %v1661_v2 = vpack.c.bf16 %v1654_v60, %v1653_v34 }
 0x2fd   : > { %1669 = vrot.lane.b32.xlu0 %v6573_v10, %s5907_s30  ;;  %1671 = vrot.lane.b32.xlu1 %v6587_v53, %s5907_s30 }
 0x2fe   : > { %1665 = vst [vmem:[#allocation2 + $0xe0] sm:$0xff] %v1661_v2  ;;  %1677 = vrot.lane.b32.xlu2 %v6589_v57, %s5907_s30  ;;  %v1753_v57 = vld [vmem:[%s8664_s6 + $0x10] sm:$0xff] }
 0x2ff   : > { %v6777_v7 = vpop.permute.xlu1 %1483  ;;  %v6779_v12 = vpop.permute.xlu0 %1583 }
 0x300   : > { %v1440_v56 = vpop.permute.xlu2 %1439 }
 0x301   : > { %v1447_v8 = vsel %vm652_vm5, %v1432_v39, %v1440_v56  ;;  %v1451_v10 = vsel %vm652_vm5, %v1440_v56, %v1432_v39 }
 0x302   : > { %v1461_v53 = vmul.f32 %v6773_v3, %v1451_v10  ;;  %v1462_v13 = vmul.f32 %v6775_v5, %v1447_v8 }
 0x304   : > { %v1469_v15 = vpack.c.bf16 %v1462_v13, %v1461_v53 }
 0x305   : > { %1679 = vrot.lane.b32.xlu0 %v6599_v33, %s5907_s30  ;;  %1767 = vperm.xlu1 %5728, %v1753_v57  }
 0x306   : > { %1473 = vst [vmem:[#allocation2 + $0x40] sm:$0xff] %v1469_v15  ;;  %1772 = vperm.xlu2 %5729, %v1754_v9   ;;  %v4716_v15 = vld [vmem:[%s8667_s9 + $0x2] sm:$0x3] }
 0x307   : > { %v6802_v18 = vpop.permute.xlu1 %1537  ;;  %v6804_v35 = vpop.permute.xlu0 %1391 }
 0x308   : > { %v1488_v36 = vpop.permute.xlu2 %1487 }
 0x309   : > { %v1494_v20 = vsel %vm700_vm4, %v1480_v44, %v1488_v36  ;;  %v1498_v21 = vsel %vm700_vm4, %v1488_v36, %v1480_v44  ;;  %v6824_v44 = vperm.slane %v4720_v4, 0 }
 0x30a   : > { %v1509_v33 = vmul.f32 %v6798_v17, %v1498_v21  ;;  %v1510_v55 = vmul.f32 %v6800_v1, %v1494_v20 }
 0x30c   : > { %v1516_v39 = vpack.c.bf16 %v1510_v55, %v1509_v33  ;;  %v6859_v33 = vperm.slane %v4716_v15, 0  ;;  %v6861_v55 = vperm.slane %v4716_v15, 1 }
 0x30d   : > { %1757 = vperm.xlu0 %5727, %v1751_v22   ;;  %1762 = vperm.xlu1 %5728, %v1752_v23  }
 0x30e   : > { %1520 = vst [vmem:[#allocation2 + $0x68] sm:$0xff] %v1516_v39 }
 0x30f   : > { %v1586_v59 = vpop.permute.xlu0 %1585  ;;  %v1486_v34 = vpop.permute.xlu1 %1485 }
 0x310   : > { %v1593_v60 = vsel %vm804_vm1, %v6693_v63, %v1586_v59  ;;  %v1597_v0 = vsel %vm804_vm1, %v1586_v59, %v6693_v63  ;;  %v1542_v2 = vpop.permute.xlu2 %1541  ;;  %v1493_v56 = vsel %vm700_vm4, %v6669_v24, %v1486_v34  ;;  %v1497_v8 = vsel %vm700_vm4, %v1486_v34, %v6669_v24 }
 0x311   : > { %v1607_v10 = vmul.f32 %v6824_v44, %v1593_v60  ;;  %v1608_v53 = vmul.f32 %v6826_v61, %v1597_v0  ;;  %v1548_v13 = vsel %vm756_vm6, %v6725_v47, %v1542_v2  ;;  %v1552_v63 = vsel %vm756_vm6, %v1542_v2, %v6725_v47 }
 0x312   : > { %v1563_v57 = vmul.f32 %v6828_v58, %v1548_v13  ;;  %v1564_v9 = vmul.f32 %v6830_v54, %v1552_v63  ;;  %v1507_v14 = vmul.f32 %v6798_v17, %v1497_v8  ;;  %v1508_v24 = vmul.f32 %v6800_v1, %v1493_v56 }
 0x313   : > { %v1615_v36 = vpack.c.bf16 %v1608_v53, %v1607_v10 }
 0x314   : > { %v1570_v20 = vpack.c.bf16 %v1564_v9, %v1563_v57  ;;  %v1515_v21 = vpack.c.bf16 %v1508_v24, %v1507_v14 }
 0x315   : > { %1619 = vst [vmem:[#allocation2 + $0xc0] sm:$0xff] %v1615_v36 }
 0x316   : > { %1574 = vst [vmem:[#allocation2 + $0xa8] sm:$0xff] %v1570_v20 }
 0x317   : > { %1519 = vst [vmem:[#allocation2 + $0x60] sm:$0xff] %v1515_v21  ;;  %v1394_v47 = vpop.permute.xlu0 %1393  ;;  %v1540_v22 = vpop.permute.xlu1 %1539 }
 0x318   : > { %v1401_v23 = vsel %vm604_vm2, %v6703_v31, %v1394_v47  ;;  %v1405_v4 = vsel %vm604_vm2, %v1394_v47, %v6703_v31  ;;  %v1490_v11 = vpop.permute.xlu2 %1489  ;;  %v1547_v39 = vsel %vm756_vm6, %v6677_v26, %v1540_v22  ;;  %v1551_v59 = vsel %vm756_vm6, %v1540_v22, %v6677_v26 }
 0x319   : > { %v1415_v34 = vmul.f32 %v6859_v33, %v1405_v4  ;;  %v1416_v60 = vmul.f32 %v6861_v55, %v1401_v23  ;;  %v1495_v0 = vsel %vm700_vm4, %v6737_v48, %v1490_v11  ;;  %v1499_v31 = vsel %vm700_vm4, %v1490_v11, %v6737_v48 }
 0x31a   : > { %v1511_v2 = vmul.f32 %v6798_v17, %v1499_v31  ;;  %v1512_v56 = vmul.f32 %v6800_v1, %v1495_v0  ;;  %v1561_v8 = vmul.f32 %v6828_v58, %v1547_v39  ;;  %v1562_v26 = vmul.f32 %v6830_v54, %v1551_v59 }
 0x31b   : > { %v1423_v10 = vpack.c.bf16 %v1416_v60, %v1415_v34 }
 0x31c   : > { %v1517_v53 = vpack.c.bf16 %v1512_v56, %v1511_v2  ;;  %v1569_v13 = vpack.c.bf16 %v1562_v26, %v1561_v8 }
 0x31d   : > { %1427 = vst [vmem:[#allocation2 + $0x20] sm:$0xff] %v1423_v10 }
 0x31e   : > { %1521 = vst [vmem:[#allocation2 + $0x70] sm:$0xff] %v1517_v53 }
 0x31f   : > { %1573 = vst [vmem:[#allocation2 + $0xa0] sm:$0xff] %v1569_v13  ;;  %v1634_v63 = vpop.permute.xlu0 %1633  ;;  %v1588_v57 = vpop.permute.xlu1 %1587 }
 0x320   : > { %v1640_v48 = vsel %vm852_vm3, %v6713_v42, %v1634_v63  ;;  %v1644_v9 = vsel %vm852_vm3, %v1634_v63, %v6713_v42  ;;  %v1544_v14 = vpop.permute.xlu2 %1543  ;;  %v1594_v24 = vsel %vm804_vm1, %v6685_v6, %v1588_v57  ;;  %v1598_v15 = vsel %vm804_vm1, %v1588_v57, %v6685_v6 }
 0x321   : > { %v1655_v36 = vmul.f32 %v6750_v51, %v1640_v48  ;;  %v1656_v20 = vmul.f32 %v6752_v52, %v1644_v9  ;;  %v1549_v21 = vsel %vm756_vm6, %v6756_v46, %v1544_v14  ;;  %v1553_v42 = vsel %vm756_vm6, %v1544_v14, %v6756_v46 }
 0x322   : > { %v1565_v47 = vmul.f32 %v6828_v58, %v1549_v21  ;;  %v1566_v22 = vmul.f32 %v6830_v54, %v1553_v42  ;;  %v1609_v23 = vmul.f32 %v6824_v44, %v1594_v24  ;;  %v1610_v6 = vmul.f32 %v6826_v61, %v1598_v15 }
 0x323   : > { %v1662_v4 = vpack.c.bf16 %v1656_v20, %v1655_v36 }
 0x324   : > { %v1571_v11 = vpack.c.bf16 %v1566_v22, %v1565_v47  ;;  %v1616_v39 = vpack.c.bf16 %v1610_v6, %v1609_v23 }
 0x325   : > { %1666 = vst [vmem:[#allocation2 + $0xe8] sm:$0xff] %v1662_v4 }
 0x326   : > { %1575 = vst [vmem:[#allocation2 + $0xb0] sm:$0xff] %v1571_v11 }
 0x327   : > { %1620 = vst [vmem:[#allocation2 + $0xc8] sm:$0xff] %v1616_v39  ;;  %v1442_v59 = vpop.permute.xlu0 %1441  ;;  %v1396_v34 = vpop.permute.xlu1 %1395 }
 0x328   : > { %v1448_v46 = vsel %vm652_vm5, %v6723_v45, %v1442_v59  ;;  %v1452_v60 = vsel %vm652_vm5, %v1442_v59, %v6723_v45  ;;  %v1592_v0 = vpop.permute.xlu2 %1591  ;;  %v1402_v31 = vsel %vm604_vm2, %v6695_v30, %v1396_v34  ;;  %v1406_v2 = vsel %vm604_vm2, %v1396_v34, %v6695_v30 }
 0x329   : > { %v1463_v56 = vmul.f32 %v6773_v3, %v1452_v60  ;;  %v1464_v8 = vmul.f32 %v6775_v5, %v1448_v46  ;;  %v1596_v26 = vsel %vm804_vm1, %v6779_v12, %v1592_v0  ;;  %v1600_v45 = vsel %vm804_vm1, %v1592_v0, %v6779_v12 }
 0x32a   : > { %v1613_v10 = vmul.f32 %v6824_v44, %v1596_v26  ;;  %v1614_v53 = vmul.f32 %v6826_v61, %v1600_v45  ;;  %v1417_v13 = vmul.f32 %v6859_v33, %v1406_v2  ;;  %v1418_v30 = vmul.f32 %v6861_v55, %v1402_v31 }
 0x32b   : > { %v1470_v63 = vpack.c.bf16 %v1464_v8, %v1463_v56 }
 0x32c   : > { %v1618_v57 = vpack.c.bf16 %v1614_v53, %v1613_v10  ;;  %v1424_v48 = vpack.c.bf16 %v1418_v30, %v1417_v13 }
 0x32d   : > { %1474 = vst [vmem:[#allocation2 + $0x48] sm:$0xff] %v1470_v63 }
 0x32e   : > { %1622 = vst [vmem:[#allocation2 + $0xd8] sm:$0xff] %v1618_v57 }
 0x32f   : > { %1428 = vst [vmem:[#allocation2 + $0x28] sm:$0xff] %v1424_v48  ;;  %v1636_v9 = vpop.permute.xlu0 %1635  ;;  %v1590_v14 = vpop.permute.xlu1 %1589 }
 0x330   : > { %v1641_v12 = vsel %vm852_vm3, %v6735_v29, %v1636_v9  ;;  %v1645_v24 = vsel %vm852_vm3, %v1636_v9, %v6735_v29  ;;  %v1400_v15 = vpop.permute.xlu2 %1399  ;;  %v1595_v36 = vsel %vm804_vm1, %v6705_v40, %v1590_v14  ;;  %v1599_v20 = vsel %vm804_vm1, %v1590_v14, %v6705_v40 }
 0x331   : > { %v1657_v21 = vmul.f32 %v6750_v51, %v1641_v12  ;;  %v1658_v42 = vmul.f32 %v6752_v52, %v1645_v24  ;;  %v1404_v47 = vsel %vm604_vm2, %v6804_v35, %v1400_v15  ;;  %v1408_v29 = vsel %vm604_vm2, %v1400_v15, %v6804_v35 }
 0x332   : > { %v1421_v22 = vmul.f32 %v6859_v33, %v1408_v29  ;;  %v1422_v23 = vmul.f32 %v6861_v55, %v1404_v47  ;;  %v1611_v6 = vmul.f32 %v6824_v44, %v1595_v36  ;;  %v1612_v40 = vmul.f32 %v6826_v61, %v1599_v20  ;;  %v4805_v47 = vld [vmem:[#allocation2 + $0x70] sm:$0xf] }
 0x333   : > { %v1663_v4 = vpack.c.bf16 %v1658_v42, %v1657_v21 }
 0x334   : > { %v1426_v11 = vpack.c.bf16 %v1422_v23, %v1421_v22  ;;  %v1617_v39 = vpack.c.bf16 %v1612_v40, %v1611_v6  ;;  %v5485_v22 = vld [vmem:[#allocation2 + $0x74] sm:$0xf] }
 0x335   : > { %1667 = vst [vmem:[#allocation2 + $0xf0] sm:$0xff] %v1663_v4 }
 0x336   : > { %1430 = vst [vmem:[#allocation2 + $0x38] sm:$0xff] %v1426_v11 }
 0x337   : > { %1621 = vst [vmem:[#allocation2 + $0xd0] sm:$0xff] %v1617_v39  ;;  %v1444_v59 = vpop.permute.xlu0 %1443  ;;  %v1398_v34 = vpop.permute.xlu1 %1397  ;;  %v4797_v39 = vld [vmem:[#allocation2 + $0x60] sm:$0xf] }
 0x338   : > { %v1449_v35 = vsel %vm652_vm5, %v6754_v25, %v1444_v59  ;;  %v1453_v46 = vsel %vm652_vm5, %v1444_v59, %v6754_v25  ;;  %v1403_v44 = vsel %vm604_vm2, %v6715_v32, %v1398_v34  ;;  %v1407_v61 = vsel %vm604_vm2, %v1398_v34, %v6715_v32  ;;  %v5483_v59 = vld [vmem:[#allocation2 + $0x64] sm:$0xf] }
 0x339   : > { %v1465_v60 = vmul.f32 %v6773_v3, %v1453_v46  ;;  %v1466_v0 = vmul.f32 %v6775_v5, %v1449_v35  ;;  %v1419_v31 = vmul.f32 %v6859_v33, %v1407_v61  ;;  %v1420_v2 = vmul.f32 %v6861_v55, %v1403_v44  ;;  %v5484_v44 = vld [vmem:[#allocation2 + $0x64] sm:$0xf0]  ;;  %v4799_v61 = vld [vmem:[#allocation2 + $0x68] sm:$0xf0] }
 0x33b   : > { %v1471_v56 = vpack.c.bf16 %v1466_v0, %v1465_v60  ;;  %v1425_v8 = vpack.c.bf16 %v1420_v2, %v1419_v31  ;;  %v4798_v2 = vor.u32 %v5484_v44, %v4797_v39 }
 0x33c   : > { %v4869_v4 = vld [vmem:[#allocation2 + $0xf0] sm:$0xf] }
 0x33d   : > { %1475 = vst [vmem:[#allocation2 + $0x50] sm:$0xff] %v1471_v56  ;;  %v4861_v56 = vld [vmem:[#allocation2 + $0xe0] sm:$0xf] }
 0x33e   : > { %1429 = vst [vmem:[#allocation2 + $0x30] sm:$0xff] %v1425_v8  ;;  %v4802_v8 = vor.u32 %v5483_v59, %v4799_v61  ;;  %v5476_v59 = vld [vmem:[#allocation2 + $0x24] sm:$0xf0] }
 0x33f   : > { %v1492_v25 = vpop.permute.xlu0 %1491  ;;  %v1638_v26 = vpop.permute.xlu1 %1637 }
 0x340   : > { %v1496_v45 = vsel %vm700_vm4, %v6777_v7, %v1492_v25  ;;  %v1500_v32 = vsel %vm700_vm4, %v1492_v25, %v6777_v7  ;;  %v1642_v33 = vsel %vm852_vm3, %v6727_v62, %v1638_v26  ;;  %v1646_v55 = vsel %vm852_vm3, %v1638_v26, %v6727_v62  ;;  %v1363_v7 = vld [vmem:[%s8667_s9] sm:$0x3]  ;;  %v1352_v62 = vpop.permute.xlu2 %1351 }
 0x341   : > { %v1513_v10 = vmul.f32 %v6798_v17, %v1500_v32  ;;  %v1514_v53 = vmul.f32 %v6800_v1, %v1496_v45  ;;  %v1659_v13 = vmul.f32 %v6750_v51, %v1642_v33  ;;  %v1660_v30 = vmul.f32 %v6752_v52, %v1646_v55  ;;  %v4853_v45 = vld [vmem:[#allocation2 + $0xd0] sm:$0xf] }
 0x342   : > { %v6994_v48 = vperm.slane %v1363_v7, 0  ;;  %v6996_v9 = vperm.slane %v1363_v7, 1  ;;  %v5480_v7 = vld [vmem:[#allocation2 + $0x44] sm:$0xf0] }
 0x343   : > { %v1518_v63 = vpack.c.bf16 %v1514_v53, %v1513_v10  ;;  %v1664_v57 = vpack.c.bf16 %v1660_v30, %v1659_v13 }
 0x344   : > { %v4789_v32 = vld [vmem:[#allocation2 + $0x50] sm:$0xf]  ;;  %v5481_v33 = vld [vmem:[#allocation2 + $0x54] sm:$0xf] }
 0x345   : > { %1522 = vst [vmem:[#allocation2 + $0x78] sm:$0xff] %v1518_v63  ;;  %v5496_v63 = vld [vmem:[#allocation2 + $0xc4] sm:$0xf0] }
 0x346   : > { %1668 = vst [vmem:[#allocation2 + $0xf8] sm:$0xff] %v1664_v57 }
 0x347   : > { %v1344_v17 = vpop.permute.xlu0 %1343  ;;  %v1446_v14 = vpop.permute.xlu1 %1445 }
 0x348   : > { %v1357_v51 = vsel %vm557_vm7, %v1344_v17, %v1352_v62  ;;  %v1361_v52 = vsel %vm557_vm7, %v1352_v62, %v1344_v17  ;;  %v1450_v1 = vsel %vm652_vm5, %v6739_v50, %v1446_v14  ;;  %v1454_v12 = vsel %vm652_vm5, %v1446_v14, %v6739_v50  ;;  %v7018_v60 = vpop.permute.xlu2 %1341  ;;  %v4783_v17 = vld [vmem:[#allocation2 + $0x48] sm:$0xf0] }
 0x349   : > { %v1373_v24 = vmul.f32 %v6994_v48, %v1361_v52  ;;  %v1374_v15 = vmul.f32 %v6996_v9, %v1357_v51  ;;  %v1467_v36 = vmul.f32 %v6773_v3, %v1454_v12  ;;  %v1468_v20 = vmul.f32 %v6775_v5, %v1450_v1  ;;  %v5500_v5 = vld [vmem:[#allocation2 + $0xe4] sm:$0xf0]  ;;  %v4781_v52 = vld [vmem:[#allocation2 + $0x40] sm:$0xf] }
 0x34a   : > { %v4862_v25 = vor.u32 %v5500_v5, %v4861_v56  ;;  %v4845_v1 = vld [vmem:[#allocation2 + $0xc0] sm:$0xf]  ;;  %v4782_v12 = vor.u32 %v5480_v7, %v4781_v52  ;;  %v5492_v56 = vld [vmem:[#allocation2 + $0xa4] sm:$0xf0]  ;;  %v4821_v7 = vld [vmem:[#allocation2 + $0x90] sm:$0xf] }
 0x34b   : > { %v1379_v21 = vpack.c.bf16 %v1374_v15, %v1373_v24  ;;  %v1472_v42 = vpack.c.bf16 %v1468_v20, %v1467_v36  ;;  %v4846_v24 = vor.u32 %v5496_v63, %v4845_v1  ;;  %v5479_v15 = vld [vmem:[#allocation2 + $0x44] sm:$0xf] }
 0x34c   : > { %v5486_v29 = vld [vmem:[#allocation2 + $0x74] sm:$0xf0]  ;;  %v4807_v23 = vld [vmem:[#allocation2 + $0x78] sm:$0xf0] }
 0x34d   : > { %1383 = vst [vmem:[#allocation2 + $0x10] sm:$0xff] %v1379_v21  ;;  %v4806_v6 = vor.u32 %v5486_v29, %v4805_v47  ;;  %v4810_v40 = vor.u32 %v5485_v22, %v4807_v23  ;;  %v5502_v11 = vld [vmem:[#allocation2 + $0xf4] sm:$0xf0]  ;;  %v4786_v21 = vor.u32 %v5479_v15, %v4783_v17  ;;  %v4837_v47 = vld [vmem:[#allocation2 + $0xb0] sm:$0xf] }
 0x34e   : > { %1476 = vst [vmem:[#allocation2 + $0x58] sm:$0xff] %v1472_v42  ;;  %v4870_v50 = vor.u32 %v5502_v11, %v4869_v4  ;;  %v4773_v42 = vld [vmem:[#allocation2 + $0x30] sm:$0xf]  ;;  %v5477_v22 = vld [vmem:[#allocation2 + $0x34] sm:$0xf] }
 0x34f   : > { %v1546_v34 = vpop.permute.xlu0 %1545  ;;  %1991 = vmatpush.bf16.msrb.mxu0 %v4806_v6  ;;  %2048 = vmatpush.bf16.msra.mxu3 %v4810_v40  ;;  %v1346_v3 = vpop.permute.xlu1 %1345  ;;  %v5478_v23 = vld [vmem:[#allocation2 + $0x34] sm:$0xf0]  ;;  %v4775_v4 = vld [vmem:[#allocation2 + $0x38] sm:$0xf0] }
 0x350   : > { %v1550_v35 = vsel %vm756_vm6, %v6802_v18, %v1546_v34  ;;  %v1554_v46 = vsel %vm756_vm6, %v1546_v34, %v6802_v18  ;;  %2010 = vmatpush.bf16.msra.mxu1 %v4870_v50  ;;  %v5498_v18 = vld [vmem:[#allocation2 + $0xd4] sm:$0xf0]  ;;  %v7028_v36 = vpop.permute.xlu2 %1673  ;;  %v4774_v40 = vor.u32 %v5478_v23, %v4773_v42  ;;  %v4778_v50 = vor.u32 %v5477_v22, %v4775_v4  ;;  %v4829_v34 = vld [vmem:[#allocation2 + $0xa0] sm:$0xf] }
 0x351   : > { %v1567_v0 = vmul.f32 %v6828_v58, %v1550_v35  ;;  %v1568_v31 = vmul.f32 %v6830_v54, %v1554_v46  ;;  %v4854_v13 = vor.u32 %v5498_v18, %v4853_v45  ;;  %v4767_v46 = vld [vmem:[#allocation2 + $0x28] sm:$0xf0]  ;;  %v5475_v45 = vld [vmem:[#allocation2 + $0x24] sm:$0xf] }
 0x353   : > { %v1572_v26 = vpack.c.bf16 %v1568_v31, %v1567_v0  ;;  %1992 = vmatpush.bf16.msrb.mxu0 %v4798_v2  ;;  %2049 = vmatpush.bf16.msra.mxu3 %v4802_v8  ;;  %v4765_v2 = vld [vmem:[#allocation2 + $0x20] sm:$0xf] }
 0x354   : > { %2011 = vmatpush.bf16.msra.mxu1 %v4862_v25  ;;  %v4766_v25 = vor.u32 %v5476_v59, %v4765_v2  ;;  %v5466_v59 = vld [vmem:[#allocation3 + $0x8] sm:$0xf0] }
 0x355   : > { %1576 = vst [vmem:[#allocation2 + $0xb8] sm:$0xff] %v1572_v26  ;;  %v5482_v55 = vld [vmem:[#allocation2 + $0x54] sm:$0xf0]  ;;  %v4791_v10 = vld [vmem:[#allocation2 + $0x58] sm:$0xf0]  ;;  %v4830_v26 = vor.u32 %v5492_v56, %v4829_v34 }
 0x356   : > { %v4790_v53 = vor.u32 %v5482_v55, %v4789_v32  ;;  %v4794_v58 = vor.u32 %v5481_v33, %v4791_v10  ;;  %v4722_v32 = vld [vmem:[%s8667_s9 + $0x10] sm:$0x3]  ;;  %v4770_v33 = vor.u32 %v5475_v45, %v4767_v46  ;;  %v5490_v10 = vld [vmem:[#allocation2 + $0x94] sm:$0xf0]  ;;  %v4863_v56 = vld [vmem:[#allocation2 + $0xe8] sm:$0xf0] }
 0x357   : > { %v1354_v30 = vpop.permute.xlu0 %1353  ;;  %v1340_v54 = vpop.permute.xlu1 %1339  ;;  %v4757_v55 = vld [vmem:[#allocation2 + $0x10] sm:$0xf] }
 0x358   : > { %v1358_v57 = vsel %vm557_vm7, %v1346_v3, %v1354_v30  ;;  %v1362_v62 = vsel %vm557_vm7, %v1354_v30, %v1346_v3  ;;  %1993 = vmatpush.bf16.msrb.mxu0 %v4790_v53  ;;  %2012 = vmatpush.bf16.msra.mxu1 %v4854_v13  ;;  %v7049_v30 = vperm.slane %v4722_v32, 1 }
 0x359   : > { %v1375_v14 = vmul.f32 %v6994_v48, %v1362_v62  ;;  %v1376_v51 = vmul.f32 %v6996_v9, %v1358_v57  ;;  %2050 = vmatpush.bf16.msra.mxu3 %v4794_v58  ;;  %v1684_v58 = vpop.permute.xlu2 %1683  ;;  %v4822_v57 = vor.u32 %v5490_v10, %v4821_v7 }
 0x35b   : > { %v1380_v20 = vpack.c.bf16 %v1376_v51, %v1375_v14  ;;  %v5488_v14 = vld [vmem:[#allocation2 + $0x84] sm:$0xf0] }
 0x35c   : > { %1994 = vmatpush.bf16.msrb.mxu0 %v4782_v12  ;;  %2013 = vmatpush.bf16.msra.mxu1 %v4846_v24  ;;  %v5494_v29 = vld [vmem:[#allocation2 + $0xb4] sm:$0xf0]  ;;  %v5465_v12 = vld [vmem:[#allocation3 + $0x4] sm:$0xf]  ;;  %v4727_v24 = vld [vmem:[#allocation3 + $0xc] sm:$0xf0] }
 0x35d   : > { %1384 = vst [vmem:[#allocation2 + $0x18] sm:$0xff] %v1380_v20  ;;  %2051 = vmatpush.bf16.msra.mxu3 %v4786_v21  ;;  %v4838_v6 = vor.u32 %v5494_v29, %v4837_v47  ;;  %v4813_v47 = vld [vmem:[#allocation2 + $0x80] sm:$0xf]  ;;  %v7065_v4 = vor.u32 %v5465_v12, %v4727_v24 }
 0x35e   : > { %v4814_v22 = vor.u32 %v5488_v14, %v4813_v47  ;;  %v4739_v14 = vld [vmem:[#allocation3 + $0x24] sm:$0xf0]  ;;  %v5493_v47 = vld [vmem:[#allocation2 + $0xb4] sm:$0xf] }
 0x35f   : > { %v1348_v11 = vpop.permute.xlu0 %1347  ;;  %v1350_v39 = vpop.permute.xlu1 %1349 }
 0x360   : > { %v1355_v3 = vsel %vm557_vm7, %v1340_v54, %v1348_v11  ;;  %v1359_v5 = vsel %vm557_vm7, %v1348_v11, %v1340_v54  ;;  %1995 = vmatpush.bf16.msrb.mxu0 %v4774_v40  ;;  %2014 = vmatpush.bf16.msra.mxu1 %v4838_v6  ;;  %v1356_v35 = vsel %vm557_vm7, %v7018_v60, %v1350_v39  ;;  %v4871_v6 = vld [vmem:[#allocation2 + $0xf8] sm:$0xf0]  ;;  %v4725_v40 = vld [vmem:[#allocation3] sm:$0xf] }
 0x361   : > { %v1369_v44 = vmul.f32 %v6994_v48, %v1359_v5  ;;  %v1370_v61 = vmul.f32 %v6996_v9, %v1355_v3  ;;  %2052 = vmatpush.bf16.msra.mxu3 %v4778_v50  ;;  %v1360_v0 = vsel %vm557_vm7, %v1350_v39, %v7018_v60  ;;  %v1372_v31 = vmul.f32 %v6996_v9, %v1356_v35  ;;  %v5473_v9 = vld [vmem:[#allocation2 + $0x14] sm:$0xf]  ;;  %v1678_v46 = vpop.permute.xlu2 %1677 }
 0x362   : > { %v1371_v8 = vmul.f32 %v6994_v48, %v1360_v0  ;;  %v7047_v48 = vperm.slane %v4722_v32, 0  ;;  %v5501_v35 = vld [vmem:[#allocation2 + $0xf4] sm:$0xf]  ;;  %v4726_v0 = vor.u32 %v5466_v59, %v4725_v40 }
 0x363   : > { %v1377_v18 = vpack.c.bf16 %v1370_v61, %v1369_v44  ;;  %v4874_v61 = vor.u32 %v5501_v35, %v4871_v6  ;;  %v4831_v6 = vld [vmem:[#allocation2 + $0xa8] sm:$0xf0] }
 0x364   : > { %v1378_v53 = vpack.c.bf16 %v1372_v31, %v1371_v8  ;;  %1996 = vmatpush.bf16.msrb.mxu0 %v4766_v25  ;;  %2015 = vmatpush.bf16.msra.mxu1 %v4830_v26  ;;  %v5474_v60 = vld [vmem:[#allocation2 + $0x14] sm:$0xf0]  ;;  %v4759_v13 = vld [vmem:[#allocation2 + $0x18] sm:$0xf0]  ;;  %v5499_v26 = vld [vmem:[#allocation2 + $0xe4] sm:$0xf] }
 0x365   : > { %1381 = vst [vmem:[#allocation2] sm:$0xff] %v1377_v18  ;;  %2053 = vmatpush.bf16.msra.mxu3 %v4770_v33  ;;  %v4758_v54 = vor.u32 %v5474_v60, %v4757_v55  ;;  %v4762_v63 = vor.u32 %v5473_v9, %v4759_v13  ;;  %v4866_v32 = vor.u32 %v5499_v26, %v4863_v56  ;;  %v5497_v55 = vld [vmem:[#allocation2 + $0xd4] sm:$0xf]  ;;  %v4855_v13 = vld [vmem:[#allocation2 + $0xd8] sm:$0xf0] }
 0x366   : > { %1382 = vst [vmem:[#allocation2 + $0x8] sm:$0xff] %v1378_v53  ;;  %v4858_v7 = vor.u32 %v5497_v55, %v4855_v13 }
 0x367   : > { %v1676_v62 = vpop.permute.xlu0 %1675  ;;  %v1682_v17 = vpop.permute.xlu1 %1681 }
 0x368   : > { %v1688_v51 = vsel %vm900_vm8, %v1676_v62, %v1684_v58  ;;  %v1692_v52 = vsel %vm900_vm8, %v1684_v58, %v1676_v62  ;;  %1997 = vmatpush.bf16.msrb.mxu0 %v4758_v54  ;;  %2016 = vmatpush.bf16.msra.mxu1 %v4822_v57  ;;  %v1687_v1 = vsel %vm900_vm8, %v7028_v36, %v1682_v17  ;;  %v4847_v62 = vld [vmem:[#allocation2 + $0xc8] sm:$0xf0] }
 0x369   : > { %v1705_v15 = vmul.f32 %v7047_v48, %v1688_v51  ;;  %v1706_v20 = vmul.f32 %v7049_v30, %v1692_v52  ;;  %2054 = vmatpush.bf16.msra.mxu3 %v4762_v63  ;;  %v1691_v21 = vsel %vm900_vm8, %v1682_v17, %v7028_v36  ;;  %v1703_v42 = vmul.f32 %v7047_v48, %v1687_v1  ;;  %v5468_v17 = vld [vmem:[#allocation3 + $0x1c] sm:$0xf]  ;;  %v5495_v1 = vld [vmem:[#allocation2 + $0xc4] sm:$0xf] }
 0x36a   : > { %v1704_v29 = vmul.f32 %v7049_v30, %v1691_v21  ;;  %v4850_v24 = vor.u32 %v5495_v1, %v4847_v62  ;;  %v4737_v21 = vld [vmem:[#allocation3 + $0x18] sm:$0xf] }
 0x36b   : > { %v1710_v23 = vpack.c.bf16 %v1706_v20, %v1705_v15  ;;  %v4742_v15 = vor.u32 %v5468_v17, %v4739_v14  ;;  %v4839_v20 = vld [vmem:[#allocation2 + $0xb8] sm:$0xf0] }
 0x36c   : > { %v1709_v11 = vpack.c.bf16 %v1704_v29, %v1703_v42  ;;  %2017 = vmatpush.bf16.msra.mxu1 %v4814_v22  ;;  %v4749_v50 = vld [vmem:[#allocation2] sm:$0xf]  ;;  %v5471_v39 = vld [vmem:[#allocation2 + $0x4] sm:$0xf]  ;;  %v4842_v29 = vor.u32 %v5493_v47, %v4839_v20 }
 0x36d   : > { %1714 = vst [vmem:[#allocation2 + $0x118] sm:$0xff] %v1710_v23  ;;  %v5472_v34 = vld [vmem:[#allocation2 + $0x4] sm:$0xf0]  ;;  %v4751_v3 = vld [vmem:[#allocation2 + $0x8] sm:$0xf0] }
 0x36e   : > { %1713 = vst [vmem:[#allocation2 + $0x110] sm:$0xff] %v1709_v11  ;;  %v4750_v36 = vor.u32 %v5472_v34, %v4749_v50  ;;  %v4754_v5 = vor.u32 %v5471_v39, %v4751_v3  ;;  %v5469_v42 = vld [vmem:[#allocation3 + $0x20] sm:$0xf0]  ;;  %v4733_v11 = vld [vmem:[#allocation3 + $0x8] sm:$0xf] }
 0x36f   : > { %v1670_v44 = vpop.permute.xlu0 %1669  ;;  %2018 = vmatmul.bf16.vlgmr.msra.gmra.mxu1 %v7065_v4  ;;  %v1672_v58 = vpop.permute.xlu1 %1671  ;;  %v4738_v22 = vor.u32 %v5469_v42, %v4737_v21  ;;  %v5491_v23 = vld [vmem:[#allocation2 + $0xa4] sm:$0xf]  ;;  %v5467_v50 = vld [vmem:[#allocation3 + $0x10] sm:$0xf0] }
 0x370   : > { %v1685_v31 = vsel %vm900_vm8, %v1670_v44, %v1678_v46  ;;  %v1689_v2 = vsel %vm900_vm8, %v1678_v46, %v1670_v44  ;;  %1998 = vmatpush.bf16.msrb.mxu0 %v4750_v36  ;;  %2055 = vmatpush.bf16.msra.mxu3 %v4754_v5  ;;  %v5489_v5 = vld [vmem:[#allocation2 + $0x94] sm:$0xf]  ;;  %v4734_v35 = vor.u32 %v5467_v50, %v4733_v11  ;;  %v4815_v44 = vld [vmem:[#allocation2 + $0x88] sm:$0xf0] }
 0x371   : > { %v1699_v8 = vmul.f32 %v7047_v48, %v1685_v31  ;;  %v1700_v25 = vmul.f32 %v7049_v30, %v1689_v2  ;;  %v4745_v31 = vld [vmem:[#allocation3 + $0x20] sm:$0xf]  ;;  %v5470_v2 = vld [vmem:[#allocation3 + $0x28] sm:$0xf0] }
 0x372   : > { %v4746_v56 = vor.u32 %v5470_v2, %v4745_v31 }
 0x373   : > { %v1707_v45 = vpack.c.bf16 %v1700_v25, %v1699_v8  ;;  %1999 = vmatmul.bf16.vlgmr.msrb.gmra.mxu0 %v4726_v0  ;;  %2056 = vmatmul.bf16.vlgmr.msra.gmra.mxu3 %v4726_v0 }
 0x374   : > { %2067 = vmatpush.bf16.msra.mxu0 %v4874_v61  ;;  %v5506_v18 = vld [vmem:[#allocation2 + $0x114] sm:$0xf0]  ;;  %v4887_v33 = vld [vmem:[#allocation2 + $0x118] sm:$0xf0]  ;;  %v5487_v61 = vld [vmem:[#allocation2 + $0x84] sm:$0xf] }
 0x375   : > { %1711 = vst [vmem:[#allocation2 + $0x100] sm:$0xff] %v1707_v45  ;;  %v4885_v10 = vld [vmem:[#allocation2 + $0x110] sm:$0xf]  ;;  %v5505_v53 = vld [vmem:[#allocation2 + $0x114] sm:$0xf]  ;;  %v4818_v0 = vor.u32 %v5487_v61, %v4815_v44 }
 0x376   : > { %v4886_v60 = vor.u32 %v5506_v18, %v4885_v10  ;;  %v4890_v9 = vor.u32 %v5505_v53, %v4887_v33 }
 0x377   : > { %v1680_v54 = vpop.permute.xlu0 %1679  ;;  %v1768_v55 = vpop.permute.xlu1 %1767 }
 0x378   : > { %2068 = vmatpush.bf16.msra.mxu0 %v4866_v32  ;;  %v1686_v63 = vsel %vm900_vm8, %v1672_v58, %v1680_v54  ;;  %v1690_v57 = vsel %vm900_vm8, %v1680_v54, %v1672_v58  ;;  %2035 = vmatpush.bf16.msrb.mxu2 %v4886_v60 }
 0x379   : > { %2092 = vmatpush.bf16.msrb.mxu1 %v4890_v9  ;;  %v1701_v51 = vmul.f32 %v7047_v48, %v1686_v63  ;;  %v1702_v52 = vmul.f32 %v7049_v30, %v1690_v57  ;;  %v4823_v48 = vld [vmem:[#allocation2 + $0x98] sm:$0xf0]  ;;  %v4834_v30 = vor.u32 %v5491_v23, %v4831_v6 }
 0x37a   : > { %v4826_v46 = vor.u32 %v5489_v5, %v4823_v48 }
 0x37b   : > { %v1708_v12 = vpack.c.bf16 %v1702_v52, %v1701_v51 }
 0x37c   : > { %2069 = vmatpush.bf16.msra.mxu0 %v4858_v7  ;;  %v4877_v40 = vld [vmem:[#allocation2 + $0x100] sm:$0xf]  ;;  %v5503_v59 = vld [vmem:[#allocation2 + $0x104] sm:$0xf] }
 0x37d   : > { %1712 = vst [vmem:[#allocation2 + $0x108] sm:$0xff] %v1708_v12 }
 0x37f   : > { %2023 = vmatmul.bf16.gmra.mxu1 %v4742_v15  ;;  %v1758_v53 = vpop.permute.xlu0 %1757  ;;  %v1763_v7 = vpop.permute.xlu1 %1762 }
 0x380   : > { %2070 = vmatpush.bf16.msra.mxu0 %v4850_v24 }
 0x383   : > { %2004 = vmatmul.bf16.gmra.mxu0 %v4738_v22  ;;  %2061 = vmatmul.bf16.gmra.mxu3 %v4738_v22 }
 0x384   : > { %2071 = vmatpush.bf16.msra.mxu0 %v4842_v29  ;;  %v5504_v39 = vld [vmem:[#allocation2 + $0x104] sm:$0xf0]  ;;  %v4879_v34 = vld [vmem:[#allocation2 + $0x108] sm:$0xf0] }
 0x385   : > { %v4878_v3 = vor.u32 %v5504_v39, %v4877_v40  ;;  %v4882_v36 = vor.u32 %v5503_v59, %v4879_v34 }
 0x387   : > { %2036 = vmatpush.bf16.msrb.mxu2 %v4878_v3  ;;  %2093 = vmatpush.bf16.msrb.mxu1 %v4882_v36  ;;  %v1773_v3 = vpop.permute.xlu2 %1772 }
 0x388   : > { %2072 = vmatpush.bf16.msra.mxu0 %v4834_v30 }
 0x38a   : > { %4891 = vmatmul.msk.bf16.vlgmr.msrb.gmra.mxu2 %vm1202_vm9, %v4734_v35 }
 0x38c   : > { %2073 = vmatpush.bf16.msra.mxu0 %v4826_v46 }
 0x38f   : > { %4893 = vmatmul.msk.bf16.vlgmr.msrb.gmra.mxu1 %vm1202_vm9, %v4734_v35 }
 0x390   : > { %2074 = vmatpush.bf16.msra.mxu0 %v4818_v0 }
 0x393   : > { %2075 = vmatmul.bf16.vlgmr.msra.gmra.mxu0 %v7065_v4 }
 0x39a   : > { %4892 = vmatmul.msk.bf16.gmra.mxu2 %vm1202_vm9, %v4746_v56 }
 0x39f   : > { %4894 = vmatmul.msk.bf16.gmra.mxu1 %vm1202_vm9, %v4746_v56 }
 0x3a3   : > { %2080 = vmatmul.bf16.gmra.mxu0 %v4742_v15 }
 0x3ec   : > { %v2019_v8 = vpop.f32.mrf.mxu1 }
 0x3f0   : > { %v2000_v25 = vpop.f32.mrf.mxu0 }
 0x3f1   : > { %v2001_v60 = vadd.f32 %v2000_v25, %v1758_v53 }
 0x3f3   : > { %v2020_v9 = vadd.f32 %v2019_v8, %v2001_v60 }
 0x3f4   : > { %v2021_v26 = vpop.f32.mrf.mxu1 }
 0x3f6   : > { %v2057_v10 = vpop.f32.mrf.mxu3 }
 0x3f7   : > { %v2058_v63 = vadd.f32 %v2057_v10, %v1758_v53 }
 0x3f8   : > { %v2002_v45 = vpop.f32.mrf.mxu0 }
 0x3f9   : > { %v2003_v57 = vadd.f32 %v2002_v45, %v1763_v7 }
 0x3fb   : > { %v2022_v12 = vadd.f32 %v2021_v26, %v2003_v57 }
 0x3fc   : > { %v2024_v32 = vpop.f32.mrf.mxu1 }
 0x3fe   : > { %v2059_v62 = vpop.f32.mrf.mxu3 }
 0x3ff   : > { %v2060_v21 = vadd.f32 %v2059_v62, %v1763_v7 }
 0x400   : > { %v2005_v18 = vpop.f32.mrf.mxu0 }
 0x401   : > { %v2006_v47 = vadd.f32 %v2005_v18, %v1768_v55 }
 0x403   : > { %v2025_v40 = vadd.f32 %v2024_v32, %v2006_v47 }
 0x404   : > { %v2026_v33 = vpop.f32.mrf.mxu1 }
 0x406   : > { %v2062_v48 = vpop.f32.mrf.mxu3 }
 0x407   : > { %v2063_v59 = vadd.f32 %v2062_v48, %v1768_v55 }
 0x408   : > { %v2007_v4 = vpop.f32.mrf.mxu0 }
 0x409   : > { %v2008_v35 = vadd.f32 %v2007_v4, %v1773_v3 }
 0x40b   : > { %v2027_v31 = vadd.f32 %v2026_v33, %v2008_v35 }
 0x40c   : > { %v2095_v13 = vpop.f32.mrf.mxu1 }
 0x40d   : > { %v2038_v58 = vpop.f32.mrf.mxu2 }
 0x40e   : > { %v2039_v54 = vadd.f32 %v2038_v58, %v2020_v9  ;;  %v2064_v0 = vpop.f32.mrf.mxu3 }
 0x40f   : > { %v2065_v56 = vadd.f32 %v2064_v0, %v1773_v3 }
 0x410   : > { %v2105_v17 = vadd.f32 %v2039_v54, %v6093_v19  ;;  %v2076_v14 = vpop.f32.mrf.mxu0 }
 0x411   : > { %v2077_v51 = vadd.f32 %v2076_v14, %v2058_v63 }
 0x412   : > { %v7086_v52 = vmax.f32 %v2105_v17, 0.0 }
 0x413   : > { %v2096_v1 = vadd.f32 %v2095_v13, %v2077_v51 }
 0x414   : > { %2368 = vrot.lane.b32.xlu1 %v7086_v52, %s5900_s7  ;;  %2222 = vrot.lane.b32.xlu2 %v7086_v52, %s5904_s28  ;;  %v2097_v24 = vpop.f32.mrf.mxu1 }
 0x415   : > { %v2106_v15 = vadd.f32 %v2096_v1, %v6085_v16  ;;  %2268 = vrot.lane.b32.xlu0 %v7086_v52, %s5902_s23  ;;  %v2040_v20 = vpop.f32.mrf.mxu2 }
 0x416   : > { %v2041_v19 = vadd.f32 %v2040_v20, %v2022_v12  ;;  %v4905_v12 = vld [vmem:[%s8667_s9 + $0x6] sm:$0x3] }
 0x417   : > { %v7095_v42 = vmax.f32 %v2106_v15, 0.0  ;;  %v7256_v15 = vperm.slane %v4905_v12, 1 }
 0x418   : > { %v2107_v29 = vadd.f32 %v2041_v19, %v6105_v28  ;;  %v2078_v22 = vpop.f32.mrf.mxu0 }
 0x419   : > { %v2314_v23 = vpack.c.bf16 %v7095_v42, %v7086_v52  ;;  %v2079_v6 = vadd.f32 %v2078_v22, %v2060_v21 }
 0x41a   : > { %v7100_v30 = vmax.f32 %v2107_v29, 0.0 }
 0x41b   : > { %2318 = vst [vmem:[#allocation2 + $0x80] sm:$0xff] %v2314_v23  ;;  %v2098_v16 = vadd.f32 %v2097_v24, %v2079_v6  ;;  %v7254_v24 = vperm.slane %v4905_v12, 0  ;;  %v4908_v6 = vld [vmem:[%s8667_s9 + $0xe] sm:$0x3] }
 0x41c   : > { %2270 = vrot.lane.b32.xlu1 %v7100_v30, %s5902_s23  ;;  %2176 = vrot.lane.b32.xlu2 %v7086_v52, %s5903_s26  ;;  %v2100_v39 = vpop.f32.mrf.mxu1 }
 0x41d   : > { %v2108_v11 = vadd.f32 %v2098_v16, %v6103_v27  ;;  %2414 = vrot.lane.b32.xlu0 %v7086_v52, %s5901_s19  ;;  %v2043_v28 = vpop.f32.mrf.mxu2  ;;  %v7277_v16 = vperm.slane %v4908_v6, 0 }
 0x41e   : > { %v2044_v50 = vadd.f32 %v2043_v28, %v2025_v40  ;;  %v7279_v40 = vperm.slane %v4908_v6, 1 }
 0x41f   : > { %v7109_v34 = vmax.f32 %v2108_v11, 0.0 }
 0x420   : > { %v2109_v36 = vadd.f32 %v2044_v50, %v6115_v37  ;;  %v2081_v5 = vpop.f32.mrf.mxu0 }
 0x421   : > { %v2315_v46 = vpack.c.bf16 %v7109_v34, %v7100_v30  ;;  %v2082_v44 = vadd.f32 %v2081_v5, %v2063_v59  ;;  %v2154_v5 = vld [vmem:[%s8667_s9] sm:$0x3] }
 0x422   : > { %v7114_v61 = vmax.f32 %v2109_v36, 0.0 }
 0x423   : > { %2319 = vst [vmem:[#allocation2 + $0x88] sm:$0xff] %v2315_v46  ;;  %v2101_v27 = vadd.f32 %v2100_v39, %v2082_v44  ;;  %v7300_v46 = vperm.slane %v2154_v5, 0  ;;  %v7302_v44 = vperm.slane %v2154_v5, 1 }
 0x424   : > { %2416 = vrot.lane.b32.xlu1 %v7100_v30, %s5901_s19  ;;  %2272 = vrot.lane.b32.xlu2 %v7114_v61, %s5902_s23  ;;  %v2102_v45 = vpop.f32.mrf.mxu1 }
 0x425   : > { %v2110_v37 = vadd.f32 %v2101_v27, %v6117_v38  ;;  %2130 = vrot.lane.b32.xlu0 %v7086_v52, %s5906_s13  ;;  %v2045_v2 = vpop.f32.mrf.mxu2 }
 0x426   : > { %v2046_v25 = vadd.f32 %v2045_v2, %v2027_v31 }
 0x427   : > { %v7123_v8 = vmax.f32 %v2110_v37, 0.0 }
 0x428   : > { %v2083_v26 = vpop.f32.mrf.mxu0  ;;  %v2111_v55 = vadd.f32 %v2046_v25, %v6129_v43 }
 0x429   : > { %v2316_v32 = vpack.c.bf16 %v7123_v8, %v7114_v61  ;;  %v2084_v18 = vadd.f32 %v2083_v26, %v2065_v56  ;;  %v4913_v26 = vld [vmem:[%s8662_s4 + $0x38] sm:$0xff] }
 0x42a   : > { %v7135_v10 = vmax.f32 %v2111_v55, 0.0 }
 0x42b   : > { %2320 = vst [vmem:[#allocation2 + $0x90] sm:$0xff] %v2316_v32  ;;  %v2103_v33 = vadd.f32 %v2102_v45, %v2084_v18  ;;  %v4904_v45 = vld [vmem:[%s8667_s9 + $0x4] sm:$0x3]  ;;  %v4912_v18 = vld [vmem:[%s8662_s4 + $0x30] sm:$0xff] }
 0x42c   : > { %2132 = vrot.lane.b32.xlu1 %v7100_v30, %s5906_s13  ;;  %2372 = vrot.lane.b32.xlu2 %v7114_v61, %s5900_s7  ;;  %v7327_v55 = vperm.slane %v4904_v45, 0 }
 0x42d   : > { %v2112_v38 = vadd.f32 %v2103_v33, %v6125_v41  ;;  %2224 = vrot.lane.b32.xlu0 %v7100_v30, %s5904_s28  ;;  %v7329_v33 = vperm.slane %v4904_v45, 1 }
 0x42f   : > { %v7137_v53 = vmax.f32 %v2112_v38, 0.0 }
 0x431   : > { %v2317_v60 = vpack.c.bf16 %v7137_v53, %v7135_v10 }
 0x433   : > { %2321 = vst [vmem:[#allocation2 + $0x98] sm:$0xff] %v2317_v60 }
 0x434   : > { %2226 = vrot.lane.b32.xlu1 %v7114_v61, %s5904_s28  ;;  %2228 = vrot.lane.b32.xlu2 %v7135_v10, %s5904_s28 }
 0x435   : > { %2178 = vrot.lane.b32.xlu0 %v7100_v30, %s5903_s26 }
 0x43c   : > { %2418 = vrot.lane.b32.xlu1 %v7114_v61, %s5901_s19  ;;  %2420 = vrot.lane.b32.xlu2 %v7135_v10, %s5901_s19 }
 0x43d   : > { %2180 = vrot.lane.b32.xlu0 %v7114_v61, %s5903_s26 }
 0x444   : > { %2134 = vrot.lane.b32.xlu1 %v7114_v61, %s5906_s13  ;;  %2136 = vrot.lane.b32.xlu2 %v7135_v10, %s5906_s13 }
 0x445   : > { %2274 = vrot.lane.b32.xlu0 %v7135_v10, %s5902_s23 }
 0x44c   : > { %2182 = vrot.lane.b32.xlu1 %v7135_v10, %s5903_s26  ;;  %2276 = vrot.lane.b32.xlu2 %v7095_v42, %s5902_s23 }
 0x44d   : > { %2374 = vrot.lane.b32.xlu0 %v7135_v10, %s5900_s7 }
 0x454   : > { %2230 = vrot.lane.b32.xlu1 %v7095_v42, %s5904_s28  ;;  %2422 = vrot.lane.b32.xlu2 %v7095_v42, %s5901_s19 }
 0x455   : > { %2278 = vrot.lane.b32.xlu0 %v7109_v34, %s5902_s23 }
 0x45c   : > { %2184 = vrot.lane.b32.xlu1 %v7095_v42, %s5903_s26  ;;  %2138 = vrot.lane.b32.xlu2 %v7095_v42, %s5906_s13 }
 0x45d   : > { %2424 = vrot.lane.b32.xlu0 %v7109_v34, %s5901_s19 }
 0x464   : > { %2280 = vrot.lane.b32.xlu1 %v7123_v8, %s5902_s23  ;;  %2232 = vrot.lane.b32.xlu2 %v7109_v34, %s5904_s28 }
 0x465   : > { %2140 = vrot.lane.b32.xlu0 %v7109_v34, %s5906_s13 }
 0x46c   : > { %2380 = vrot.lane.b32.xlu1 %v7123_v8, %s5900_s7  ;;  %2186 = vrot.lane.b32.xlu2 %v7109_v34, %s5903_s26 }
 0x46d   : > { %2234 = vrot.lane.b32.xlu0 %v7123_v8, %s5904_s28 }
 0x46e   : > { %v7189_v41 = vpop.permute.xlu2 %2222 }
 0x474   : > { %2378 = vrot.lane.b32.xlu1 %v7109_v34, %s5900_s7  ;;  %2188 = vrot.lane.b32.xlu2 %v7123_v8, %s5903_s26 }
 0x475   : > { %2426 = vrot.lane.b32.xlu0 %v7123_v8, %s5901_s19 }
 0x476   : > { %v7197_v43 = vpop.permute.xlu2 %2176 }
 0x47c   : > { %2236 = vrot.lane.b32.xlu1 %v7137_v53, %s5904_s28  ;;  %2282 = vrot.lane.b32.xlu2 %v7137_v53, %s5902_s23 }
 0x47d   : > { %2142 = vrot.lane.b32.xlu0 %v7123_v8, %s5906_s13 }
 0x47e   : > { %v7205_v4 = vpop.permute.xlu2 %2272 }
 0x484   : > { %2428 = vrot.lane.b32.xlu1 %v7137_v53, %s5901_s19  ;;  %2370 = vrot.lane.b32.xlu2 %v7100_v30, %s5900_s7 }
 0x485   : > { %2376 = vrot.lane.b32.xlu0 %v7095_v42, %s5900_s7 }
 0x486   : > { %v7213_v9 = vpop.permute.xlu1 %2368  ;;  %v7215_v13 = vpop.permute.xlu2 %2372 }
 0x487   : > { %v2269_v58 = vpop.permute.xlu0 %2268 }
 0x48c   : > { %2144 = vrot.lane.b32.xlu1 %v7137_v53, %s5906_s13  ;;  %2326 = vrot.lane.b32.xlu2 %v7114_v61, %s5905_s29 }
 0x48d   : > { %2190 = vrot.lane.b32.xlu0 %v7137_v53, %s5903_s26 }
 0x48e   : > { %v7223_v54 = vpop.permute.xlu1 %2270  ;;  %v7225_v7 = vpop.permute.xlu2 %2228 }
 0x48f   : > { %v2415_v63 = vpop.permute.xlu0 %2414 }
 0x494   : > { %2334 = vrot.lane.b32.xlu1 %v7123_v8, %s5905_s29  ;;  %2382 = vrot.lane.b32.xlu2 %v7137_v53, %s5900_s7 }
 0x495   : > { %2328 = vrot.lane.b32.xlu0 %v7135_v10, %s5905_s29 }
 0x496   : > { %v7233_v57 = vpop.permute.xlu1 %2416  ;;  %v7235_v62 = vpop.permute.xlu2 %2420 }
 0x497   : > { %v2131_v17 = vpop.permute.xlu0 %2130 }
 0x49c   : > { %2324 = vrot.lane.b32.xlu1 %v7100_v30, %s5905_s29  ;;  %2336 = vrot.lane.b32.xlu2 %v7137_v53, %s5905_s29 }
 0x49d   : > { %2322 = vrot.lane.b32.xlu0 %v7086_v52, %s5905_s29 }
 0x49e   : > { %v7243_v14 = vpop.permute.xlu1 %2132  ;;  %v7245_v51 = vpop.permute.xlu2 %2136 }
 0x49f   : > { %v2225_v1 = vpop.permute.xlu0 %2224 }
 0x4a4   : > { %2464 = vrot.lane.b32.xlu1 %v7114_v61, %s5907_s30  ;;  %2330 = vrot.lane.b32.xlu2 %v7095_v42, %s5905_s29 }
 0x4a5   : > { %2332 = vrot.lane.b32.xlu0 %v7109_v34, %s5905_s29 }
 0x4a6   : > { %v7260_v20 = vpop.permute.xlu1 %2226  ;;  %v2277_v19 = vpop.permute.xlu2 %2276 }
 0x4a7   : > { %v7262_v21 = vpop.permute.xlu0 %2178  ;;  %v2284_v47 = vsel %vm700_vm4, %v2269_v58, %v2277_v19  ;;  %v2288_v29 = vsel %vm700_vm4, %v2277_v19, %v2269_v58 }
 0x4a8   : > { %v2298_v22 = vmul.f32 %v7254_v24, %v2288_v29  ;;  %v2299_v23 = vmul.f32 %v7256_v15, %v2284_v47  ;;  %v4910_v47 = vld [vmem:[%s8662_s4 + $0x20] sm:$0xff] }
 0x4aa   : > { %v2306_v48 = vpack.c.bf16 %v2299_v23, %v2298_v22  ;;  %v4911_v22 = vld [vmem:[%s8662_s4 + $0x28] sm:$0xff]  ;;  %v4903_v23 = vld [vmem:[%s8667_s9 + $0x2] sm:$0x3] }
 0x4ab   : > { %v7352_v6 = vperm.slane %v4903_v23, 1 }
 0x4ac   : > { %2310 = vst [vmem:[#allocation2 + $0x60] sm:$0xff] %v2306_v48  ;;  %2474 = vrot.lane.b32.xlu1 %v7137_v53, %s5907_s30  ;;  %2466 = vrot.lane.b32.xlu2 %v7135_v10, %s5907_s30 }
 0x4ad   : > { %2472 = vrot.lane.b32.xlu0 %v7123_v8, %s5907_s30 }
 0x4ae   : > { %v7283_v11 = vpop.permute.xlu1 %2418  ;;  %v2423_v28 = vpop.permute.xlu2 %2422 }
 0x4af   : > { %v7285_v50 = vpop.permute.xlu0 %2180  ;;  %v2430_v39 = vsel %vm852_vm3, %v2415_v63, %v2423_v28  ;;  %v2434_v59 = vsel %vm852_vm3, %v2423_v28, %v2415_v63 }
 0x4b0   : > { %v2444_v3 = vmul.f32 %v7277_v16, %v2430_v39  ;;  %v2445_v36 = vmul.f32 %v7279_v40, %v2434_v59 }
 0x4b2   : > { %v2452_v35 = vpack.c.bf16 %v2445_v36, %v2444_v3 }
 0x4b4   : > { %2456 = vst [vmem:[#allocation2 + $0xe0] sm:$0xff] %v2452_v35  ;;  %2468 = vrot.lane.b32.xlu1 %v7095_v42, %s5907_s30  ;;  %2460 = vrot.lane.b32.xlu2 %v7086_v52, %s5907_s30 }
 0x4b5   : > { %2462 = vrot.lane.b32.xlu0 %v7100_v30, %s5907_s30 }
 0x4b6   : > { %v7306_v27 = vpop.permute.xlu1 %2134  ;;  %v2139_v0 = vpop.permute.xlu2 %2138 }
 0x4b7   : > { %v7308_v31 = vpop.permute.xlu0 %2274  ;;  %v2146_v37 = vsel %vm557_vm7, %v2131_v17, %v2139_v0  ;;  %v2150_v2 = vsel %vm557_vm7, %v2139_v0, %v2131_v17 }
 0x4b8   : > { %v2160_v56 = vmul.f32 %v7300_v46, %v2150_v2  ;;  %v2161_v25 = vmul.f32 %v7302_v44, %v2146_v37 }
 0x4ba   : > { %v2168_v32 = vpack.c.bf16 %v2161_v25, %v2160_v56 }
 0x4bc   : > { %2172 = vst [vmem:[#allocation2] sm:$0xff] %v2168_v32  ;;  %2564 = vperm.xlu1 %5728, %v4913_v26   ;;  %2470 = vrot.lane.b32.xlu2 %v7109_v34, %s5907_s30 }
 0x4bd   : > { %2559 = vperm.xlu0 %5727, %v4912_v18  }
 0x4be   : > { %v7331_v38 = vpop.permute.xlu1 %2182  ;;  %v2233_v60 = vpop.permute.xlu2 %2232 }
 0x4bf   : > { %v7333_v58 = vpop.permute.xlu0 %2374  ;;  %v2239_v63 = vsel %vm652_vm5, %v2225_v1, %v2233_v60  ;;  %v2243_v17 = vsel %vm652_vm5, %v2233_v60, %v2225_v1  ;;  %v7350_v1 = vperm.slane %v4903_v23, 0 }
 0x4c0   : > { %v2254_v12 = vmul.f32 %v7327_v55, %v2243_v17  ;;  %v2255_v19 = vmul.f32 %v7329_v33, %v2239_v63 }
 0x4c2   : > { %v2261_v29 = vpack.c.bf16 %v2255_v19, %v2254_v12 }
 0x4c4   : > { %2265 = vst [vmem:[#allocation2 + $0x48] sm:$0xff] %v2261_v29  ;;  %2549 = vperm.xlu2 %5729, %v4910_v47  }
 0x4c5   : > { %2554 = vperm.xlu0 %5727, %v4911_v22  }
 0x4c6   : > { %v2231_v48 = vpop.permute.xlu1 %2230  ;;  %v2187_v28 = vpop.permute.xlu2 %2186 }
 0x4c7   : > { %v2279_v39 = vpop.permute.xlu0 %2278  ;;  %v2238_v59 = vsel %vm652_vm5, %v7189_v41, %v2231_v48  ;;  %v2242_v3 = vsel %vm652_vm5, %v2231_v48, %v7189_v41  ;;  %v2193_v36 = vsel %vm604_vm2, %v7262_v21, %v2187_v28  ;;  %v2197_v5 = vsel %vm604_vm2, %v2187_v28, %v7262_v21 }
 0x4c8   : > { %v2285_v35 = vsel %vm700_vm4, %v7223_v54, %v2279_v39  ;;  %v2289_v0 = vsel %vm700_vm4, %v2279_v39, %v7223_v54  ;;  %v2252_v37 = vmul.f32 %v7327_v55, %v2242_v3  ;;  %v2253_v41 = vmul.f32 %v7329_v33, %v2238_v59 }
 0x4c9   : > { %v2300_v2 = vmul.f32 %v7254_v24, %v2289_v0  ;;  %v2301_v56 = vmul.f32 %v7256_v15, %v2285_v35  ;;  %v2208_v25 = vmul.f32 %v7350_v1, %v2197_v5  ;;  %v2209_v21 = vmul.f32 %v7352_v6, %v2193_v36 }
 0x4ca   : > { %v2260_v26 = vpack.c.bf16 %v2253_v41, %v2252_v37 }
 0x4cb   : > { %v2307_v45 = vpack.c.bf16 %v2301_v56, %v2300_v2  ;;  %v2215_v32 = vpack.c.bf16 %v2209_v21, %v2208_v25 }
 0x4cc   : > { %2264 = vst [vmem:[#allocation2 + $0x40] sm:$0xff] %v2260_v26 }
 0x4cd   : > { %2311 = vst [vmem:[#allocation2 + $0x68] sm:$0xff] %v2307_v45 }
 0x4ce   : > { %2219 = vst [vmem:[#allocation2 + $0x28] sm:$0xff] %v2215_v32  ;;  %v2185_v18 = vpop.permute.xlu1 %2184  ;;  %v2189_v54 = vpop.permute.xlu2 %2188  ;;  %v4907_v32 = vld [vmem:[%s8667_s9 + $0xc] sm:$0x3] }
 0x4cf   : > { %v2425_v60 = vpop.permute.xlu0 %2424  ;;  %v2192_v63 = vsel %vm604_vm2, %v7197_v43, %v2185_v18  ;;  %v2196_v17 = vsel %vm604_vm2, %v2185_v18, %v7197_v43  ;;  %v2194_v12 = vsel %vm604_vm2, %v7285_v50, %v2189_v54  ;;  %v2198_v19 = vsel %vm604_vm2, %v2189_v54, %v7285_v50 }
 0x4d0   : > { %v2431_v47 = vsel %vm852_vm3, %v7233_v57, %v2425_v60  ;;  %v2435_v29 = vsel %vm852_vm3, %v2425_v60, %v7233_v57  ;;  %v2206_v22 = vmul.f32 %v7350_v1, %v2196_v17  ;;  %v2207_v43 = vmul.f32 %v7352_v6, %v2192_v63 }
 0x4d1   : > { %v2446_v23 = vmul.f32 %v7277_v16, %v2431_v47  ;;  %v2447_v48 = vmul.f32 %v7279_v40, %v2435_v29  ;;  %v2210_v28 = vmul.f32 %v7350_v1, %v2198_v19  ;;  %v2211_v50 = vmul.f32 %v7352_v6, %v2194_v12 }
 0x4d2   : > { %v2214_v39 = vpack.c.bf16 %v2207_v43, %v2206_v22  ;;  %v7431_v63 = vperm.slane %v4907_v32, 1 }
 0x4d3   : > { %v2453_v59 = vpack.c.bf16 %v2447_v48, %v2446_v23  ;;  %v2216_v3 = vpack.c.bf16 %v2211_v50, %v2210_v28 }
 0x4d4   : > { %2218 = vst [vmem:[#allocation2 + $0x20] sm:$0xff] %v2214_v39 }
 0x4d5   : > { %2457 = vst [vmem:[#allocation2 + $0xe8] sm:$0xff] %v2453_v59 }
 0x4d6   : > { %2220 = vst [vmem:[#allocation2 + $0x30] sm:$0xff] %v2216_v3  ;;  %v2281_v36 = vpop.permute.xlu1 %2280  ;;  %v2283_v57 = vpop.permute.xlu2 %2282 }
 0x4d7   : > { %v2141_v5 = vpop.permute.xlu0 %2140  ;;  %v2286_v35 = vsel %vm700_vm4, %v7205_v4, %v2281_v36  ;;  %v2290_v0 = vsel %vm700_vm4, %v2281_v36, %v7205_v4  ;;  %v2287_v37 = vsel %vm700_vm4, %v7308_v31, %v2283_v57  ;;  %v2291_v41 = vsel %vm700_vm4, %v2283_v57, %v7308_v31 }
 0x4d8   : > { %v2147_v2 = vsel %vm557_vm7, %v7243_v14, %v2141_v5  ;;  %v2151_v56 = vsel %vm557_vm7, %v2141_v5, %v7243_v14  ;;  %v2302_v25 = vmul.f32 %v7254_v24, %v2290_v0  ;;  %v2303_v4 = vmul.f32 %v7256_v15, %v2286_v35 }
 0x4d9   : > { %v2162_v21 = vmul.f32 %v7300_v46, %v2151_v56  ;;  %v2163_v26 = vmul.f32 %v7302_v44, %v2147_v2  ;;  %v2304_v45 = vmul.f32 %v7254_v24, %v2291_v41  ;;  %v2305_v31 = vmul.f32 %v7256_v15, %v2287_v37  ;;  %v5526_v41 = vld [vmem:[#allocation2 + $0x64] sm:$0xf0] }
 0x4da   : > { %v2308_v18 = vpack.c.bf16 %v2303_v4, %v2302_v25  ;;  %v7429_v14 = vperm.slane %v4907_v32, 0 }
 0x4db   : > { %v2169_v54 = vpack.c.bf16 %v2163_v26, %v2162_v21  ;;  %v2309_v60 = vpack.c.bf16 %v2305_v31, %v2304_v45  ;;  %v4990_v21 = vld [vmem:[#allocation2 + $0x68] sm:$0xf0]  ;;  %v4988_v31 = vld [vmem:[#allocation2 + $0x60] sm:$0xf] }
 0x4dc   : > { %2312 = vst [vmem:[#allocation2 + $0x70] sm:$0xff] %v2308_v18  ;;  %v4989_v18 = vor.u32 %v5526_v41, %v4988_v31  ;;  %v5521_v31 = vld [vmem:[#allocation2 + $0x44] sm:$0xf] }
 0x4dd   : > { %2173 = vst [vmem:[#allocation2 + $0x8] sm:$0xff] %v2169_v54  ;;  %v5525_v54 = vld [vmem:[#allocation2 + $0x64] sm:$0xf] }
 0x4de   : > { %2313 = vst [vmem:[#allocation2 + $0x78] sm:$0xff] %v2309_v60  ;;  %v2381_v17 = vpop.permute.xlu1 %2380  ;;  %v2371_v12 = vpop.permute.xlu2 %2370 }
 0x4df   : > { %v2235_v19 = vpop.permute.xlu0 %2234  ;;  %v2386_v24 = vsel %vm804_vm1, %v7215_v13, %v2381_v17  ;;  %v2390_v15 = vsel %vm804_vm1, %v2381_v17, %v7215_v13  ;;  %v4993_v17 = vor.u32 %v5525_v54, %v4990_v21 }
 0x4e0   : > { %v2240_v47 = vsel %vm652_vm5, %v7260_v20, %v2235_v19  ;;  %v2244_v29 = vsel %vm652_vm5, %v2235_v19, %v7260_v20  ;;  %v2402_v22 = vmul.f32 %v7429_v14, %v2386_v24  ;;  %v2403_v43 = vmul.f32 %v7431_v63, %v2390_v15 }
 0x4e1   : > { %v2256_v23 = vmul.f32 %v7327_v55, %v2244_v29  ;;  %v2257_v48 = vmul.f32 %v7329_v33, %v2240_v47 }
 0x4e2   : > { %v2408_v28 = vpack.c.bf16 %v2403_v43, %v2402_v22 }
 0x4e3   : > { %v2262_v50 = vpack.c.bf16 %v2257_v48, %v2256_v23  ;;  %v4996_v39 = vld [vmem:[#allocation2 + $0x70] sm:$0xf]  ;;  %v5527_v13 = vld [vmem:[#allocation2 + $0x74] sm:$0xf] }
 0x4e4   : > { %2412 = vst [vmem:[#allocation2 + $0xd0] sm:$0xff] %v2408_v28 }
 0x4e5   : > { %2266 = vst [vmem:[#allocation2 + $0x50] sm:$0xff] %v2262_v50  ;;  %v5528_v59 = vld [vmem:[#allocation2 + $0x74] sm:$0xf0]  ;;  %v4998_v3 = vld [vmem:[#allocation2 + $0x78] sm:$0xf0] }
 0x4e6   : > { %v2379_v36 = vpop.permute.xlu1 %2378  ;;  %v4997_v57 = vor.u32 %v5528_v59, %v4996_v39  ;;  %v5001_v5 = vor.u32 %v5527_v13, %v4998_v3  ;;  %v7449_v20 = vpop.permute.xlu2 %2326 }
 0x4e7   : > { %v2427_v35 = vpop.permute.xlu0 %2426  ;;  %v2385_v0 = vsel %vm804_vm1, %v2371_v12, %v2379_v36  ;;  %v2389_v37 = vsel %vm804_vm1, %v2379_v36, %v2371_v12 }
 0x4e8   : > { %v2432_v2 = vsel %vm852_vm3, %v7283_v11, %v2427_v35  ;;  %v2436_v56 = vsel %vm852_vm3, %v2427_v35, %v7283_v11  ;;  %v2400_v25 = vmul.f32 %v7429_v14, %v2385_v0  ;;  %v2401_v4 = vmul.f32 %v7431_v63, %v2389_v37  ;;  %2783 = vmatpush.bf16.msra.mxu2 %v4997_v57 }
 0x4e9   : > { %v2448_v26 = vmul.f32 %v7277_v16, %v2432_v2  ;;  %v2449_v45 = vmul.f32 %v7279_v40, %v2436_v56  ;;  %2840 = vmatpush.bf16.msra.mxu1 %v5001_v5 }
 0x4ea   : > { %v2407_v32 = vpack.c.bf16 %v2401_v4, %v2400_v25 }
 0x4eb   : > { %v2454_v60 = vpack.c.bf16 %v2449_v45, %v2448_v26  ;;  %v4972_v45 = vld [vmem:[#allocation2 + $0x40] sm:$0xf] }
 0x4ec   : > { %2411 = vst [vmem:[#allocation2 + $0xc8] sm:$0xff] %v2407_v32  ;;  %2784 = vmatpush.bf16.msra.mxu2 %v4989_v18  ;;  %v4980_v2 = vld [vmem:[#allocation2 + $0x50] sm:$0xf]  ;;  %v5523_v25 = vld [vmem:[#allocation2 + $0x54] sm:$0xf] }
 0x4ed   : > { %2458 = vst [vmem:[#allocation2 + $0xf0] sm:$0xff] %v2454_v60  ;;  %2841 = vmatpush.bf16.msra.mxu1 %v4993_v17 }
 0x4ee   : > { %v2237_v11 = vpop.permute.xlu1 %2236  ;;  %v2383_v12 = vpop.permute.xlu2 %2382 }
 0x4ef   : > { %v2143_v19 = vpop.permute.xlu0 %2142  ;;  %v2241_v24 = vsel %vm652_vm5, %v7225_v7, %v2237_v11  ;;  %v2245_v15 = vsel %vm652_vm5, %v2237_v11, %v7225_v7  ;;  %v2387_v47 = vsel %vm804_vm1, %v7333_v58, %v2383_v12  ;;  %v2391_v29 = vsel %vm804_vm1, %v2383_v12, %v7333_v58 }
 0x4f0   : > { %v2148_v22 = vsel %vm557_vm7, %v7306_v27, %v2143_v19  ;;  %v2152_v43 = vsel %vm557_vm7, %v2143_v19, %v7306_v27  ;;  %v2258_v23 = vmul.f32 %v7327_v55, %v2245_v15  ;;  %v2259_v7 = vmul.f32 %v7329_v33, %v2241_v24 }
 0x4f1   : > { %v2164_v48 = vmul.f32 %v7300_v46, %v2152_v43  ;;  %v2165_v28 = vmul.f32 %v7302_v44, %v2148_v22  ;;  %v2404_v50 = vmul.f32 %v7429_v14, %v2387_v47  ;;  %v2405_v58 = vmul.f32 %v7431_v63, %v2391_v29 }
 0x4f2   : > { %v2263_v39 = vpack.c.bf16 %v2259_v7, %v2258_v23  ;;  %v5542_v23 = vld [vmem:[#allocation2 + $0xe4] sm:$0xf0] }
 0x4f3   : > { %v2170_v13 = vpack.c.bf16 %v2165_v28, %v2164_v48  ;;  %v2409_v59 = vpack.c.bf16 %v2405_v58, %v2404_v50 }
 0x4f4   : > { %2267 = vst [vmem:[#allocation2 + $0x58] sm:$0xff] %v2263_v39  ;;  %v5060_v22 = vld [vmem:[#allocation2 + $0xf0] sm:$0xf] }
 0x4f5   : > { %2174 = vst [vmem:[#allocation2 + $0x10] sm:$0xff] %v2170_v13 }
 0x4f6   : > { %2413 = vst [vmem:[#allocation2 + $0xd8] sm:$0xff] %v2409_v59  ;;  %v2429_v3 = vpop.permute.xlu1 %2428 }
 0x4f7   : > { %v2377_v27 = vpop.permute.xlu0 %2376  ;;  %v2433_v55 = vsel %vm852_vm3, %v7235_v62, %v2429_v3  ;;  %v2437_v33 = vsel %vm852_vm3, %v2429_v3, %v7235_v62 }
 0x4f8   : > { %v2384_v36 = vsel %vm804_vm1, %v7213_v9, %v2377_v27  ;;  %v2388_v57 = vsel %vm804_vm1, %v2377_v27, %v7213_v9  ;;  %v2450_v5 = vmul.f32 %v7277_v16, %v2433_v55  ;;  %v2451_v35 = vmul.f32 %v7279_v40, %v2437_v33  ;;  %v5522_v16 = vld [vmem:[#allocation2 + $0x44] sm:$0xf0]  ;;  %v4974_v40 = vld [vmem:[#allocation2 + $0x48] sm:$0xf0] }
 0x4f9   : > { %v2398_v0 = vmul.f32 %v7429_v14, %v2384_v36  ;;  %v2399_v37 = vmul.f32 %v7431_v63, %v2388_v57  ;;  %v2337_v14 = vpop.permute.xlu2 %2336  ;;  %v4973_v54 = vor.u32 %v5522_v16, %v4972_v45  ;;  %v4977_v60 = vor.u32 %v5521_v31, %v4974_v40  ;;  %v4964_v57 = vld [vmem:[#allocation2 + $0x30] sm:$0xf]  ;;  %v5538_v45 = vld [vmem:[#allocation2 + $0xc4] sm:$0xf0] }
 0x4fa   : > { %v2455_v41 = vpack.c.bf16 %v2451_v35, %v2450_v5  ;;  %v5044_v5 = vld [vmem:[#allocation2 + $0xd0] sm:$0xf]  ;;  %v5519_v35 = vld [vmem:[#allocation2 + $0x34] sm:$0xf]  ;;  %v5518_v16 = vld [vmem:[#allocation2 + $0x24] sm:$0xf0] }
 0x4fb   : > { %v2406_v56 = vpack.c.bf16 %v2399_v37, %v2398_v0  ;;  %v5524_v62 = vld [vmem:[#allocation2 + $0x54] sm:$0xf0]  ;;  %v4982_v4 = vld [vmem:[#allocation2 + $0x58] sm:$0xf0] }
 0x4fc   : > { %2459 = vst [vmem:[#allocation2 + $0xf8] sm:$0xff] %v2455_v41  ;;  %v4981_v21 = vor.u32 %v5524_v62, %v4980_v2  ;;  %v4985_v26 = vor.u32 %v5523_v25, %v4982_v4  ;;  %v4956_v4 = vld [vmem:[#allocation2 + $0x20] sm:$0xf] }
 0x4fd   : > { %2410 = vst [vmem:[#allocation2 + $0xc0] sm:$0xff] %v2406_v56  ;;  %v5540_v33 = vld [vmem:[#allocation2 + $0xd4] sm:$0xf0] }
 0x4fe   : > { %v2145_v9 = vpop.permute.xlu1 %2144  ;;  %2785 = vmatpush.bf16.msra.mxu2 %v4981_v21  ;;  %2842 = vmatpush.bf16.msra.mxu1 %v4985_v26  ;;  %v5045_v37 = vor.u32 %v5540_v33, %v5044_v5  ;;  %v5517_v21 = vld [vmem:[#allocation2 + $0x24] sm:$0xf]  ;;  %v5054_v5 = vld [vmem:[#allocation2 + $0xe8] sm:$0xf0] }
 0x4ff   : > { %v2191_v32 = vpop.permute.xlu0 %2190  ;;  %v2149_v63 = vsel %vm557_vm7, %v7245_v51, %v2145_v9  ;;  %v2153_v18 = vsel %vm557_vm7, %v2145_v9, %v7245_v51  ;;  %v4906_v51 = vld [vmem:[%s8667_s9 + $0xa] sm:$0x3] }
 0x500   : > { %v2195_v17 = vsel %vm604_vm2, %v7331_v38, %v2191_v32  ;;  %v2199_v11 = vsel %vm604_vm2, %v2191_v32, %v7331_v38  ;;  %v2166_v12 = vmul.f32 %v7300_v46, %v2153_v18  ;;  %v2167_v19 = vmul.f32 %v7302_v44, %v2149_v63 }
 0x501   : > { %v2212_v24 = vmul.f32 %v7350_v1, %v2199_v11  ;;  %v2213_v15 = vmul.f32 %v7352_v6, %v2195_v17  ;;  %v7524_v38 = vperm.slane %v4906_v51, 0  ;;  %v7526_v46 = vperm.slane %v4906_v51, 1  ;;  %v5052_v6 = vld [vmem:[#allocation2 + $0xe0] sm:$0xf]  ;;  %v2331_v3 = vpop.permute.xlu2 %2330 }
 0x502   : > { %v2171_v47 = vpack.c.bf16 %v2167_v19, %v2166_v12  ;;  %2786 = vmatpush.bf16.msra.mxu2 %v4973_v54  ;;  %2843 = vmatpush.bf16.msra.mxu1 %v4977_v60  ;;  %v5053_v50 = vor.u32 %v5542_v23, %v5052_v6  ;;  %v4957_v18 = vor.u32 %v5518_v16, %v4956_v4  ;;  %v4942_v23 = vld [vmem:[#allocation2 + $0x8] sm:$0xf0]  ;;  %v5539_v16 = vld [vmem:[#allocation2 + $0xd4] sm:$0xf] }
 0x503   : > { %v2217_v29 = vpack.c.bf16 %v2213_v15, %v2212_v24  ;;  %v5544_v43 = vld [vmem:[#allocation2 + $0xf4] sm:$0xf0]  ;;  %v4948_v24 = vld [vmem:[#allocation2 + $0x10] sm:$0xf]  ;;  %v5062_v6 = vld [vmem:[#allocation2 + $0xf8] sm:$0xf0] }
 0x504   : > { %2175 = vst [vmem:[#allocation2 + $0x18] sm:$0xff] %v2171_v47  ;;  %v5061_v44 = vor.u32 %v5544_v43, %v5060_v22  ;;  %v5036_v62 = vld [vmem:[#allocation2 + $0xc0] sm:$0xf] }
 0x505   : > { %2221 = vst [vmem:[#allocation2 + $0x38] sm:$0xff] %v2217_v29  ;;  %v5037_v40 = vor.u32 %v5538_v45, %v5036_v62  ;;  %v5515_v29 = vld [vmem:[#allocation2 + $0x14] sm:$0xf] }
 0x506   : > { %2802 = vmatpush.bf16.msrb.mxu0 %v5061_v44  ;;  %5628 = vmatpush.bf16.msrb.mxu3 %v5061_v44  ;;  %v2335_v1 = vpop.permute.xlu1 %2334  ;;  %v5514_v44 = vld [vmem:[#allocation2 + $0x4] sm:$0xf0] }
 0x507   : > { %v2329_v7 = vpop.permute.xlu0 %2328  ;;  %v2340_v48 = vsel %vm756_vm6, %v7449_v20, %v2335_v1  ;;  %v2344_v28 = vsel %vm756_vm6, %v2335_v1, %v7449_v20 }
 0x508   : > { %v2341_v58 = vsel %vm756_vm6, %v2329_v7, %v2337_v14  ;;  %v2345_v39 = vsel %vm756_vm6, %v2337_v14, %v2329_v7  ;;  %v2356_v13 = vmul.f32 %v7524_v38, %v2340_v48  ;;  %v2357_v59 = vmul.f32 %v7526_v46, %v2344_v28  ;;  %v4958_v14 = vld [vmem:[#allocation2 + $0x28] sm:$0xf0]  ;;  %v4916_v7 = vld [vmem:[%s8661_s3 + $0x30] sm:$0xf]  ;;  %v5508_v48 = vld [vmem:[%s8661_s3 + $0x38] sm:$0xf0] }
 0x509   : > { %v2358_v27 = vmul.f32 %v7524_v38, %v2341_v58  ;;  %v2359_v55 = vmul.f32 %v7526_v46, %v2345_v39  ;;  %v4961_v54 = vor.u32 %v5517_v21, %v4958_v14  ;;  %v2467_v17 = vpop.permute.xlu2 %2466  ;;  %v4940_v58 = vld [vmem:[#allocation2] sm:$0xf] }
 0x50a   : > { %v2362_v36 = vpack.c.bf16 %v2357_v59, %v2356_v13  ;;  %2803 = vmatpush.bf16.msrb.mxu0 %v5053_v50  ;;  %5629 = vmatpush.bf16.msrb.mxu3 %v5053_v50  ;;  %v4941_v59 = vor.u32 %v5514_v44, %v4940_v58  ;;  %v5511_v44 = vld [vmem:[%s8661_s3 + $0x50] sm:$0xf0] }
 0x50b   : > { %v2363_v20 = vpack.c.bf16 %v2359_v55, %v2358_v27  ;;  %v5516_v60 = vld [vmem:[#allocation2 + $0x14] sm:$0xf0]  ;;  %v4950_v19 = vld [vmem:[#allocation2 + $0x18] sm:$0xf0]  ;;  %v5543_v27 = vld [vmem:[#allocation2 + $0xf4] sm:$0xf] }
 0x50c   : > { %2366 = vst [vmem:[#allocation2 + $0xb0] sm:$0xff] %v2362_v36  ;;  %v5520_v0 = vld [vmem:[#allocation2 + $0x34] sm:$0xf0]  ;;  %v4966_v41 = vld [vmem:[#allocation2 + $0x38] sm:$0xf0]  ;;  %v4949_v51 = vor.u32 %v5516_v60, %v4948_v24  ;;  %v4953_v43 = vor.u32 %v5515_v29, %v4950_v19  ;;  %v5065_v36 = vor.u32 %v5543_v27, %v5062_v6 }
 0x50d   : > { %2367 = vst [vmem:[#allocation2 + $0xb8] sm:$0xff] %v2363_v20  ;;  %v4965_v2 = vor.u32 %v5520_v0, %v4964_v57  ;;  %v4969_v56 = vor.u32 %v5519_v35, %v4966_v41  ;;  %v4909_v55 = vld [vmem:[%s8667_s9 + $0x10] sm:$0x3]  ;;  %v4917_v20 = vor.u32 %v5508_v48, %v4916_v7  ;;  %v5532_v19 = vld [vmem:[#allocation2 + $0x94] sm:$0xf0] }
 0x50e   : > { %v2325_v25 = vpop.permute.xlu1 %2324  ;;  %2804 = vmatpush.bf16.msrb.mxu0 %v5045_v37  ;;  %5630 = vmatpush.bf16.msrb.mxu3 %v5045_v37  ;;  %v2486_v35 = vperm.slane %v4909_v55, 0  ;;  %v2487_v0 = vperm.slane %v4909_v55, 1  ;;  %v4928_v24 = vld [vmem:[%s8661_s3 + $0x48] sm:$0xf]  ;;  %v5012_v48 = vld [vmem:[#allocation2 + $0x90] sm:$0xf] }
 0x50f   : > { %v2323_v26 = vpop.permute.xlu0 %2322  ;;  %2787 = vmatpush.bf16.msra.mxu2 %v4965_v2  ;;  %2844 = vmatpush.bf16.msra.mxu1 %v4969_v56  ;;  %v5013_v58 = vor.u32 %v5532_v19, %v5012_v48  ;;  %v4929_v27 = vor.u32 %v5511_v44, %v4928_v24  ;;  %v5004_v55 = vld [vmem:[#allocation2 + $0x80] sm:$0xf]  ;;  %v5512_v19 = vld [vmem:[%s8661_s3 + $0x58] sm:$0xf0] }
 0x510   : > { %v2338_v31 = vsel %vm756_vm6, %v2323_v26, %v2331_v3  ;;  %v2342_v9 = vsel %vm756_vm6, %v2331_v3, %v2323_v26  ;;  %v5513_v3 = vld [vmem:[#allocation2 + $0x4] sm:$0xf] }
 0x511   : > { %v2352_v32 = vmul.f32 %v7524_v38, %v2338_v31  ;;  %v2353_v63 = vmul.f32 %v7526_v46, %v2342_v9  ;;  %v4945_v33 = vor.u32 %v5513_v3, %v4942_v23 }
 0x512   : > { %2805 = vmatpush.bf16.msrb.mxu0 %v5037_v40  ;;  %5631 = vmatpush.bf16.msrb.mxu3 %v5037_v40 }
 0x513   : > { %v2360_v11 = vpack.c.bf16 %v2353_v63, %v2352_v32  ;;  %2788 = vmatpush.bf16.msra.mxu2 %v4957_v18  ;;  %2845 = vmatpush.bf16.msra.mxu1 %v4961_v54  ;;  %v5028_v12 = vld [vmem:[#allocation2 + $0xb0] sm:$0xf]  ;;  %v5537_v63 = vld [vmem:[#allocation2 + $0xc4] sm:$0xf] }
 0x514   : > { %v5536_v15 = vld [vmem:[#allocation2 + $0xb4] sm:$0xf0] }
 0x515   : > { %2364 = vst [vmem:[#allocation2 + $0xa0] sm:$0xff] %v2360_v11  ;;  %v5029_v47 = vor.u32 %v5536_v15, %v5028_v12 }
 0x516   : > { %v2465_v22 = vpop.permute.xlu1 %2464 }
 0x517   : > { %v2333_v1 = vpop.permute.xlu0 %2332  ;;  %2789 = vmatpush.bf16.msra.mxu2 %v4949_v51  ;;  %2806 = vmatpush.bf16.msrb.mxu0 %v5029_v47 }
 0x518   : > { %v2339_v28 = vsel %vm756_vm6, %v2325_v25, %v2333_v1  ;;  %v2343_v50 = vsel %vm756_vm6, %v2333_v1, %v2325_v25  ;;  %5632 = vmatpush.bf16.msrb.mxu3 %v5029_v47  ;;  %2846 = vmatpush.bf16.msra.mxu1 %v4953_v43  ;;  %v5046_v25 = vld [vmem:[#allocation2 + $0xd8] sm:$0xf0] }
 0x519   : > { %v2354_v39 = vmul.f32 %v7524_v38, %v2339_v28  ;;  %v2355_v13 = vmul.f32 %v7526_v46, %v2343_v50  ;;  %v2461_v38 = vpop.permute.xlu2 %2460  ;;  %v5541_v46 = vld [vmem:[#allocation2 + $0xe4] sm:$0xf]  ;;  %v5049_v14 = vor.u32 %v5539_v16, %v5046_v25  ;;  %v5030_v43 = vld [vmem:[#allocation2 + $0xb8] sm:$0xf0] }
 0x51a   : > { %v5057_v41 = vor.u32 %v5541_v46, %v5054_v5 }
 0x51b   : > { %v2361_v57 = vpack.c.bf16 %v2355_v13, %v2354_v39  ;;  %2790 = vmatpush.bf16.msra.mxu2 %v4941_v59  ;;  %v5530_v39 = vld [vmem:[#allocation2 + $0x84] sm:$0xf0]  ;;  %v5507_v13 = vld [vmem:[%s8661_s3 + $0x34] sm:$0xf] }
 0x51c   : > { %2847 = vmatpush.bf16.msra.mxu1 %v4945_v33  ;;  %v5020_v18 = vld [vmem:[#allocation2 + $0xa0] sm:$0xf] }
 0x51d   : > { %2365 = vst [vmem:[#allocation2 + $0xa8] sm:$0xff] %v2361_v57  ;;  %v4918_v33 = vld [vmem:[%s8661_s3 + $0x3c] sm:$0xf0] }
 0x51e   : > { %2791 = vmatmul.bf16.vlgmr.msra.gmra.mxu2 %v4917_v20  ;;  %v2475_v37 = vpop.permute.xlu1 %2474 }
 0x51f   : > { %2859 = vmatpush.bf16.msrb.mxu2 %v5065_v36  ;;  %2848 = vmatmul.bf16.vlgmr.msra.gmra.mxu1 %v4917_v20  ;;  %v2473_v2 = vpop.permute.xlu0 %2472  ;;  %v2479_v56 = vsel %vm900_vm8, %v2467_v17, %v2475_v37  ;;  %v2483_v62 = vsel %vm900_vm8, %v2475_v37, %v2467_v17  ;;  %v5038_v17 = vld [vmem:[#allocation2 + $0xc8] sm:$0xf0]  ;;  %v4930_v20 = vld [vmem:[%s8661_s3 + $0x54] sm:$0xf0]  ;;  %v5005_v37 = vor.u32 %v5530_v39, %v5004_v55 }
 0x520   : > { %v2478_v4 = vsel %vm900_vm8, %v2465_v22, %v2473_v2  ;;  %v2482_v21 = vsel %vm900_vm8, %v2473_v2, %v2465_v22  ;;  %v2496_v26 = vmul.f32 %v2486_v35, %v2479_v56  ;;  %v2497_v45 = vmul.f32 %v2487_v0, %v2483_v62  ;;  %v5535_v22 = vld [vmem:[#allocation2 + $0xb4] sm:$0xf]  ;;  %v5510_v36 = vld [vmem:[%s8661_s3 + $0x4c] sm:$0xf]  ;;  %v5533_v56 = vld [vmem:[#allocation2 + $0xa4] sm:$0xf] }
 0x521   : > { %v2494_v31 = vmul.f32 %v2486_v35, %v2478_v4  ;;  %v2495_v9 = vmul.f32 %v2487_v0, %v2482_v21  ;;  %v5041_v12 = vor.u32 %v5537_v63, %v5038_v17  ;;  %v2471_v15 = vpop.permute.xlu2 %2470  ;;  %v5033_v3 = vor.u32 %v5535_v22, %v5030_v43  ;;  %v5014_v21 = vld [vmem:[#allocation2 + $0x98] sm:$0xf0]  ;;  %v5509_v17 = vld [vmem:[%s8661_s3 + $0x40] sm:$0xf0] }
 0x522   : > { %v2501_v40 = vpack.c.bf16 %v2497_v45, %v2496_v26  ;;  %v4921_v62 = vor.u32 %v5507_v13, %v4918_v33  ;;  %v4933_v4 = vor.u32 %v5510_v36, %v4930_v20  ;;  %v5531_v26 = vld [vmem:[#allocation2 + $0x94] sm:$0xf] }
 0x523   : > { %2860 = vmatpush.bf16.msrb.mxu2 %v5057_v41  ;;  %v2500_v32 = vpack.c.bf16 %v2495_v9, %v2494_v31  ;;  %v5017_v45 = vor.u32 %v5531_v26, %v5014_v21 }
 0x524   : > { %2505 = vst [vmem:[#allocation2 + $0x118] sm:$0xff] %v2501_v40  ;;  %v5534_v54 = vld [vmem:[#allocation2 + $0xa4] sm:$0xf0] }
 0x525   : > { %2504 = vst [vmem:[#allocation2 + $0x110] sm:$0xff] %v2500_v32  ;;  %v5021_v60 = vor.u32 %v5534_v54, %v5020_v18  ;;  %v5529_v18 = vld [vmem:[#allocation2 + $0x84] sm:$0xf] }
 0x526   : > { %v2469_v11 = vpop.permute.xlu1 %2468 }
 0x527   : > { %2861 = vmatpush.bf16.msrb.mxu2 %v5049_v14  ;;  %v2463_v51 = vpop.permute.xlu0 %2462  ;;  %v2476_v47 = vsel %vm900_vm8, %v2461_v38, %v2469_v11  ;;  %v2480_v29 = vsel %vm900_vm8, %v2469_v11, %v2461_v38  ;;  %2807 = vmatpush.bf16.msrb.mxu0 %v5021_v60  ;;  %v5006_v14 = vld [vmem:[#allocation2 + $0x88] sm:$0xf0] }
 0x528   : > { %5633 = vmatpush.bf16.msrb.mxu3 %v5021_v60  ;;  %v2477_v23 = vsel %vm900_vm8, %v2463_v51, %v2471_v15  ;;  %v2481_v1 = vsel %vm900_vm8, %v2471_v15, %v2463_v51  ;;  %v2490_v6 = vmul.f32 %v2486_v35, %v2476_v47  ;;  %v2491_v7 = vmul.f32 %v2487_v0, %v2480_v29  ;;  %v4924_v60 = vld [vmem:[%s8661_s3 + $0x38] sm:$0xf] }
 0x529   : > { %v2492_v28 = vmul.f32 %v2486_v35, %v2477_v23  ;;  %v2493_v50 = vmul.f32 %v2487_v0, %v2481_v1  ;;  %v5022_v35 = vld [vmem:[#allocation2 + $0xa8] sm:$0xf0]  ;;  %v5009_v54 = vor.u32 %v5529_v18, %v5006_v14  ;;  %v4925_v11 = vor.u32 %v5509_v17, %v4924_v60  ;;  %v2550_v1 = vpop.permute.xlu2 %2549 }
 0x52a   : > { %v2498_v59 = vpack.c.bf16 %v2491_v7, %v2490_v6  ;;  %v5025_v25 = vor.u32 %v5533_v56, %v5022_v35 }
 0x52b   : > { %2862 = vmatpush.bf16.msrb.mxu2 %v5041_v12  ;;  %v2499_v57 = vpack.c.bf16 %v2493_v50, %v2492_v28  ;;  %2808 = vmatpush.bf16.msrb.mxu0 %v5013_v58  ;;  %v5548_v5 = vld [vmem:[#allocation2 + $0x114] sm:$0xf0]  ;;  %v5078_v0 = vld [vmem:[#allocation2 + $0x118] sm:$0xf0]  ;;  %v4936_v12 = vld [vmem:[%s8661_s3 + $0x50] sm:$0xf] }
 0x52c   : > { %5634 = vmatpush.bf16.msrb.mxu3 %v5013_v58  ;;  %2502 = vst [vmem:[#allocation2 + $0x100] sm:$0xff] %v2498_v59  ;;  %v5076_v38 = vld [vmem:[#allocation2 + $0x110] sm:$0xf]  ;;  %v5547_v46 = vld [vmem:[#allocation2 + $0x114] sm:$0xf]  ;;  %v4937_v24 = vor.u32 %v5512_v19, %v4936_v12 }
 0x52d   : > { %2503 = vst [vmem:[#allocation2 + $0x108] sm:$0xff] %v2499_v57  ;;  %v5077_v41 = vor.u32 %v5548_v5, %v5076_v38  ;;  %v5081_v2 = vor.u32 %v5547_v46, %v5078_v0 }
 0x52e   : > { %2796 = vmatmul.bf16.gmra.mxu2 %v4929_v27  ;;  %v2565_v18 = vpop.permute.xlu1 %2564 }
 0x52f   : > { %2863 = vmatpush.bf16.msrb.mxu2 %v5033_v3  ;;  %2853 = vmatmul.bf16.gmra.mxu1 %v4929_v27  ;;  %v2560_v7 = vpop.permute.xlu0 %2559 }
 0x530   : > { %2809 = vmatpush.bf16.msrb.mxu0 %v5005_v37  ;;  %5635 = vmatpush.bf16.msrb.mxu3 %v5005_v37 }
 0x533   : > { %2864 = vmatpush.bf16.msrb.mxu2 %v5025_v25  ;;  %2810 = vmatmul.bf16.vlgmr.msrb.gmra.mxu0 %v4921_v62  ;;  %v5068_v31 = vld [vmem:[#allocation2 + $0x100] sm:$0xf]  ;;  %v5545_v9 = vld [vmem:[#allocation2 + $0x104] sm:$0xf] }
 0x534   : > { %2827 = vmatpush.bf16.msra.mxu0 %v5077_v41  ;;  %2884 = vmatpush.bf16.msra.mxu3 %v5081_v2  ;;  %v5546_v16 = vld [vmem:[#allocation2 + $0x104] sm:$0xf0]  ;;  %v5070_v40 = vld [vmem:[#allocation2 + $0x108] sm:$0xf0] }
 0x535   : > { %2815 = vmatmul.bf16.vlgmr.msrb.gmra.mxu3 %v4933_v4  ;;  %v5069_v32 = vor.u32 %v5546_v16, %v5068_v31  ;;  %v5073_v63 = vor.u32 %v5545_v9, %v5070_v40 }
 0x537   : > { %2865 = vmatpush.bf16.msrb.mxu2 %v5017_v45  ;;  %v2555_v20 = vpop.permute.xlu0 %2554 }
 0x538   : > { %2828 = vmatpush.bf16.msra.mxu0 %v5069_v32  ;;  %2885 = vmatpush.bf16.msra.mxu3 %v5073_v63 }
 0x53b   : > { %2866 = vmatpush.bf16.msrb.mxu2 %v5009_v54 }
 0x53e   : > { %2867 = vmatmul.bf16.vlgmr.msrb.gmra.mxu2 %v4921_v62 }
 0x543   : > { %5082 = vmatmul.msk.bf16.vlgmr.msra.gmra.mxu0 %vm1202_vm9, %v4925_v11 }
 0x545   : > { %5084 = vmatmul.msk.bf16.vlgmr.msra.gmra.mxu3 %vm1202_vm9, %v4925_v11 }
 0x54e   : > { %2872 = vmatmul.bf16.gmra.mxu2 %v4933_v4 }
 0x553   : > { %5083 = vmatmul.msk.bf16.gmra.mxu0 %vm1202_vm9, %v4937_v24 }
 0x555   : > { %5085 = vmatmul.msk.bf16.gmra.mxu3 %vm1202_vm9, %v4937_v24 }
 0x59c   : > { %v2849_v23 = vpop.f32.mrf.mxu1 }
 0x59d   : > { %v2850_v59 = vadd.f32 %v2849_v23, %v2550_v1 }
 0x5a1   : > { %v2792_v15 = vpop.f32.mrf.mxu2 }
 0x5a2   : > { %v2793_v6 = vadd.f32 %v2792_v15, %v2550_v1 }
 0x5a4   : > { %v2851_v3 = vpop.f32.mrf.mxu1 }
 0x5a5   : > { %v2852_v0 = vadd.f32 %v2851_v3, %v2555_v20 }
 0x5a9   : > { %v2794_v51 = vpop.f32.mrf.mxu2 }
 0x5aa   : > { %v2795_v57 = vadd.f32 %v2794_v51, %v2555_v20 }
 0x5ac   : > { %v2854_v2 = vpop.f32.mrf.mxu1 }
 0x5ad   : > { %v2855_v31 = vadd.f32 %v2854_v2, %v2560_v7 }
 0x5b0   : > { %v2811_v47 = vpop.f32.mrf.mxu0 }
 0x5b1   : > { %v2797_v29 = vpop.f32.mrf.mxu2  ;;  %v2812_v48 = vadd.f32 %v2811_v47, %v2793_v6 }
 0x5b2   : > { %v2798_v4 = vadd.f32 %v2797_v29, %v2560_v7 }
 0x5b4   : > { %v2856_v54 = vpop.f32.mrf.mxu1 }
 0x5b5   : > { %v2857_v24 = vadd.f32 %v2856_v54, %v2565_v18 }
 0x5b8   : > { %v2816_v22 = vpop.f32.mrf.mxu3  ;;  %v2813_v43 = vpop.f32.mrf.mxu0 }
 0x5b9   : > { %v2799_v44 = vpop.f32.mrf.mxu2  ;;  %v2814_v38 = vadd.f32 %v2813_v43, %v2795_v57  ;;  %v2817_v9 = vadd.f32 %v2816_v22, %v2798_v4 }
 0x5ba   : > { %v2800_v60 = vadd.f32 %v2799_v44, %v2565_v18 }
 0x5c0   : > { %v2818_v28 = vpop.f32.mrf.mxu3  ;;  %v2830_v50 = vpop.f32.mrf.mxu0 }
 0x5c1   : > { %v2831_v58 = vadd.f32 %v2830_v50, %v2812_v48  ;;  %v2868_v39 = vpop.f32.mrf.mxu2  ;;  %v2819_v15 = vadd.f32 %v2818_v28, %v2800_v60 }
 0x5c2   : > { %v2869_v27 = vadd.f32 %v2868_v39, %v2850_v59 }
 0x5c3   : > { %v7613_v13 = vmax.f32 %v2831_v58, 0.0 }
 0x5c5   : > { %3152 = vrot.lane.b32.xlu2 %v7613_v13, %s5900_s7  ;;  %3198 = vrot.lane.b32.xlu1 %v7613_v13, %s5901_s19 }
 0x5c6   : > { %3052 = vrot.lane.b32.xlu0 %v7613_v13, %s5902_s23 }
 0x5c8   : > { %v2887_v55 = vpop.f32.mrf.mxu3  ;;  %v2832_v36 = vpop.f32.mrf.mxu0 }
 0x5c9   : > { %v2888_v33 = vadd.f32 %v2887_v55, %v2869_v27  ;;  %v2870_v35 = vpop.f32.mrf.mxu2  ;;  %v2833_v37 = vadd.f32 %v2832_v36, %v2814_v38 }
 0x5ca   : > { %v2871_v41 = vadd.f32 %v2870_v35, %v2852_v0  ;;  %v5088_v35 = vld [vmem:[%s8667_s9 + $0x6] sm:$0x3] }
 0x5cb   : > { %v7621_v5 = vmax.f32 %v2888_v33, 0.0  ;;  %v7631_v21 = vmax.f32 %v2833_v37, 0.0  ;;  %v7776_v0 = vperm.slane %v5088_v35, 0  ;;  %v7778_v38 = vperm.slane %v5088_v35, 1 }
 0x5cd   : > { %v3098_v46 = vpack.c.bf16 %v7621_v5, %v7613_v13  ;;  %2960 = vrot.lane.b32.xlu2 %v7613_v13, %s5903_s26  ;;  %3006 = vrot.lane.b32.xlu1 %v7613_v13, %s5904_s28 }
 0x5ce   : > { %3106 = vrot.lane.b32.xlu0 %v7613_v13, %s5905_s29 }
 0x5cf   : > { %3102 = vst [vmem:[#allocation2 + $0x80] sm:$0xff] %v3098_v46 }
 0x5d0   : > { %v2889_v56 = vpop.f32.mrf.mxu3  ;;  %v2835_v25 = vpop.f32.mrf.mxu0 }
 0x5d1   : > { %v2890_v62 = vadd.f32 %v2889_v56, %v2871_v41  ;;  %v2873_v45 = vpop.f32.mrf.mxu2  ;;  %v2836_v40 = vadd.f32 %v2835_v25, %v2817_v9 }
 0x5d2   : > { %v2874_v14 = vadd.f32 %v2873_v45, %v2855_v31 }
 0x5d3   : > { %v7633_v26 = vmax.f32 %v2890_v62, 0.0  ;;  %v7643_v17 = vmax.f32 %v2836_v40, 0.0 }
 0x5d5   : > { %v3099_v16 = vpack.c.bf16 %v7633_v26, %v7631_v21  ;;  %3200 = vrot.lane.b32.xlu2 %v7631_v21, %s5901_s19  ;;  %3054 = vrot.lane.b32.xlu1 %v7631_v21, %s5902_s23 }
 0x5d6   : > { %3154 = vrot.lane.b32.xlu0 %v7631_v21, %s5900_s7 }
 0x5d7   : > { %3103 = vst [vmem:[#allocation2 + $0x88] sm:$0xff] %v3099_v16  ;;  %v5089_v16 = vld [vmem:[%s8667_s9 + $0xa] sm:$0x3] }
 0x5d8   : > { %v2892_v32 = vpop.f32.mrf.mxu3  ;;  %v2837_v12 = vpop.f32.mrf.mxu0  ;;  %v7811_v40 = vperm.slane %v5089_v16, 0 }
 0x5d9   : > { %v2893_v63 = vadd.f32 %v2892_v32, %v2874_v14  ;;  %v2875_v19 = vpop.f32.mrf.mxu2  ;;  %v2838_v47 = vadd.f32 %v2837_v12, %v2819_v15  ;;  %v7813_v14 = vperm.slane %v5089_v16, 1  ;;  %v5096_v12 = vld [vmem:[%s8664_s6 + $0x38] sm:$0xff] }
 0x5da   : > { %v2876_v29 = vadd.f32 %v2875_v19, %v2857_v24  ;;  %v5091_v19 = vld [vmem:[%s8667_s9 + $0xe] sm:$0x3] }
 0x5db   : > { %v7645_v11 = vmax.f32 %v2893_v63, 0.0  ;;  %v7655_v44 = vmax.f32 %v2838_v47, 0.0  ;;  %v7847_v47 = vperm.slane %v5091_v19, 1 }
 0x5dd   : > { %v3100_v51 = vpack.c.bf16 %v7645_v11, %v7643_v17  ;;  %3008 = vrot.lane.b32.xlu2 %v7631_v21, %s5904_s28  ;;  %3108 = vrot.lane.b32.xlu1 %v7631_v21, %s5905_s29 }
 0x5de   : > { %2962 = vrot.lane.b32.xlu0 %v7631_v21, %s5903_s26 }
 0x5df   : > { %3104 = vst [vmem:[#allocation2 + $0x90] sm:$0xff] %v3100_v51  ;;  %v7845_v51 = vperm.slane %v5091_v19, 0 }
 0x5e0   : > { %v2894_v22 = vpop.f32.mrf.mxu3 }
 0x5e1   : > { %v2895_v43 = vadd.f32 %v2894_v22, %v2876_v29 }
 0x5e3   : > { %v7657_v23 = vmax.f32 %v2895_v43, 0.0 }
 0x5e5   : > { %v3101_v1 = vpack.c.bf16 %v7657_v23, %v7655_v44  ;;  %3202 = vrot.lane.b32.xlu2 %v7643_v17, %s5901_s19  ;;  %3056 = vrot.lane.b32.xlu1 %v7643_v17, %s5902_s23 }
 0x5e6   : > { %3156 = vrot.lane.b32.xlu0 %v7643_v17, %s5900_s7 }
 0x5e7   : > { %3105 = vst [vmem:[#allocation2 + $0x98] sm:$0xff] %v3101_v1 }
 0x5ed   : > { %3010 = vrot.lane.b32.xlu2 %v7643_v17, %s5904_s28  ;;  %3110 = vrot.lane.b32.xlu1 %v7643_v17, %s5905_s29 }
 0x5ee   : > { %2964 = vrot.lane.b32.xlu0 %v7643_v17, %s5903_s26 }
 0x5f5   : > { %3058 = vrot.lane.b32.xlu2 %v7655_v44, %s5902_s23  ;;  %3158 = vrot.lane.b32.xlu1 %v7655_v44, %s5900_s7 }
 0x5f6   : > { %3204 = vrot.lane.b32.xlu0 %v7655_v44, %s5901_s19 }
 0x5fd   : > { %3160 = vrot.lane.b32.xlu1 %v7621_v5, %s5900_s7  ;;  %3060 = vrot.lane.b32.xlu2 %v7621_v5, %s5902_s23 }
 0x5fe   : > { %3206 = vrot.lane.b32.xlu0 %v7621_v5, %s5901_s19 }
 0x605   : > { %2966 = vrot.lane.b32.xlu1 %v7655_v44, %s5903_s26  ;;  %3112 = vrot.lane.b32.xlu2 %v7655_v44, %s5905_s29 }
 0x606   : > { %3012 = vrot.lane.b32.xlu0 %v7655_v44, %s5904_s28 }
 0x60d   : > { %2968 = vrot.lane.b32.xlu1 %v7621_v5, %s5903_s26  ;;  %3114 = vrot.lane.b32.xlu2 %v7621_v5, %s5905_s29 }
 0x60e   : > { %3014 = vrot.lane.b32.xlu0 %v7621_v5, %s5904_s28 }
 0x615   : > { %3208 = vrot.lane.b32.xlu1 %v7633_v26, %s5901_s19  ;;  %3162 = vrot.lane.b32.xlu2 %v7633_v26, %s5900_s7 }
 0x616   : > { %3062 = vrot.lane.b32.xlu0 %v7633_v26, %s5902_s23 }
 0x61d   : > { %3016 = vrot.lane.b32.xlu1 %v7633_v26, %s5904_s28  ;;  %2970 = vrot.lane.b32.xlu2 %v7633_v26, %s5903_s26 }
 0x61e   : > { %3116 = vrot.lane.b32.xlu0 %v7633_v26, %s5905_s29 }
 0x61f   : > { %v7709_v6 = vpop.permute.xlu2 %3152 }
 0x625   : > { %3210 = vrot.lane.b32.xlu1 %v7645_v11, %s5901_s19  ;;  %3164 = vrot.lane.b32.xlu2 %v7645_v11, %s5900_s7 }
 0x626   : > { %3064 = vrot.lane.b32.xlu0 %v7645_v11, %s5902_s23 }
 0x627   : > { %v7717_v7 = vpop.permute.xlu2 %2960 }
 0x62d   : > { %3018 = vrot.lane.b32.xlu1 %v7645_v11, %s5904_s28  ;;  %2972 = vrot.lane.b32.xlu2 %v7645_v11, %s5903_s26 }
 0x62e   : > { %3118 = vrot.lane.b32.xlu0 %v7645_v11, %s5905_s29 }
 0x62f   : > { %v7725_v48 = vpop.permute.xlu2 %3200 }
 0x635   : > { %3066 = vrot.lane.b32.xlu1 %v7657_v23, %s5902_s23  ;;  %3212 = vrot.lane.b32.xlu2 %v7657_v23, %s5901_s19  ;;  %s425_s23 = sand.u32 1, %s5882_s18  }
 0x636   : > { %3166 = vrot.lane.b32.xlu0 %v7657_v23, %s5900_s7 }
 0x637   : > { %v7733_v28 = vpop.permute.xlu2 %3008  ;;  %v7735_v50 = vpop.permute.xlu1 %3198 }
 0x638   : > { %v3053_v58 = vpop.permute.xlu0 %3052 }
 0x63d   : > { %2918 = vrot.lane.b32.xlu1 %v7643_v17, %s5906_s13  ;;  %3020 = vrot.lane.b32.xlu2 %v7657_v23, %s5904_s28  ;;  %s4522_s28 = sshll.u32 %s425_s23, 4 }
 0x63e   : > { %2974 = vrot.lane.b32.xlu0 %v7657_v23, %s5903_s26  ;;  %s5627_s26 = sshll.u32 %s5997_s21, 4  ;;  %s4406_s21 = scalar_lea.sflag [#allocation5], %s425_s23 }
 0x63f   : > { %v7743_v39 = vpop.permute.xlu2 %3202  ;;  %v7745_v59 = vpop.permute.xlu1 %3006  ;;  %s4417_s5 = scalar_lea.hbm %s8669_s11, %s5627_s26 }
 0x640   : > { %v3107_v3 = vpop.permute.xlu0 %3106 }
 0x645   : > { %3120 = vrot.lane.b32.xlu1 %v7657_v23, %s5905_s29  ;;  %2920 = vrot.lane.b32.xlu2 %v7655_v44, %s5906_s13 }
 0x646   : > { %2926 = vrot.lane.b32.xlu0 %v7645_v11, %s5906_s13 }
 0x647   : > { %v7753_v27 = vpop.permute.xlu2 %3010  ;;  %v7755_v55 = vpop.permute.xlu1 %3054 }
 0x648   : > { %v3155_v33 = vpop.permute.xlu0 %3154 }
 0x64d   : > { %2928 = vrot.lane.b32.xlu1 %v7657_v23, %s5906_s13  ;;  %2914 = vrot.lane.b32.xlu2 %v7613_v13, %s5906_s13 }
 0x64e   : > { %2916 = vrot.lane.b32.xlu0 %v7631_v21, %s5906_s13 }
 0x64f   : > { %v7763_v36 = vpop.permute.xlu2 %3058  ;;  %v7765_v20 = vpop.permute.xlu1 %3108 }
 0x650   : > { %v7767_v57 = vpop.permute.xlu0 %2962 }
 0x655   : > { %2922 = vrot.lane.b32.xlu1 %v7621_v5, %s5906_s13  ;;  %2924 = vrot.lane.b32.xlu2 %v7633_v26, %s5906_s13 }
 0x656   : > { %3248 = vrot.lane.b32.xlu0 %v7643_v17, %s5907_s30  ;;  %v5095_v17 = vld [vmem:[%s8664_s6 + $0x30] sm:$0xff] }
 0x657   : > { %v7782_v46 = vpop.permute.xlu1 %3056  ;;  %v3061_v37 = vpop.permute.xlu2 %3060 }
 0x658   : > { %v7784_v41 = vpop.permute.xlu0 %3156  ;;  %v3068_v2 = vsel %vm700_vm4, %v3053_v58, %v3061_v37  ;;  %v3072_v56 = vsel %vm700_vm4, %v3061_v37, %v3053_v58 }
 0x659   : > { %v3082_v62 = vmul.f32 %v7776_v0, %v3072_v56  ;;  %v3083_v25 = vmul.f32 %v7778_v38, %v3068_v2 }
 0x65b   : > { %v3090_v4 = vpack.c.bf16 %v3083_v25, %v3082_v62  ;;  %v5093_v62 = vld [vmem:[%s8664_s6 + $0x20] sm:$0xff]  ;;  %v5094_v25 = vld [vmem:[%s8664_s6 + $0x28] sm:$0xff] }
 0x65d   : > { %3094 = vst [vmem:[#allocation2 + $0x60] sm:$0xff] %v3090_v4  ;;  %3250 = vrot.lane.b32.xlu1 %v7655_v44, %s5907_s30  ;;  %3256 = vrot.lane.b32.xlu2 %v7645_v11, %s5907_s30 }
 0x65e   : > { %3258 = vrot.lane.b32.xlu0 %v7657_v23, %s5907_s30 }
 0x65f   : > { %v7798_v45 = vpop.permute.xlu1 %3110  ;;  %v7800_v31 = vpop.permute.xlu2 %3112 }
 0x660   : > { %v7802_v9 = vpop.permute.xlu0 %2964 }
 0x665   : > { %3244 = vrot.lane.b32.xlu1 %v7613_v13, %s5907_s30  ;;  %3246 = vrot.lane.b32.xlu2 %v7631_v21, %s5907_s30 }
 0x666   : > { %3252 = vrot.lane.b32.xlu0 %v7621_v5, %s5907_s30  ;;  %v5090_v5 = vld [vmem:[%s8667_s9 + $0xc] sm:$0x3] }
 0x667   : > { %v7817_v32 = vpop.permute.xlu1 %3158  ;;  %v3115_v63 = vpop.permute.xlu2 %3114  ;;  %v7841_v24 = vperm.slane %v5090_v5, 0  ;;  %v7843_v15 = vperm.slane %v5090_v5, 1 }
 0x668   : > { %v7819_v18 = vpop.permute.xlu0 %3204  ;;  %v3122_v54 = vsel %vm756_vm6, %v3107_v3, %v3115_v63  ;;  %v3126_v13 = vsel %vm756_vm6, %v3115_v63, %v3107_v3 }
 0x669   : > { %v3136_v21 = vmul.f32 %v7811_v40, %v3122_v54  ;;  %v3137_v60 = vmul.f32 %v7813_v14, %v3126_v13 }
 0x66b   : > { %v3144_v11 = vpack.c.bf16 %v3137_v60, %v3136_v21 }
 0x66d   : > { %3148 = vst [vmem:[#allocation2 + $0xa0] sm:$0xff] %v3144_v11  ;;  %3254 = vrot.lane.b32.xlu1 %v7633_v26, %s5907_s30  ;;  %3343 = vperm.xlu2 %5729, %v5095_v17   ;;  %s5912_s30 = smov 1  }
 0x66e   : > { %3348 = vperm.xlu0 %5727, %v5096_v12  }
 0x66f   : > { %v3161_v29 = vpop.permute.xlu1 %3160  ;;  %v3163_v22 = vpop.permute.xlu2 %3162 }
 0x670   : > { %v3168_v43 = vsel %vm804_vm1, %v7709_v6, %v3161_v29  ;;  %v3172_v26 = vsel %vm804_vm1, %v3161_v29, %v7709_v6  ;;  %v3207_v44 = vpop.permute.xlu0 %3206  ;;  %v3169_v23 = vsel %vm804_vm1, %v3155_v33, %v3163_v22  ;;  %v3173_v1 = vsel %vm804_vm1, %v3163_v22, %v3155_v33  ;;  %v5087_v22 = vld [vmem:[%s8667_s9 + $0x4] sm:$0x3] }
 0x671   : > { %v3182_v58 = vmul.f32 %v7841_v24, %v3168_v43  ;;  %v3183_v3 = vmul.f32 %v7843_v15, %v3172_v26  ;;  %v3214_v35 = vsel %vm852_vm3, %v7735_v50, %v3207_v44  ;;  %v3218_v37 = vsel %vm852_vm3, %v3207_v44, %v7735_v50  ;;  %v5086_v50 = vld [vmem:[%s8667_s9 + $0x2] sm:$0x3] }
 0x672   : > { %v3228_v6 = vmul.f32 %v7845_v51, %v3214_v35  ;;  %v3229_v2 = vmul.f32 %v7847_v47, %v3218_v37  ;;  %v3184_v56 = vmul.f32 %v7841_v24, %v3169_v23  ;;  %v3185_v33 = vmul.f32 %v7843_v15, %v3173_v1 }
 0x673   : > { %v3190_v4 = vpack.c.bf16 %v3183_v3, %v3182_v58  ;;  %v7880_v54 = vperm.slane %v5086_v50, 0  ;;  %v7882_v13 = vperm.slane %v5086_v50, 1  ;;  %v7899_v43 = vperm.slane %v5087_v22, 0 }
 0x674   : > { %v3236_v16 = vpack.c.bf16 %v3229_v2, %v3228_v6  ;;  %v3191_v63 = vpack.c.bf16 %v3185_v33, %v3184_v56  ;;  %v7901_v26 = vperm.slane %v5087_v22, 1 }
 0x675   : > { %3194 = vst [vmem:[#allocation2 + $0xc0] sm:$0xff] %v3190_v4  ;;  %3333 = vperm.xlu1 %5728, %v5093_v62   ;;  %3338 = vperm.xlu2 %5729, %v5094_v25  }
 0x676   : > { %3240 = vst [vmem:[#allocation2 + $0xe0] sm:$0xff] %v3236_v16 }
 0x677   : > { %3195 = vst [vmem:[#allocation2 + $0xc8] sm:$0xff] %v3191_v63  ;;  %v7884_v21 = vpop.permute.xlu1 %2966  ;;  %v2971_v60 = vpop.permute.xlu2 %2970 }
 0x678   : > { %v7886_v17 = vpop.permute.xlu0 %3012  ;;  %v2977_v5 = vsel %vm604_vm2, %v7767_v57, %v2971_v60  ;;  %v2981_v11 = vsel %vm604_vm2, %v2971_v60, %v7767_v57 }
 0x679   : > { %v2992_v12 = vmul.f32 %v7880_v54, %v2981_v11  ;;  %v2993_v19 = vmul.f32 %v7882_v13, %v2977_v5 }
 0x67b   : > { %v2999_v29 = vpack.c.bf16 %v2993_v19, %v2992_v12 }
 0x67d   : > { %3003 = vst [vmem:[#allocation2 + $0x28] sm:$0xff] %v2999_v29 }
 0x67f   : > { %v2969_v44 = vpop.permute.xlu1 %2968  ;;  %v3165_v23 = vpop.permute.xlu2 %3164 }
 0x680   : > { %v2976_v57 = vsel %vm604_vm2, %v7717_v7, %v2969_v44  ;;  %v2980_v1 = vsel %vm604_vm2, %v2969_v44, %v7717_v7  ;;  %v3015_v58 = vpop.permute.xlu0 %3014  ;;  %v3170_v3 = vsel %vm804_vm1, %v7784_v41, %v3165_v23  ;;  %v3174_v35 = vsel %vm804_vm1, %v3165_v23, %v7784_v41 }
 0x681   : > { %v2990_v37 = vmul.f32 %v7880_v54, %v2980_v1  ;;  %v2991_v6 = vmul.f32 %v7882_v13, %v2976_v57  ;;  %v3022_v2 = vsel %vm652_vm5, %v7745_v59, %v3015_v58  ;;  %v3026_v7 = vsel %vm652_vm5, %v3015_v58, %v7745_v59 }
 0x682   : > { %v3036_v56 = vmul.f32 %v7899_v43, %v3026_v7  ;;  %v3037_v33 = vmul.f32 %v7901_v26, %v3022_v2  ;;  %v3186_v62 = vmul.f32 %v7841_v24, %v3170_v3  ;;  %v3187_v41 = vmul.f32 %v7843_v15, %v3174_v35 }
 0x683   : > { %v2998_v25 = vpack.c.bf16 %v2991_v6, %v2990_v37 }
 0x684   : > { %v3044_v50 = vpack.c.bf16 %v3037_v33, %v3036_v56  ;;  %v3192_v4 = vpack.c.bf16 %v3187_v41, %v3186_v62 }
 0x685   : > { %3002 = vst [vmem:[#allocation2 + $0x20] sm:$0xff] %v2998_v25 }
 0x686   : > { %3048 = vst [vmem:[#allocation2 + $0x40] sm:$0xff] %v3044_v50 }
 0x687   : > { %3196 = vst [vmem:[#allocation2 + $0xd0] sm:$0xff] %v3192_v4  ;;  %v3209_v16 = vpop.permute.xlu1 %3208  ;;  %v2973_v63 = vpop.permute.xlu2 %2972 }
 0x688   : > { %v3215_v59 = vsel %vm852_vm3, %v7725_v48, %v3209_v16  ;;  %v3219_v60 = vsel %vm852_vm3, %v3209_v16, %v7725_v48  ;;  %v3063_v5 = vpop.permute.xlu0 %3062  ;;  %v2978_v11 = vsel %vm604_vm2, %v7802_v9, %v2973_v63  ;;  %v2982_v12 = vsel %vm604_vm2, %v2973_v63, %v7802_v9 }
 0x689   : > { %v3230_v19 = vmul.f32 %v7845_v51, %v3215_v59  ;;  %v3231_v29 = vmul.f32 %v7847_v47, %v3219_v60  ;;  %v3069_v22 = vsel %vm700_vm4, %v7755_v55, %v3063_v5  ;;  %v3073_v48 = vsel %vm700_vm4, %v3063_v5, %v7755_v55 }
 0x68a   : > { %v3084_v44 = vmul.f32 %v7776_v0, %v3073_v48  ;;  %v3085_v23 = vmul.f32 %v7778_v38, %v3069_v22  ;;  %v2994_v57 = vmul.f32 %v7880_v54, %v2982_v12  ;;  %v2995_v9 = vmul.f32 %v7882_v13, %v2978_v11 }
 0x68b   : > { %v3237_v1 = vpack.c.bf16 %v3231_v29, %v3230_v19 }
 0x68c   : > { %v3091_v58 = vpack.c.bf16 %v3085_v23, %v3084_v44  ;;  %v3000_v3 = vpack.c.bf16 %v2995_v9, %v2994_v57 }
 0x68d   : > { %3241 = vst [vmem:[#allocation2 + $0xe8] sm:$0xff] %v3237_v1 }
 0x68e   : > { %3095 = vst [vmem:[#allocation2 + $0x68] sm:$0xff] %v3091_v58 }
 0x68f   : > { %3004 = vst [vmem:[#allocation2 + $0x30] sm:$0xff] %v3000_v3  ;;  %v3017_v35 = vpop.permute.xlu1 %3016  ;;  %v3213_v37 = vpop.permute.xlu2 %3212 }
 0x690   : > { %v3023_v55 = vsel %vm652_vm5, %v7733_v28, %v3017_v35  ;;  %v3027_v6 = vsel %vm652_vm5, %v3017_v35, %v7733_v28  ;;  %v3117_v2 = vpop.permute.xlu0 %3116  ;;  %v3217_v7 = vsel %vm852_vm3, %v7819_v18, %v3213_v37  ;;  %v3221_v56 = vsel %vm852_vm3, %v3213_v37, %v7819_v18 }
 0x691   : > { %v3038_v33 = vmul.f32 %v7899_v43, %v3027_v6  ;;  %v3039_v62 = vmul.f32 %v7901_v26, %v3023_v55  ;;  %v3123_v41 = vsel %vm756_vm6, %v7765_v20, %v3117_v2  ;;  %v3127_v28 = vsel %vm756_vm6, %v3117_v2, %v7765_v20 }
 0x692   : > { %v3138_v25 = vmul.f32 %v7811_v40, %v3123_v41  ;;  %v3139_v50 = vmul.f32 %v7813_v14, %v3127_v28  ;;  %v3234_v4 = vmul.f32 %v7845_v51, %v3217_v7  ;;  %v3235_v18 = vmul.f32 %v7847_v47, %v3221_v56 }
 0x693   : > { %v3045_v16 = vpack.c.bf16 %v3039_v62, %v3038_v33 }
 0x694   : > { %v3145_v63 = vpack.c.bf16 %v3139_v50, %v3138_v25  ;;  %v3239_v59 = vpack.c.bf16 %v3235_v18, %v3234_v4  ;;  %v5584_v28 = vld [vmem:[#allocation2 + $0xe4] sm:$0xf0]  ;;  %v5235_v25 = vld [vmem:[#allocation2 + $0xe0] sm:$0xf] }
 0x695   : > { %3049 = vst [vmem:[#allocation2 + $0x48] sm:$0xff] %v3045_v16  ;;  %v5236_v18 = vor.u32 %v5584_v28, %v5235_v25 }
 0x696   : > { %3149 = vst [vmem:[#allocation2 + $0xa8] sm:$0xff] %v3145_v63 }
 0x697   : > { %3243 = vst [vmem:[#allocation2 + $0xf8] sm:$0xff] %v3239_v59  ;;  %v3211_v60 = vpop.permute.xlu1 %3210  ;;  %v3021_v5 = vpop.permute.xlu2 %3020 }
 0x698   : > { %v3216_v20 = vsel %vm852_vm3, %v7743_v39, %v3211_v60  ;;  %v3220_v11 = vsel %vm852_vm3, %v3211_v60, %v7743_v39  ;;  %v3065_v12 = vpop.permute.xlu0 %3064  ;;  %v3025_v19 = vsel %vm652_vm5, %v7886_v17, %v3021_v5  ;;  %v3029_v29 = vsel %vm652_vm5, %v3021_v5, %v7886_v17 }
 0x699   : > { %v3232_v22 = vmul.f32 %v7845_v51, %v3216_v20  ;;  %v3233_v48 = vmul.f32 %v7847_v47, %v3220_v11  ;;  %v3070_v44 = vsel %vm700_vm4, %v7782_v46, %v3065_v12  ;;  %v3074_v39 = vsel %vm700_vm4, %v3065_v12, %v7782_v46 }
 0x69a   : > { %v3086_v23 = vmul.f32 %v7776_v0, %v3074_v39  ;;  %v3087_v57 = vmul.f32 %v7778_v38, %v3070_v44  ;;  %v3042_v9 = vmul.f32 %v7899_v43, %v3029_v29  ;;  %v3043_v17 = vmul.f32 %v7901_v26, %v3025_v19 }
 0x69b   : > { %v3238_v1 = vpack.c.bf16 %v3233_v48, %v3232_v22  ;;  %v2938_v22 = vld [vmem:[%s8667_s9] sm:$0x3]  ;;  %v5227_v48 = vld [vmem:[#allocation2 + $0xd0] sm:$0xf] }
 0x69c   : > { %v3092_v51 = vpack.c.bf16 %v3087_v57, %v3086_v23  ;;  %v3047_v58 = vpack.c.bf16 %v3043_v17, %v3042_v9 }
 0x69d   : > { %3242 = vst [vmem:[#allocation2 + $0xf0] sm:$0xff] %v3238_v1 }
 0x69e   : > { %3096 = vst [vmem:[#allocation2 + $0x70] sm:$0xff] %v3092_v51  ;;  %v5586_v41 = vld [vmem:[#allocation2 + $0xf4] sm:$0xf0] }
 0x69f   : > { %3051 = vst [vmem:[#allocation2 + $0x58] sm:$0xff] %v3047_v58  ;;  %v3019_v47 = vpop.permute.xlu1 %3018  ;;  %v8029_v5 = vpop.permute.xlu2 %2920  ;;  %v5173_v58 = vld [vmem:[#allocation2 + $0x68] sm:$0xf0] }
 0x6a0   : > { %v3024_v3 = vsel %vm652_vm5, %v7753_v27, %v3019_v47  ;;  %v3028_v46 = vsel %vm652_vm5, %v3019_v47, %v7753_v27  ;;  %v3119_v35 = vpop.permute.xlu0 %3118 }
 0x6a1   : > { %v3040_v37 = vmul.f32 %v7899_v43, %v3028_v46  ;;  %v3041_v55 = vmul.f32 %v7901_v26, %v3024_v3  ;;  %v3124_v6 = vsel %vm756_vm6, %v7798_v45, %v3119_v35  ;;  %v3128_v2 = vsel %vm756_vm6, %v3119_v35, %v7798_v45  ;;  %v5171_v3 = vld [vmem:[#allocation2 + $0x60] sm:$0xf] }
 0x6a2   : > { %v3140_v7 = vmul.f32 %v7811_v40, %v3124_v6  ;;  %v3141_v56 = vmul.f32 %v7813_v14, %v3128_v2  ;;  %v5219_v35 = vld [vmem:[#allocation2 + $0xc0] sm:$0xf] }
 0x6a3   : > { %v3046_v33 = vpack.c.bf16 %v3041_v55, %v3040_v37  ;;  %v5580_v37 = vld [vmem:[#allocation2 + $0xc4] sm:$0xf0]  ;;  %v5567_v55 = vld [vmem:[#allocation2 + $0x64] sm:$0xf] }
 0x6a4   : > { %v3146_v62 = vpack.c.bf16 %v3141_v56, %v3140_v7  ;;  %v5243_v27 = vld [vmem:[#allocation2 + $0xf0] sm:$0xf]  ;;  %v5220_v25 = vor.u32 %v5580_v37, %v5219_v35  ;;  %v5576_v35 = vld [vmem:[#allocation2 + $0xa4] sm:$0xf0] }
 0x6a5   : > { %3050 = vst [vmem:[#allocation2 + $0x50] sm:$0xff] %v3046_v33  ;;  %v5244_v43 = vor.u32 %v5586_v41, %v5243_v27  ;;  %v5569_v57 = vld [vmem:[#allocation2 + $0x74] sm:$0xf]  ;;  %v5176_v33 = vor.u32 %v5567_v55, %v5173_v58 }
 0x6a6   : > { %3150 = vst [vmem:[#allocation2 + $0xb0] sm:$0xff] %v3146_v62 }
 0x6a7   : > { %v3067_v26 = vpop.permute.xlu1 %3066  ;;  %3586 = vmatpush.bf16.msrb.mxu1 %v5244_v43  ;;  %v8044_v44 = vpop.permute.xlu2 %2914 }
 0x6a8   : > { %v3071_v50 = vsel %vm700_vm4, %v7763_v36, %v3067_v26  ;;  %v3075_v45 = vsel %vm700_vm4, %v3067_v26, %v7763_v36  ;;  %v3167_v4 = vpop.permute.xlu0 %3166 }
 0x6a9   : > { %v3088_v16 = vmul.f32 %v7776_v0, %v3075_v45  ;;  %v3089_v63 = vmul.f32 %v7778_v38, %v3071_v50  ;;  %v3171_v59 = vsel %vm804_vm1, %v7817_v32, %v3167_v4  ;;  %v3175_v60 = vsel %vm804_vm1, %v3167_v4, %v7817_v32 }
 0x6aa   : > { %v3188_v20 = vmul.f32 %v7841_v24, %v3171_v59  ;;  %v3189_v36 = vmul.f32 %v7843_v15, %v3175_v60  ;;  %v5179_v15 = vld [vmem:[#allocation2 + $0x70] sm:$0xf]  ;;  %v5157_v59 = vld [vmem:[#allocation2 + $0x48] sm:$0xf0]  ;;  %vm4058_vm1 = vcmp.lt.s32.totalorder %v6195_v49, 111 }
 0x6ab   : > { %v3093_v11 = vpack.c.bf16 %v3089_v63, %v3088_v16  ;;  %3587 = vmatpush.bf16.msrb.mxu1 %v5236_v18  ;;  %v5564_v63 = vld [vmem:[#allocation2 + $0x44] sm:$0xf0] }
 0x6ac   : > { %v3193_v12 = vpack.c.bf16 %v3189_v36, %v3188_v20  ;;  %v5565_v50 = vld [vmem:[#allocation2 + $0x54] sm:$0xf]  ;;  %v5155_v36 = vld [vmem:[#allocation2 + $0x40] sm:$0xf]  ;;  %v3698_v49 = vld [vmem:[#allocation6 + $0x8] sm:$0xf] }
 0x6ad   : > { %3097 = vst [vmem:[#allocation2 + $0x78] sm:$0xff] %v3093_v11  ;;  %v5563_v11 = vld [vmem:[#allocation2 + $0x44] sm:$0xf] }
 0x6ae   : > { %3197 = vst [vmem:[#allocation2 + $0xd8] sm:$0xff] %v3193_v12 }
 0x6af   : > { %v2919_v0 = vpop.permute.xlu1 %2918  ;;  %v2925_v60 = vpop.permute.xlu2 %2924 }
 0x6b0   : > { %v2975_v38 = vpop.permute.xlu0 %2974 }
 0x6b1   : > { %v2979_v19 = vsel %vm604_vm2, %v7884_v21, %v2975_v38  ;;  %v2983_v32 = vsel %vm604_vm2, %v2975_v38, %v7884_v21  ;;  %v5568_v21 = vld [vmem:[#allocation2 + $0x64] sm:$0xf0] }
 0x6b2   : > { %v2996_v29 = vmul.f32 %v7880_v54, %v2983_v32  ;;  %v2997_v24 = vmul.f32 %v7882_v13, %v2979_v19  ;;  %v8046_v54 = vperm.slane %v2938_v22, 0  ;;  %v8048_v13 = vperm.slane %v2938_v22, 1 }
 0x6b3   : > { %v5172_v56 = vor.u32 %v5568_v21, %v5171_v3  ;;  %v5156_v19 = vor.u32 %v5564_v63, %v5155_v36  ;;  %v5160_v32 = vor.u32 %v5563_v11, %v5157_v59  ;;  %v5211_v21 = vld [vmem:[#allocation2 + $0xb0] sm:$0xf] }
 0x6b4   : > { %v3001_v39 = vpack.c.bf16 %v2997_v24, %v2996_v29  ;;  %v5570_v23 = vld [vmem:[#allocation2 + $0x74] sm:$0xf0]  ;;  %v5181_v9 = vld [vmem:[#allocation2 + $0x78] sm:$0xf0] }
 0x6b5   : > { %v5180_v17 = vor.u32 %v5570_v23, %v5179_v15  ;;  %v5184_v1 = vor.u32 %v5569_v57, %v5181_v9  ;;  %v5582_v51 = vld [vmem:[#allocation2 + $0xd4] sm:$0xf0] }
 0x6b6   : > { %3005 = vst [vmem:[#allocation2 + $0x38] sm:$0xff] %v3001_v39  ;;  %v5228_v47 = vor.u32 %v5582_v51, %v5227_v48  ;;  %v5147_v51 = vld [vmem:[#allocation2 + $0x30] sm:$0xf] }
 0x6b7   : > { %v3121_v46 = vpop.permute.xlu1 %3120  ;;  %3567 = vmatpush.bf16.msrb.mxu0 %v5180_v17  ;;  %3624 = vmatpush.bf16.msrb.mxu3 %v5184_v1  ;;  %v5139_v17 = vld [vmem:[#allocation2 + $0x20] sm:$0xf] }
 0x6b8   : > { %v3125_v6 = vsel %vm756_vm6, %v7800_v31, %v3121_v46  ;;  %v3129_v2 = vsel %vm756_vm6, %v3121_v46, %v7800_v31  ;;  %v2927_v7 = vpop.permute.xlu0 %2926  ;;  %3588 = vmatpush.bf16.msrb.mxu1 %v5228_v47  ;;  %v5163_v31 = vld [vmem:[#allocation2 + $0x50] sm:$0xf]  ;;  %v5561_v46 = vld [vmem:[#allocation2 + $0x34] sm:$0xf] }
 0x6b9   : > { %v3142_v62 = vmul.f32 %v7811_v40, %v3125_v6  ;;  %v3143_v27 = vmul.f32 %v7813_v14, %v3129_v2  ;;  %v2932_v41 = vsel %vm557_vm7, %v2919_v0, %v2927_v7  ;;  %v2936_v43 = vsel %vm557_vm7, %v2927_v7, %v2919_v0  ;;  %v5566_v40 = vld [vmem:[#allocation2 + $0x54] sm:$0xf0]  ;;  %v5165_v14 = vld [vmem:[#allocation2 + $0x58] sm:$0xf0]  ;;  %v5560_v7 = vld [vmem:[#allocation2 + $0x24] sm:$0xf0] }
 0x6ba   : > { %v2948_v28 = vmul.f32 %v8046_v54, %v2936_v43  ;;  %v2949_v26 = vmul.f32 %v8048_v13, %v2932_v41  ;;  %v5164_v18 = vor.u32 %v5566_v40, %v5163_v31  ;;  %v5168_v16 = vor.u32 %v5565_v50, %v5165_v14 }
 0x6bb   : > { %v3147_v45 = vpack.c.bf16 %v3143_v27, %v3142_v62  ;;  %3568 = vmatpush.bf16.msrb.mxu0 %v5172_v56  ;;  %3625 = vmatpush.bf16.msrb.mxu3 %v5176_v33  ;;  %v5203_v56 = vld [vmem:[#allocation2 + $0xa0] sm:$0xf]  ;;  %v5559_v33 = vld [vmem:[#allocation2 + $0x24] sm:$0xf]  ;;  %v3257_v62 = vpop.permute.xlu2 %3256 }
 0x6bc   : > { %v2954_v4 = vpack.c.bf16 %v2949_v26, %v2948_v28  ;;  %3589 = vmatpush.bf16.msrb.mxu1 %v5220_v25  ;;  %v5140_v28 = vor.u32 %v5560_v7, %v5139_v17  ;;  %v5204_v26 = vor.u32 %v5576_v35, %v5203_v56  ;;  %v5099_v17 = vld [vmem:[#allocation3 + $0x30] sm:$0xf]  ;;  %v5245_v35 = vld [vmem:[#allocation2 + $0xf8] sm:$0xf0]  ;;  %v5237_v56 = vld [vmem:[#allocation2 + $0xe8] sm:$0xf0] }
 0x6bd   : > { %3151 = vst [vmem:[#allocation2 + $0xb8] sm:$0xff] %v3147_v45  ;;  %v5562_v23 = vld [vmem:[#allocation2 + $0x34] sm:$0xf0]  ;;  %v5149_v9 = vld [vmem:[#allocation2 + $0x38] sm:$0xf0] }
 0x6be   : > { %2958 = vst [vmem:[#allocation2 + $0x10] sm:$0xff] %v2954_v4  ;;  %v5148_v47 = vor.u32 %v5562_v23, %v5147_v51  ;;  %v5152_v6 = vor.u32 %v5561_v46, %v5149_v9  ;;  %v5141_v4 = vld [vmem:[#allocation2 + $0x28] sm:$0xf0] }
 0x6bf   : > { %v2929_v20 = vpop.permute.xlu1 %2928  ;;  %3569 = vmatpush.bf16.msrb.mxu0 %v5164_v18  ;;  %3626 = vmatpush.bf16.msrb.mxu3 %v5168_v16  ;;  %v5574_v18 = vld [vmem:[#allocation2 + $0x94] sm:$0xf0] }
 0x6c0   : > { %v2933_v12 = vsel %vm557_vm7, %v8029_v5, %v2929_v20  ;;  %v2937_v0 = vsel %vm557_vm7, %v2929_v20, %v8029_v5  ;;  %v2917_v38 = vpop.permute.xlu0 %2916  ;;  %v5092_v5 = vld [vmem:[%s8667_s9 + $0x10] sm:$0x3] }
 0x6c1   : > { %v2950_v29 = vmul.f32 %v8046_v54, %v2937_v0  ;;  %v2951_v24 = vmul.f32 %v8048_v13, %v2933_v12  ;;  %v2931_v15 = vsel %vm557_vm7, %v2917_v38, %v2925_v60  ;;  %v2935_v22 = vsel %vm557_vm7, %v2925_v60, %v2917_v38  ;;  %v5572_v0 = vld [vmem:[#allocation2 + $0x84] sm:$0xf0] }
 0x6c2   : > { %v2946_v48 = vmul.f32 %v8046_v54, %v2935_v22  ;;  %v2947_v39 = vmul.f32 %v8048_v13, %v2931_v15  ;;  %v8081_v37 = vperm.slane %v5092_v5, 0  ;;  %v8083_v55 = vperm.slane %v5092_v5, 1 }
 0x6c3   : > { %v2955_v57 = vpack.c.bf16 %v2951_v24, %v2950_v29  ;;  %3570 = vmatpush.bf16.msrb.mxu0 %v5156_v19  ;;  %3627 = vmatpush.bf16.msrb.mxu3 %v5160_v32  ;;  %v5549_v19 = vld [vmem:[#allocation3 + $0x34] sm:$0xf]  ;;  %v5101_v32 = vld [vmem:[#allocation3 + $0x3c] sm:$0xf0] }
 0x6c4   : > { %v2953_v1 = vpack.c.bf16 %v2947_v39, %v2946_v48  ;;  %v5578_v58 = vld [vmem:[#allocation2 + $0xb4] sm:$0xf0]  ;;  %v5187_v24 = vld [vmem:[#allocation2 + $0x80] sm:$0xf]  ;;  %v8105_v5 = vor.u32 %v5549_v19, %v5101_v32 }
 0x6c5   : > { %2959 = vst [vmem:[#allocation2 + $0x18] sm:$0xff] %v2955_v57  ;;  %v5212_v3 = vor.u32 %v5578_v58, %v5211_v21  ;;  %v5131_v63 = vld [vmem:[#allocation2 + $0x10] sm:$0xf]  ;;  %v5557_v60 = vld [vmem:[#allocation2 + $0x14] sm:$0xf]  ;;  %v5188_v48 = vor.u32 %v5572_v0, %v5187_v24 }
 0x6c6   : > { %2957 = vst [vmem:[#allocation2 + $0x8] sm:$0xff] %v2953_v1  ;;  %v5585_v57 = vld [vmem:[#allocation2 + $0xf4] sm:$0xf]  ;;  %v5550_v1 = vld [vmem:[#allocation3 + $0x38] sm:$0xf0] }
 0x6c7   : > { %v2923_v2 = vpop.permute.xlu1 %2922  ;;  %3571 = vmatpush.bf16.msrb.mxu0 %v5148_v47  ;;  %3590 = vmatpush.bf16.msrb.mxu1 %v5212_v3  ;;  %v5553_v24 = vld [vmem:[#allocation3 + $0x50] sm:$0xf0] }
 0x6c8   : > { %v2930_v27 = vsel %vm557_vm7, %v8044_v44, %v2923_v2  ;;  %v2934_v41 = vsel %vm557_vm7, %v2923_v2, %v8044_v44  ;;  %v3249_v43 = vpop.permute.xlu0 %3248  ;;  %3628 = vmatpush.bf16.msrb.mxu3 %v5152_v6  ;;  %v5144_v44 = vor.u32 %v5559_v33, %v5141_v4  ;;  %v5248_v6 = vor.u32 %v5585_v57, %v5245_v35  ;;  %v5197_v57 = vld [vmem:[#allocation2 + $0x98] sm:$0xf0] }
 0x6c9   : > { %v2944_v25 = vmul.f32 %v8046_v54, %v2934_v41  ;;  %v2945_v31 = vmul.f32 %v8048_v13, %v2930_v27  ;;  %v3262_v50 = vsel %vm900_vm8, %v3249_v43, %v3257_v62  ;;  %v3266_v45 = vsel %vm900_vm8, %v3257_v62, %v3249_v43  ;;  %v5195_v54 = vld [vmem:[#allocation2 + $0x90] sm:$0xf]  ;;  %v5583_v41 = vld [vmem:[#allocation2 + $0xe4] sm:$0xf] }
 0x6ca   : > { %v3278_v40 = vmul.f32 %v8081_v37, %v3262_v50  ;;  %v3279_v14 = vmul.f32 %v8083_v55, %v3266_v45  ;;  %v5196_v11 = vor.u32 %v5574_v18, %v5195_v54  ;;  %v5100_v2 = vor.u32 %v5550_v1, %v5099_v17  ;;  %v5229_v50 = vld [vmem:[#allocation2 + $0xd8] sm:$0xf0]  ;;  %v5581_v18 = vld [vmem:[#allocation2 + $0xd4] sm:$0xf]  ;;  %v5107_v17 = vld [vmem:[#allocation3 + $0x38] sm:$0xf] }
 0x6cb   : > { %v2952_v16 = vpack.c.bf16 %v2945_v31, %v2944_v25  ;;  %3572 = vmatpush.bf16.msrb.mxu0 %v5140_v28  ;;  %3591 = vmatpush.bf16.msrb.mxu1 %v5204_v26  ;;  %v5240_v26 = vor.u32 %v5583_v41, %v5237_v56  ;;  %v5232_v54 = vor.u32 %v5581_v18, %v5229_v50  ;;  %v5551_v1 = vld [vmem:[#allocation3 + $0x40] sm:$0xf0] }
 0x6cc   : > { %v3284_v59 = vpack.c.bf16 %v3279_v14, %v3278_v40  ;;  %3629 = vmatpush.bf16.msrb.mxu3 %v5144_v44  ;;  %v5558_v13 = vld [vmem:[#allocation2 + $0x14] sm:$0xf0]  ;;  %v5133_v20 = vld [vmem:[#allocation2 + $0x18] sm:$0xf0]  ;;  %v5108_v35 = vor.u32 %v5551_v1, %v5107_v17 }
 0x6cd   : > { %2956 = vst [vmem:[#allocation2] sm:$0xff] %v2952_v16  ;;  %v5132_v36 = vor.u32 %v5558_v13, %v5131_v63  ;;  %v5136_v12 = vor.u32 %v5557_v60, %v5133_v20  ;;  %v5556_v9 = vld [vmem:[#allocation2 + $0x4] sm:$0xf0]  ;;  %v5125_v47 = vld [vmem:[#allocation2 + $0x8] sm:$0xf0]  ;;  %v3247_v16 = vpop.permute.xlu2 %3246 }
 0x6ce   : > { %3288 = vst [vmem:[#allocation2 + $0x110] sm:$0xff] %v3284_v59  ;;  %v5552_v59 = vld [vmem:[#allocation3 + $0x4c] sm:$0xf]  ;;  %v5113_v13 = vld [vmem:[#allocation3 + $0x54] sm:$0xf0] }
 0x6cf   : > { %v3251_v38 = vpop.permute.xlu1 %3250  ;;  %3573 = vmatpush.bf16.msrb.mxu0 %v5132_v36  ;;  %3592 = vmatpush.bf16.msrb.mxu1 %v5196_v11  ;;  %v5579_v36 = vld [vmem:[#allocation2 + $0xc4] sm:$0xf]  ;;  %v5221_v11 = vld [vmem:[#allocation2 + $0xc8] sm:$0xf0] }
 0x6d0   : > { %v3259_v29 = vpop.permute.xlu0 %3258  ;;  %3630 = vmatpush.bf16.msrb.mxu3 %v5136_v12  ;;  %v5224_v32 = vor.u32 %v5579_v36, %v5221_v11 }
 0x6d1   : > { %v3263_v15 = vsel %vm900_vm8, %v3251_v38, %v3259_v29  ;;  %v3267_v22 = vsel %vm900_vm8, %v3259_v29, %v3251_v38  ;;  %v5116_v38 = vor.u32 %v5552_v59, %v5113_v13  ;;  %v5111_v29 = vld [vmem:[#allocation3 + $0x48] sm:$0xf] }
 0x6d2   : > { %v3280_v39 = vmul.f32 %v8081_v37, %v3263_v15  ;;  %v3281_v23 = vmul.f32 %v8083_v55, %v3267_v22  ;;  %v5213_v15 = vld [vmem:[#allocation2 + $0xb8] sm:$0xf0]  ;;  %v5577_v22 = vld [vmem:[#allocation2 + $0xb4] sm:$0xf] }
 0x6d3   : > { %3593 = vmatpush.bf16.msrb.mxu1 %v5188_v48  ;;  %v5112_v48 = vor.u32 %v5553_v24, %v5111_v29 }
 0x6d4   : > { %v3285_v51 = vpack.c.bf16 %v3281_v23, %v3280_v39  ;;  %v5123_v21 = vld [vmem:[#allocation2] sm:$0xf]  ;;  %v5555_v58 = vld [vmem:[#allocation2 + $0x4] sm:$0xf]  ;;  %v5216_v39 = vor.u32 %v5577_v22, %v5213_v15  ;;  %v5205_v23 = vld [vmem:[#allocation2 + $0xa8] sm:$0xf0] }
 0x6d5   : > { %v5124_v3 = vor.u32 %v5556_v9, %v5123_v21  ;;  %v5128_v46 = vor.u32 %v5555_v58, %v5125_v47  ;;  %v5259_v31 = vld [vmem:[#allocation2 + $0x110] sm:$0xf]  ;;  %v5589_v4 = vld [vmem:[#allocation2 + $0x114] sm:$0xf] }
 0x6d6   : > { %3289 = vst [vmem:[#allocation2 + $0x118] sm:$0xff] %v3285_v51  ;;  %3594 = vmatmul.bf16.vlgmr.msrb.gmra.mxu1 %v8105_v5 }
 0x6d7   : > { %v3245_v7 = vpop.permute.xlu1 %3244  ;;  %3574 = vmatpush.bf16.msrb.mxu0 %v5124_v3  ;;  %3631 = vmatpush.bf16.msrb.mxu3 %v5128_v46  ;;  %v5573_v46 = vld [vmem:[#allocation2 + $0x94] sm:$0xf] }
 0x6d8   : > { %v3253_v33 = vpop.permute.xlu0 %3252 }
 0x6d9   : > { %v3260_v62 = vsel %vm900_vm8, %v3245_v7, %v3253_v33  ;;  %v3264_v27 = vsel %vm900_vm8, %v3253_v33, %v3245_v7  ;;  %v5571_v7 = vld [vmem:[#allocation2 + $0x84] sm:$0xf]  ;;  %v5119_v33 = vld [vmem:[#allocation3 + $0x50] sm:$0xf] }
 0x6da   : > { %v3274_v43 = vmul.f32 %v8081_v37, %v3260_v62  ;;  %v3275_v28 = vmul.f32 %v8083_v55, %v3264_v27  ;;  %3575 = vmatmul.bf16.vlgmr.msrb.gmra.mxu0 %v5100_v2  ;;  %3632 = vmatmul.bf16.vlgmr.msrb.gmra.mxu3 %v5100_v2  ;;  %v5189_v2 = vld [vmem:[#allocation2 + $0x88] sm:$0xf0]  ;;  %v5554_v62 = vld [vmem:[#allocation3 + $0x58] sm:$0xf0] }
 0x6db   : > { %3643 = vmatpush.bf16.msra.mxu0 %v5248_v6  ;;  %v5200_v6 = vor.u32 %v5573_v46, %v5197_v57  ;;  %v5192_v56 = vor.u32 %v5571_v7, %v5189_v2  ;;  %v5120_v27 = vor.u32 %v5554_v62, %v5119_v33 }
 0x6dc   : > { %v3282_v25 = vpack.c.bf16 %v3275_v28, %v3274_v43 }
 0x6dd   : > { %v5590_v45 = vld [vmem:[#allocation2 + $0x114] sm:$0xf0]  ;;  %v5261_v40 = vld [vmem:[#allocation2 + $0x118] sm:$0xf0] }
 0x6de   : > { %3286 = vst [vmem:[#allocation2 + $0x100] sm:$0xff] %v3282_v25  ;;  %v5260_v14 = vor.u32 %v5590_v45, %v5259_v31  ;;  %v5264_v44 = vor.u32 %v5589_v4, %v5261_v40  ;;  %v3344_v45 = vpop.permute.xlu2 %3343 }
 0x6df   : > { %3644 = vmatpush.bf16.msra.mxu0 %v5240_v26  ;;  %v3255_v63 = vpop.permute.xlu1 %3254 }
 0x6e0   : > { %v3261_v60 = vsel %vm900_vm8, %v3247_v16, %v3255_v63  ;;  %v3265_v20 = vsel %vm900_vm8, %v3255_v63, %v3247_v16  ;;  %3611 = vmatpush.bf16.msra.mxu2 %v5260_v14  ;;  %3668 = vmatpush.bf16.msra.mxu1 %v5264_v44 }
 0x6e1   : > { %v3276_v12 = vmul.f32 %v8081_v37, %v3261_v60  ;;  %v3277_v0 = vmul.f32 %v8083_v55, %v3265_v20  ;;  %v5575_v37 = vld [vmem:[#allocation2 + $0xa4] sm:$0xf] }
 0x6e2   : > { %v5208_v55 = vor.u32 %v5575_v37, %v5205_v23 }
 0x6e3   : > { %3645 = vmatpush.bf16.msra.mxu0 %v5232_v54  ;;  %v3283_v19 = vpack.c.bf16 %v3277_v0, %v3276_v12 }
 0x6e5   : > { %3287 = vst [vmem:[#allocation2 + $0x108] sm:$0xff] %v3283_v19  ;;  %v5251_v9 = vld [vmem:[#allocation2 + $0x100] sm:$0xf]  ;;  %v5587_v21 = vld [vmem:[#allocation2 + $0x104] sm:$0xf] }
 0x6e6   : > { %3599 = vmatmul.bf16.gmra.mxu1 %v5116_v38  ;;  %v3339_v63 = vpop.permute.xlu2 %3338 }
 0x6e7   : > { %3646 = vmatpush.bf16.msra.mxu0 %v5224_v32  ;;  %v3334_v40 = vpop.permute.xlu1 %3333 }
 0x6ea   : > { %3580 = vmatmul.bf16.gmra.mxu0 %v5112_v48  ;;  %3637 = vmatmul.bf16.gmra.mxu3 %v5112_v48 }
 0x6eb   : > { %3647 = vmatpush.bf16.msra.mxu0 %v5216_v39 }
 0x6ec   : > { %v5588_v51 = vld [vmem:[#allocation2 + $0x104] sm:$0xf0]  ;;  %v5253_v58 = vld [vmem:[#allocation2 + $0x108] sm:$0xf0] }
 0x6ed   : > { %v5252_v47 = vor.u32 %v5588_v51, %v5251_v9  ;;  %v5256_v3 = vor.u32 %v5587_v21, %v5253_v58 }
 0x6ef   : > { %3648 = vmatpush.bf16.msra.mxu0 %v5208_v55  ;;  %3612 = vmatpush.bf16.msra.mxu2 %v5252_v47  ;;  %v3349_v47 = vpop.permute.xlu0 %3348 }
 0x6f0   : > { %3669 = vmatpush.bf16.msra.mxu1 %v5256_v3 }
 0x6f2   : > { %5265 = vmatmul.msk.bf16.vlgmr.msra.gmra.mxu2 %vm1202_vm9, %v5108_v35 }
 0x6f3   : > { %3649 = vmatpush.bf16.msra.mxu0 %v5200_v6 }
 0x6f6   : > { %5267 = vmatmul.msk.bf16.vlgmr.msra.gmra.mxu1 %vm1202_vm9, %v5108_v35 }
 0x6f7   : > { %3650 = vmatpush.bf16.msra.mxu0 %v5192_v56 }
 0x6fa   : > { %3651 = vmatmul.bf16.vlgmr.msra.gmra.mxu0 %v8105_v5 }
 0x702   : > { %5266 = vmatmul.msk.bf16.gmra.mxu2 %vm1202_vm9, %v5120_v27 }
 0x706   : > { %5268 = vmatmul.msk.bf16.gmra.mxu1 %vm1202_vm9, %v5120_v27 }
 0x70a   : > { %3656 = vmatmul.bf16.gmra.mxu0 %v5116_v38 }
 0x753   : > { %v3595_v41 = vpop.f32.mrf.mxu1 }
 0x757   : > { %v3576_v43 = vpop.f32.mrf.mxu0 }
 0x758   : > { %v3577_v5 = vadd.f32 %v3576_v43, %v3334_v40 }
 0x75a   : > { %v3596_v18 = vadd.f32 %v3595_v41, %v3577_v5 }
 0x75b   : > { %v3597_v28 = vpop.f32.mrf.mxu1 }
 0x75d   : > { %v3633_v4 = vpop.f32.mrf.mxu3 }
 0x75e   : > { %v3634_v54 = vadd.f32 %v3633_v4, %v3334_v40 }
 0x75f   : > { %v3578_v26 = vpop.f32.mrf.mxu0 }
 0x760   : > { %v3579_v20 = vadd.f32 %v3578_v26, %v3339_v63 }
 0x762   : > { %v3598_v19 = vadd.f32 %v3597_v28, %v3579_v20 }
 0x763   : > { %v3600_v25 = vpop.f32.mrf.mxu1 }
 0x765   : > { %v3635_v13 = vpop.f32.mrf.mxu3 }
 0x766   : > { %v3636_v29 = vadd.f32 %v3635_v13, %v3339_v63 }
 0x767   : > { %v3581_v31 = vpop.f32.mrf.mxu0 }
 0x768   : > { %v3582_v48 = vadd.f32 %v3581_v31, %v3344_v45 }
 0x76a   : > { %v3601_v9 = vadd.f32 %v3600_v25, %v3582_v48 }
 0x76b   : > { %v3602_v50 = vpop.f32.mrf.mxu1 }
 0x76d   : > { %v3638_v37 = vpop.f32.mrf.mxu3 }
 0x76e   : > { %v3639_v51 = vadd.f32 %v3638_v37, %v3344_v45 }
 0x76f   : > { %v3583_v14 = vpop.f32.mrf.mxu0 }
 0x773   : > { %v3671_v44 = vpop.f32.mrf.mxu1 }
 0x775   : > { %v3614_v16 = vpop.f32.mrf.mxu2  ;;  %v3640_v7 = vpop.f32.mrf.mxu3 }
 0x776   : > { %v3615_v59 = vadd.f32 %v3614_v16, %v3596_v18  ;;  %v3641_v27 = vadd.f32 %v3640_v7, %v3349_v47 }
 0x777   : > { %v3652_v60 = vpop.f32.mrf.mxu0 }
 0x778   : > { %v3681_v36 = vadd.f32 %v3615_v59, %v7086_v52  ;;  %v3653_v11 = vadd.f32 %v3652_v60, %v3634_v54 }
 0x77a   : > { %v8126_v12 = vmax.f32 %v3681_v36, 0.0  ;;  %v3672_v0 = vadd.f32 %v3671_v44, %v3653_v11 }
 0x77b   : > { %v3673_v38 = vpop.f32.mrf.mxu1 }
 0x77c   : > { %v3682_v32 = vadd.f32 %v3672_v0, %v7095_v42  ;;  %3898 = vrot.lane.b32.xlu0 %v8126_v12, %s5908_s15  ;;  %3946 = vrot.lane.b32.xlu2 %v8126_v12, %s5909_s24 }
 0x77d   : > { %3994 = vrot.lane.b32.xlu1 %v8126_v12, %s5910_s25  ;;  %v3616_v52 = vpop.f32.mrf.mxu2 }
 0x77e   : > { %v8135_v24 = vmax.f32 %v3682_v32, 0.0  ;;  %v3617_v15 = vadd.f32 %v3616_v52, %v3598_v19  ;;  %v3924_v52 = vld [vmem:[#allocation8 + $0xa] sm:$0x3] }
 0x77f   : > { %v3654_v22 = vpop.f32.mrf.mxu0 }
 0x780   : > { %v3890_v42 = vpack.c.bf16 %v8135_v24, %v8126_v12  ;;  %v3683_v39 = vadd.f32 %v3617_v15, %v7100_v30  ;;  %v3655_v23 = vadd.f32 %v3654_v22, %v3636_v29  ;;  %v8306_v29 = vperm.slane %v3924_v52, 0 }
 0x781   : > { %v8308_v15 = vperm.slane %v3924_v52, 1 }
 0x782   : > { %3894 = vst [vmem:[#allocation2 + $0x80] sm:$0xff] %v3890_v42  ;;  %v8140_v57 = vmax.f32 %v3683_v39, 0.0  ;;  %v3674_v55 = vadd.f32 %v3673_v38, %v3655_v23 }
 0x783   : > { %v3676_v1 = vpop.f32.mrf.mxu1 }
 0x784   : > { %v3684_v17 = vadd.f32 %v3674_v55, %v7109_v34  ;;  %3948 = vrot.lane.b32.xlu0 %v8140_v57, %s5909_s24  ;;  %3794 = vrot.lane.b32.xlu2 %v8126_v12, %s5911_s12  ;;  %v3584_v34 = vadd.f32 %v3583_v14, %v3349_v47 }
 0x785   : > { %3842 = vrot.lane.b32.xlu1 %v8126_v12, %s5912_s30  ;;  %v3619_v30 = vpop.f32.mrf.mxu2 }
 0x786   : > { %v8149_v21 = vmax.f32 %v3684_v17, 0.0  ;;  %v3620_v58 = vadd.f32 %v3619_v30, %v3601_v9  ;;  %v3603_v56 = vadd.f32 %v3602_v50, %v3584_v34  ;;  %v3972_v9 = vld [vmem:[#allocation8 + $0xc] sm:$0x3] }
 0x787   : > { %v3657_v3 = vpop.f32.mrf.mxu0  ;;  %v8327_v30 = vperm.slane %v3972_v9, 0 }
 0x788   : > { %v3891_v46 = vpack.c.bf16 %v8149_v21, %v8140_v57  ;;  %v3658_v35 = vadd.f32 %v3657_v3, %v3639_v51  ;;  %v3685_v6 = vadd.f32 %v3620_v58, %v7114_v61 }
 0x78a   : > { %3895 = vst [vmem:[#allocation2 + $0x88] sm:$0xff] %v3891_v46  ;;  %v3677_v2 = vadd.f32 %v3676_v1, %v3658_v35  ;;  %v8161_v41 = vmax.f32 %v3685_v6, 0.0  ;;  %v8329_v1 = vperm.slane %v3972_v9, 1  ;;  %v3820_v46 = vld [vmem:[#allocation8 + $0x4] sm:$0x3] }
 0x78b   : > { %v3678_v26 = vpop.f32.mrf.mxu1  ;;  %v8349_v6 = vperm.slane %v3820_v46, 0 }
 0x78c   : > { %v3686_v33 = vadd.f32 %v3677_v2, %v7123_v8  ;;  %3796 = vrot.lane.b32.xlu0 %v8140_v57, %s5911_s12  ;;  %3746 = vrot.lane.b32.xlu2 %v8126_v12, %s5913_s14  ;;  %v8351_v2 = vperm.slane %v3820_v46, 1  ;;  %v3868_v46 = vld [vmem:[#allocation8 + $0x6] sm:$0x3] }
 0x78d   : > { %3900 = vrot.lane.b32.xlu1 %v8140_v57, %s5908_s15  ;;  %v3621_v62 = vpop.f32.mrf.mxu2 }
 0x78e   : > { %v8163_v61 = vmax.f32 %v3686_v33, 0.0  ;;  %v3622_v43 = vadd.f32 %v3621_v62, %v3603_v56 }
 0x78f   : > { %v3659_v28 = vpop.f32.mrf.mxu0 }
 0x790   : > { %v3892_v8 = vpack.c.bf16 %v8163_v61, %v8161_v41  ;;  %v3660_v25 = vadd.f32 %v3659_v28, %v3641_v27  ;;  %v3687_v31 = vadd.f32 %v3622_v43, %v7135_v10 }
 0x792   : > { %3896 = vst [vmem:[#allocation2 + $0x90] sm:$0xff] %v3892_v8  ;;  %v3679_v50 = vadd.f32 %v3678_v26, %v3660_v25  ;;  %v8175_v4 = vmax.f32 %v3687_v31, 0.0 }
 0x794   : > { %v3688_v45 = vadd.f32 %v3679_v50, %v7137_v53  ;;  %3748 = vrot.lane.b32.xlu0 %v8140_v57, %s5913_s14  ;;  %3996 = vrot.lane.b32.xlu2 %v8140_v57, %s5910_s25 }
 0x795   : > { %3902 = vrot.lane.b32.xlu1 %v8161_v41, %s5908_s15 }
 0x796   : > { %v8177_v40 = vmax.f32 %v3688_v45, 0.0 }
 0x798   : > { %v3893_v14 = vpack.c.bf16 %v8177_v40, %v8175_v4 }
 0x79a   : > { %3897 = vst [vmem:[#allocation2 + $0x98] sm:$0xff] %v3893_v14  ;;  %v4020_v14 = vld [vmem:[#allocation8 + $0xe] sm:$0x3] }
 0x79c   : > { %3998 = vrot.lane.b32.xlu0 %v8161_v41, %s5910_s25  ;;  %3844 = vrot.lane.b32.xlu2 %v8140_v57, %s5912_s30 }
 0x79d   : > { %3750 = vrot.lane.b32.xlu1 %v8161_v41, %s5913_s14 }
 0x7a4   : > { %3950 = vrot.lane.b32.xlu0 %v8161_v41, %s5909_s24  ;;  %3846 = vrot.lane.b32.xlu2 %v8161_v41, %s5912_s30 }
 0x7a5   : > { %4000 = vrot.lane.b32.xlu1 %v8175_v4, %s5910_s25 }
 0x7ac   : > { %3798 = vrot.lane.b32.xlu0 %v8161_v41, %s5911_s12  ;;  %3904 = vrot.lane.b32.xlu2 %v8175_v4, %s5908_s15 }
 0x7ad   : > { %3952 = vrot.lane.b32.xlu1 %v8175_v4, %s5909_s24 }
 0x7b4   : > { %3703 = vrot.lane.b32.xlu0 %v8161_v41, %s5914_s16  ;;  %3752 = vrot.lane.b32.xlu2 %v8175_v4, %s5913_s14 }
 0x7b5   : > { %3800 = vrot.lane.b32.xlu1 %v8175_v4, %s5911_s12 }
 0x7bc   : > { %3848 = vrot.lane.b32.xlu0 %v8175_v4, %s5912_s30  ;;  %3906 = vrot.lane.b32.xlu2 %v8135_v24, %s5908_s15 }
 0x7bd   : > { %3705 = vrot.lane.b32.xlu1 %v8175_v4, %s5914_s16 }
 0x7c4   : > { %3956 = vrot.lane.b32.xlu2 %v8149_v21, %s5909_s24  ;;  %4002 = vrot.lane.b32.xlu0 %v8135_v24, %s5910_s25 }
 0x7c5   : > { %3954 = vrot.lane.b32.xlu1 %v8135_v24, %s5909_s24 }
 0x7cc   : > { %3804 = vrot.lane.b32.xlu2 %v8149_v21, %s5911_s12  ;;  %3850 = vrot.lane.b32.xlu0 %v8135_v24, %s5912_s30 }
 0x7cd   : > { %3802 = vrot.lane.b32.xlu1 %v8135_v24, %s5911_s12 }
 0x7d4   : > { %3756 = vrot.lane.b32.xlu2 %v8149_v21, %s5913_s14  ;;  %3908 = vrot.lane.b32.xlu0 %v8149_v21, %s5908_s15 }
 0x7d5   : > { %3754 = vrot.lane.b32.xlu1 %v8135_v24, %s5913_s14 }
 0x7d6   : > { %v8229_v10 = vpop.permute.xlu2 %3946 }
 0x7dc   : > { %4006 = vrot.lane.b32.xlu2 %v8163_v61, %s5910_s25  ;;  %3910 = vrot.lane.b32.xlu0 %v8163_v61, %s5908_s15 }
 0x7dd   : > { %4004 = vrot.lane.b32.xlu1 %v8149_v21, %s5910_s25 }
 0x7de   : > { %v8237_v53 = vpop.permute.xlu2 %3794 }
 0x7e4   : > { %3958 = vrot.lane.b32.xlu2 %v8163_v61, %s5909_s24  ;;  %3758 = vrot.lane.b32.xlu0 %v8163_v61, %s5913_s14 }
 0x7e5   : > { %3852 = vrot.lane.b32.xlu1 %v8149_v21, %s5912_s30 }
 0x7e6   : > { %v8245_v5 = vpop.permute.xlu2 %3746 }
 0x7ec   : > { %3806 = vrot.lane.b32.xlu2 %v8163_v61, %s5911_s12  ;;  %4008 = vrot.lane.b32.xlu0 %v8177_v40, %s5910_s25  ;;  %s4421_s25 = sshll.u32 %s4417_s5, 4  ;;  %s4422_s25 = int_to_ptr.hbm [resolvable:$true] %s4421_s25 }
 0x7ed   : > { %3854 = vrot.lane.b32.xlu1 %v8163_v61, %s5912_s30 }
 0x7ee   : > { %v3899_v44 = vpop.permute.xlu0 %3898  ;;  %v8253_v18 = vpop.permute.xlu2 %3996 }
 0x7ef   : > { %v8255_v16 = vpop.permute.xlu1 %3994 }
 0x7f4   : > { %3856 = vrot.lane.b32.xlu2 %v8177_v40, %s5912_s30  ;;  %3707 = vrot.lane.b32.xlu0 %v8135_v24, %s5914_s16 }
 0x7f5   : > { %3699 = vrot.lane.b32.xlu1 %v8126_v12, %s5914_s16 }
 0x7f6   : > { %v3949_v63 = vpop.permute.xlu0 %3948  ;;  %v8263_v54 = vpop.permute.xlu2 %3844 }
 0x7f7   : > { %v8265_v59 = vpop.permute.xlu1 %3842 }
 0x7fc   : > { %3711 = vrot.lane.b32.xlu2 %v8163_v61, %s5914_s16  ;;  %3960 = vrot.lane.b32.xlu0 %v8177_v40, %s5909_s24 }
 0x7fd   : > { %3912 = vrot.lane.b32.xlu1 %v8177_v40, %s5908_s15  ;;  %s427_s15 = scalar_lea.vmem [#allocation9], %s4522_s28 }
 0x7fe   : > { %v3797_v13 = vpop.permute.xlu0 %3796  ;;  %v8273_v60 = vpop.permute.xlu2 %3846  ;;  %s4419_s24 = sshll.u32 %s427_s15, 4  ;;  %s4420_s24 = int_to_ptr.vmem [resolvable:$true] %s4419_s24 }
 0x7ff   : > { %v8275_v20 = vpop.permute.xlu1 %3900 }
 0x804   : > { %3701 = vrot.lane.b32.xlu2 %v8140_v57, %s5914_s16  ;;  %3808 = vrot.lane.b32.xlu0 %v8177_v40, %s5911_s12  ;;  %s5834_s12 = sshra.s32 %s4422_s25, 4  ;;  %s5835_s12 = int_to_ptr.hbm [resolvable:$true] %s5834_s12 }
 0x805   : > { %3760 = vrot.lane.b32.xlu1 %v8177_v40, %s5913_s14  ;;  %s5836_s30 = scalar_lea.hbm %s5835_s12, 16  ;;  %p5841_p3 = scmp.lt.s32.totalorder %s5835_s12, %s8669_s11 }
 0x806   : > { %v8283_v36 = vpop.permute.xlu0 %3748  ;;  %v8285_v11 = vpop.permute.xlu2 %3904  ;;  %p5837_p0 = scmp.ne.s32.totalorder %s5835_s12, %s5836_s30 }
 0x807   : > { %v8287_v0 = vpop.permute.xlu1 %3902 }
 0x808   : > { %p5838_p1 = pnand %p5837_p0, %p6014_p5 }
 0x80a   : > { %p5839_p2 = pneg %p5838_p1 }
 0x80c   : > { %4046 = vrot.lane.b32.xlu2 %v8161_v41, %s5915_s22  ;;  %4048 = vrot.lane.b32.xlu0 %v8175_v4, %s5915_s22 }
 0x80d   : > { %3709 = vrot.lane.b32.xlu1 %v8149_v21, %s5914_s16 }
 0x80e   : > { %v8295_v38 = vpop.permute.xlu0 %3998  ;;  %v8297_v19 = vpop.permute.xlu2 %3752 }
 0x80f   : > { %v8299_v32 = vpop.permute.xlu1 %3750 }
 0x814   : > { %4056 = vrot.lane.b32.xlu2 %v8177_v40, %s5915_s22  ;;  %3713 = vrot.lane.b32.xlu0 %v8177_v40, %s5914_s16 }
 0x815   : > { %4054 = vrot.lane.b32.xlu1 %v8163_v61, %s5915_s22  ;;  %v3772_v61 = vld [vmem:[#allocation8 + $0x2] sm:$0x3] }
 0x816   : > { %v8312_v22 = vpop.permute.xlu0 %3950  ;;  %v3907_v48 = vpop.permute.xlu2 %3906  ;;  %v8364_v28 = vperm.slane %v3772_v61, 0  ;;  %v8366_v26 = vperm.slane %v3772_v61, 1 }
 0x817   : > { %v8314_v42 = vpop.permute.xlu1 %4000  ;;  %v3915_v39 = vsel %vm3914_vm10, %v3899_v44, %v3907_v48  ;;  %v3919_v23 = vsel %vm3914_vm10, %v3907_v48, %v3899_v44 }
 0x818   : > { %v3930_v37 = vmul.f32 %v8306_v29, %v3915_v39  ;;  %v3931_v55 = vmul.f32 %v8308_v15, %v3919_v23 }
 0x81a   : > { %v3938_v17 = vpack.c.bf16 %v3931_v55, %v3930_v37 }
 0x81c   : > { %3942 = vst [vmem:[#allocation2 + $0xa0] sm:$0xff] %v3938_v17  ;;  %4050 = vrot.lane.b32.xlu2 %v8135_v24, %s5915_s22  ;;  %4042 = vrot.lane.b32.xlu0 %v8126_v12, %s5915_s22 }
 0x81d   : > { %4044 = vrot.lane.b32.xlu1 %v8140_v57, %s5915_s22  ;;  %v4126_v57 = vld [vmem:[%s8666_s8] sm:$0xff] }
 0x81e   : > { %v8333_v51 = vpop.permute.xlu0 %3798  ;;  %v3957_v58 = vpop.permute.xlu2 %3956 }
 0x81f   : > { %v8335_v47 = vpop.permute.xlu1 %3952  ;;  %v3964_v24 = vsel %vm3962_vm11, %v3949_v63, %v3957_v58  ;;  %v3968_v12 = vsel %vm3962_vm11, %v3957_v58, %v3949_v63  ;;  %v8381_v63 = vperm.slane %v4020_v14, 0 }
 0x820   : > { %v3980_v3 = vmul.f32 %v8327_v30, %v3964_v24  ;;  %v3981_v34 = vmul.f32 %v8329_v1, %v3968_v12 }
 0x822   : > { %v3987_v35 = vpack.c.bf16 %v3981_v34, %v3980_v3 }
 0x824   : > { %3991 = vst [vmem:[#allocation2 + $0xc8] sm:$0xff] %v3987_v35  ;;  %4052 = vrot.lane.b32.xlu0 %v8149_v21, %s5915_s22  ;;  %s5840_s22 = scalar_lea.hbm %s8669_s11, 32 }
 0x825   : > { %4129 = vperm.xlu1 %5728, %v4126_v57   ;;  %p5842_p4 = scmp.lt.s32.totalorder %s5840_s22, %s5836_s30 }
 0x826   : > { %v8353_v7 = vpop.permute.xlu0 %3703  ;;  %v3805_v56 = vpop.permute.xlu2 %3804 }
 0x827   : > { %v8355_v33 = vpop.permute.xlu1 %3800  ;;  %v3812_v62 = vsel %vm3810_vm12, %v3797_v13, %v3805_v56  ;;  %v3816_v27 = vsel %vm3810_vm12, %v3805_v56, %v3797_v13  ;;  %v8383_v13 = vperm.slane %v4020_v14, 1  ;;  %v8410_v56 = vperm.slane %v3868_v46, 0  ;;  %p5843_p7 = por %p5842_p4, %p5841_p3 }
 0x828   : > { %v3828_v21 = vmul.f32 %v8349_v6, %v3816_v27  ;;  %v3829_v41 = vmul.f32 %v8351_v2, %v3812_v62  ;;  %v8412_v62 = vperm.slane %v3868_v46, 1 }
 0x829   : > { %p5844_p8 = pnand %p5843_p7, %p5839_p2 }
 0x82a   : > { %v3835_v43 = vpack.c.bf16 %v3829_v41, %v3828_v21 }
 0x82c   : > { %3839 = vst [vmem:[#allocation2 + $0x48] sm:$0xff] %v3835_v43 }
 0x82e   : > { %v8368_v8 = vpop.permute.xlu0 %3848  ;;  %v3757_v25 = vpop.permute.xlu2 %3756 }
 0x82f   : > { %v8370_v31 = vpop.permute.xlu1 %3705  ;;  %v3764_v50 = vsel %vm3762_vm13, %v8283_v36, %v3757_v25  ;;  %v3768_v45 = vsel %vm3762_vm13, %v3757_v25, %v8283_v36 }
 0x830   : > { %v3780_v4 = vmul.f32 %v8364_v28, %v3768_v45  ;;  %v3781_v40 = vmul.f32 %v8366_v26, %v3764_v50 }
 0x832   : > { %v3787_v44 = vpack.c.bf16 %v3781_v40, %v3780_v4 }
 0x834   : > { %3791 = vst [vmem:[#allocation2 + $0x28] sm:$0xff] %v3787_v44 }
 0x836   : > { %v4007_v52 = vpop.permute.xlu2 %4006  ;;  %v4003_v48 = vpop.permute.xlu0 %4002 }
 0x837   : > { %v4013_v39 = vsel %vm4010_vm14, %v8295_v38, %v4007_v52  ;;  %v4017_v36 = vsel %vm4010_vm14, %v4007_v52, %v8295_v38  ;;  %v3955_v23 = vpop.permute.xlu1 %3954  ;;  %v4011_v37 = vsel %vm4010_vm14, %v8255_v16, %v4003_v48  ;;  %v4015_v55 = vsel %vm4010_vm14, %v4003_v48, %v8255_v16 }
 0x838   : > { %v4030_v9 = vmul.f32 %v8381_v63, %v4013_v39  ;;  %v4031_v17 = vmul.f32 %v8383_v13, %v4017_v36  ;;  %v3963_v58 = vsel %vm3962_vm11, %v8229_v10, %v3955_v23  ;;  %v3967_v38 = vsel %vm3962_vm11, %v3955_v23, %v8229_v10 }
 0x839   : > { %v3978_v24 = vmul.f32 %v8327_v30, %v3963_v58  ;;  %v3979_v12 = vmul.f32 %v8329_v1, %v3967_v38  ;;  %v4026_v3 = vmul.f32 %v8381_v63, %v4011_v37  ;;  %v4027_v16 = vmul.f32 %v8383_v13, %v4015_v55 }
 0x83a   : > { %v4036_v34 = vpack.c.bf16 %v4031_v17, %v4030_v9 }
 0x83b   : > { %v3986_v35 = vpack.c.bf16 %v3979_v12, %v3978_v24  ;;  %v4034_v57 = vpack.c.bf16 %v4027_v16, %v4026_v3 }
 0x83c   : > { %4040 = vst [vmem:[#allocation2 + $0xf0] sm:$0xff] %v4036_v34 }
 0x83d   : > { %3990 = vst [vmem:[#allocation2 + $0xc0] sm:$0xff] %v3986_v35 }
 0x83e   : > { %4038 = vst [vmem:[#allocation2 + $0xe0] sm:$0xff] %v4034_v57  ;;  %v3959_v10 = vpop.permute.xlu2 %3958  ;;  %v3851_v27 = vpop.permute.xlu0 %3850 }
 0x83f   : > { %v3965_v21 = vsel %vm3962_vm11, %v8312_v22, %v3959_v10  ;;  %v3969_v41 = vsel %vm3962_vm11, %v3959_v10, %v8312_v22  ;;  %v3803_v61 = vpop.permute.xlu1 %3802  ;;  %v3859_v43 = vsel %vm3858_vm15, %v8265_v59, %v3851_v27  ;;  %v3863_v25 = vsel %vm3858_vm15, %v3851_v27, %v8265_v59 }
 0x840   : > { %v3982_v50 = vmul.f32 %v8327_v30, %v3965_v21  ;;  %v3983_v45 = vmul.f32 %v8329_v1, %v3969_v41  ;;  %v3811_v4 = vsel %vm3810_vm12, %v8237_v53, %v3803_v61  ;;  %v3815_v22 = vsel %vm3810_vm12, %v3803_v61, %v8237_v53 }
 0x841   : > { %v3826_v40 = vmul.f32 %v8349_v6, %v3815_v22  ;;  %v3827_v14 = vmul.f32 %v8351_v2, %v3811_v4  ;;  %v3874_v44 = vmul.f32 %v8410_v56, %v3863_v25  ;;  %v3875_v59 = vmul.f32 %v8412_v62, %v3859_v43 }
 0x842   : > { %v3988_v52 = vpack.c.bf16 %v3983_v45, %v3982_v50 }
 0x843   : > { %v3834_v48 = vpack.c.bf16 %v3827_v14, %v3826_v40  ;;  %v3882_v39 = vpack.c.bf16 %v3875_v59, %v3874_v44  ;;  %v3724_v40 = vld [vmem:[#allocation8] sm:$0x3] }
 0x844   : > { %3992 = vst [vmem:[#allocation2 + $0xd0] sm:$0xff] %v3988_v52  ;;  %v8487_v52 = vperm.slane %v3724_v40, 0 }
 0x845   : > { %3838 = vst [vmem:[#allocation2 + $0x40] sm:$0xff] %v3834_v48  ;;  %v8489_v48 = vperm.slane %v3724_v40, 1 }
 0x846   : > { %3886 = vst [vmem:[#allocation2 + $0x60] sm:$0xff] %v3882_v39  ;;  %v3807_v36 = vpop.permute.xlu2 %3806  ;;  %v3909_v23 = vpop.permute.xlu0 %3908 }
 0x847   : > { %v3813_v53 = vsel %vm3810_vm12, %v8333_v51, %v3807_v36  ;;  %v3817_v37 = vsel %vm3810_vm12, %v3807_v36, %v8333_v51  ;;  %v3755_v55 = vpop.permute.xlu1 %3754  ;;  %v3916_v9 = vsel %vm3914_vm10, %v8275_v20, %v3909_v23  ;;  %v3920_v17 = vsel %vm3914_vm10, %v3909_v23, %v8275_v20 }
 0x848   : > { %v3830_v58 = vmul.f32 %v8349_v6, %v3817_v37  ;;  %v3831_v38 = vmul.f32 %v8351_v2, %v3813_v53  ;;  %v3763_v24 = vsel %vm3762_vm13, %v8245_v5, %v3755_v55  ;;  %v3767_v51 = vsel %vm3762_vm13, %v3755_v55, %v8245_v5 }
 0x849   : > { %v3778_v12 = vmul.f32 %v8364_v28, %v3767_v51  ;;  %v3779_v3 = vmul.f32 %v8366_v26, %v3763_v24  ;;  %v3932_v16 = vmul.f32 %v8306_v29, %v3916_v9  ;;  %v3933_v20 = vmul.f32 %v8308_v15, %v3920_v17 }
 0x84a   : > { %v3836_v34 = vpack.c.bf16 %v3831_v38, %v3830_v58 }
 0x84b   : > { %v3786_v46 = vpack.c.bf16 %v3779_v3, %v3778_v12  ;;  %v3939_v35 = vpack.c.bf16 %v3933_v20, %v3932_v16 }
 0x84c   : > { %3840 = vst [vmem:[#allocation2 + $0x50] sm:$0xff] %v3836_v34 }
 0x84d   : > { %3790 = vst [vmem:[#allocation2 + $0x20] sm:$0xff] %v3786_v46 }
 0x84e   : > { %3943 = vst [vmem:[#allocation2 + $0xa8] sm:$0xff] %v3939_v35  ;;  %v3857_v57 = vpop.permute.xlu2 %3856  ;;  %v3911_v10 = vpop.permute.xlu0 %3910 }
 0x84f   : > { %v3862_v5 = vsel %vm3858_vm15, %v8368_v8, %v3857_v57  ;;  %v3866_v27 = vsel %vm3858_vm15, %v3857_v57, %v8368_v8  ;;  %v4005_v21 = vpop.permute.xlu1 %4004  ;;  %v3917_v41 = vsel %vm3914_vm10, %v8287_v0, %v3911_v10  ;;  %v3921_v61 = vsel %vm3914_vm10, %v3911_v10, %v8287_v0 }
 0x850   : > { %v3880_v43 = vmul.f32 %v8410_v56, %v3866_v27  ;;  %v3881_v25 = vmul.f32 %v8412_v62, %v3862_v5  ;;  %v4012_v50 = vsel %vm4010_vm14, %v8253_v18, %v4005_v21  ;;  %v4016_v8 = vsel %vm4010_vm14, %v4005_v21, %v8253_v18 }
 0x851   : > { %v4028_v45 = vmul.f32 %v8381_v63, %v4012_v50  ;;  %v4029_v4 = vmul.f32 %v8383_v13, %v4016_v8  ;;  %v3934_v22 = vmul.f32 %v8306_v29, %v3917_v41  ;;  %v3935_v0 = vmul.f32 %v8308_v15, %v3921_v61  ;;  %v5391_v50 = vld [vmem:[#allocation2 + $0xf0] sm:$0xf] }
 0x852   : > { %v3885_v14 = vpack.c.bf16 %v3881_v25, %v3880_v43 }
 0x853   : > { %v4035_v44 = vpack.c.bf16 %v4029_v4, %v4028_v45  ;;  %v3940_v59 = vpack.c.bf16 %v3935_v0, %v3934_v22  ;;  %v5621_v45 = vld [vmem:[#allocation2 + $0xf4] sm:$0xf] }
 0x854   : > { %3889 = vst [vmem:[#allocation2 + $0x78] sm:$0xff] %v3885_v14 }
 0x855   : > { %4039 = vst [vmem:[#allocation2 + $0xe8] sm:$0xff] %v4035_v44 }
 0x856   : > { %3944 = vst [vmem:[#allocation2 + $0xb0] sm:$0xff] %v3940_v59  ;;  %v3712_v18 = vpop.permute.xlu2 %3711  ;;  %v3759_v39 = vpop.permute.xlu0 %3758 }
 0x857   : > { %v3718_v36 = vsel %vm3715_vm0, %v8353_v7, %v3712_v18  ;;  %v3722_v23 = vsel %vm3715_vm0, %v3712_v18, %v8353_v7  ;;  %v3853_v53 = vpop.permute.xlu1 %3852  ;;  %v3765_v37 = vsel %vm3762_vm13, %v8299_v32, %v3759_v39  ;;  %v3769_v55 = vsel %vm3762_vm13, %v3759_v39, %v8299_v32 }
 0x858   : > { %v3734_v9 = vmul.f32 %v8487_v52, %v3722_v23  ;;  %v3735_v17 = vmul.f32 %v8489_v48, %v3718_v36  ;;  %v3860_v58 = vsel %vm3858_vm15, %v8263_v54, %v3853_v53  ;;  %v3864_v7 = vsel %vm3858_vm15, %v3853_v53, %v8263_v54  ;;  %v5383_v53 = vld [vmem:[#allocation2 + $0xe0] sm:$0xf] }
 0x859   : > { %v3876_v38 = vmul.f32 %v8410_v56, %v3864_v7  ;;  %v3877_v24 = vmul.f32 %v8412_v62, %v3860_v58  ;;  %v3782_v51 = vmul.f32 %v8364_v28, %v3769_v55  ;;  %v3783_v32 = vmul.f32 %v8366_v26, %v3765_v37  ;;  %v5619_v58 = vld [vmem:[#allocation2 + $0xe4] sm:$0xf] }
 0x85a   : > { %v3740_v12 = vpack.c.bf16 %v3735_v17, %v3734_v9 }
 0x85b   : > { %v3883_v3 = vpack.c.bf16 %v3877_v24, %v3876_v38  ;;  %v3788_v16 = vpack.c.bf16 %v3783_v32, %v3782_v51  ;;  %v5329_v8 = vld [vmem:[#allocation2 + $0x78] sm:$0xf0] }
 0x85c   : > { %3744 = vst [vmem:[#allocation2 + $0x10] sm:$0xff] %v3740_v12  ;;  %v5620_v40 = vld [vmem:[#allocation2 + $0xe4] sm:$0xf0]  ;;  %v5385_v39 = vld [vmem:[#allocation2 + $0xe8] sm:$0xf0] }
 0x85d   : > { %3887 = vst [vmem:[#allocation2 + $0x68] sm:$0xff] %v3883_v3  ;;  %v5384_v9 = vor.u32 %v5620_v40, %v5383_v53  ;;  %v5388_v51 = vor.u32 %v5619_v58, %v5385_v39  ;;  %v5311_v58 = vld [vmem:[#allocation2 + $0x50] sm:$0xf] }
 0x85e   : > { %3792 = vst [vmem:[#allocation2 + $0x30] sm:$0xff] %v3788_v16  ;;  %v4009_v20 = vpop.permute.xlu0 %4008 }
 0x85f   : > { %v3855_v34 = vpop.permute.xlu1 %3854  ;;  %v4014_v54 = vsel %vm4010_vm14, %v8314_v42, %v4009_v20  ;;  %v4018_v46 = vsel %vm4010_vm14, %v4009_v20, %v8314_v42  ;;  %v5319_v20 = vld [vmem:[#allocation2 + $0x60] sm:$0xf] }
 0x860   : > { %v3861_v35 = vsel %vm3858_vm15, %v8273_v60, %v3855_v34  ;;  %v3865_v57 = vsel %vm3858_vm15, %v3855_v34, %v8273_v60  ;;  %v4032_v10 = vmul.f32 %v8381_v63, %v4014_v54  ;;  %v4033_v5 = vmul.f32 %v8383_v13, %v4018_v46  ;;  %v5603_v34 = vld [vmem:[#allocation2 + $0x64] sm:$0xf] }
 0x861   : > { %v3878_v27 = vmul.f32 %v8410_v56, %v3865_v57  ;;  %v3879_v21 = vmul.f32 %v8412_v62, %v3861_v35  ;;  %v8537_v56 = vpop.permute.xlu2 %3701  ;;  %v5606_v62 = vld [vmem:[#allocation2 + $0x74] sm:$0xf0] }
 0x862   : > { %v4037_v41 = vpack.c.bf16 %v4033_v5, %v4032_v10 }
 0x863   : > { %v3884_v61 = vpack.c.bf16 %v3879_v21, %v3878_v27 }
 0x864   : > { %4041 = vst [vmem:[#allocation2 + $0xf8] sm:$0xff] %v4037_v41  ;;  %v5604_v55 = vld [vmem:[#allocation2 + $0x64] sm:$0xf0]  ;;  %v5321_v17 = vld [vmem:[#allocation2 + $0x68] sm:$0xf0] }
 0x865   : > { %3888 = vst [vmem:[#allocation2 + $0x70] sm:$0xff] %v3884_v61  ;;  %v5324_v35 = vor.u32 %v5603_v34, %v5321_v17  ;;  %v5612_v34 = vld [vmem:[#allocation2 + $0xa4] sm:$0xf0] }
 0x866   : > { %v3708_v42 = vpop.permute.xlu0 %3707 }
 0x867   : > { %v3700_v43 = vpop.permute.xlu1 %3699 }
 0x868   : > { %v3716_v25 = vsel %vm3715_vm0, %v3700_v43, %v3708_v42  ;;  %v3720_v60 = vsel %vm3715_vm0, %v3708_v42, %v3700_v43  ;;  %v4068_v43 = vld [vmem:[#allocation8 + $0x10] sm:$0x3] }
 0x869   : > { %v3730_v63 = vmul.f32 %v8487_v52, %v3720_v60  ;;  %v3731_v13 = vmul.f32 %v8489_v48, %v3716_v25  ;;  %v8555_v5 = vpop.permute.xlu2 %4046  ;;  %v5375_v60 = vld [vmem:[#allocation2 + $0xd0] sm:$0xf] }
 0x86b   : > { %v3738_v4 = vpack.c.bf16 %v3731_v13, %v3730_v63  ;;  %v5622_v22 = vld [vmem:[#allocation2 + $0xf4] sm:$0xf0]  ;;  %v5393_v0 = vld [vmem:[#allocation2 + $0xf8] sm:$0xf0]  ;;  %v5367_v63 = vld [vmem:[#allocation2 + $0xc0] sm:$0xf] }
 0x86c   : > { %v5327_v14 = vld [vmem:[#allocation2 + $0x70] sm:$0xf]  ;;  %v5605_v44 = vld [vmem:[#allocation2 + $0x74] sm:$0xf]  ;;  %v5392_v59 = vor.u32 %v5622_v22, %v5391_v50  ;;  %v5396_v18 = vor.u32 %v5621_v45, %v5393_v0  ;;  %v5369_v22 = vld [vmem:[#allocation2 + $0xc8] sm:$0xf0] }
 0x86d   : > { %3742 = vst [vmem:[#allocation2] sm:$0xff] %v3738_v4  ;;  %v5328_v36 = vor.u32 %v5606_v62, %v5327_v14  ;;  %v5332_v23 = vor.u32 %v5605_v44, %v5329_v8  ;;  %v5616_v4 = vld [vmem:[#allocation2 + $0xc4] sm:$0xf0] }
 0x86e   : > { %4338 = vmatpush.bf16.msra.mxu3 %v5392_v59  ;;  %4377 = vmatpush.bf16.msrb.mxu2 %v5396_v18  ;;  %v3961_v37 = vpop.permute.xlu0 %3960  ;;  %v5368_v44 = vor.u32 %v5616_v4, %v5367_v63  ;;  %v5609_v4 = vld [vmem:[#allocation2 + $0x94] sm:$0xf] }
 0x86f   : > { %4325 = vmatpush.bf16.msrb.mxu0 %v5328_v36  ;;  %4364 = vmatpush.bf16.msrb.mxu1 %v5332_v23  ;;  %v3913_v7 = vpop.permute.xlu1 %3912  ;;  %v3966_v38 = vsel %vm3962_vm11, %v8335_v47, %v3961_v37  ;;  %v3970_v24 = vsel %vm3962_vm11, %v3961_v37, %v8335_v47  ;;  %v5320_v47 = vor.u32 %v5604_v55, %v5319_v20  ;;  %v5613_v20 = vld [vmem:[#allocation2 + $0xb4] sm:$0xf] }
 0x870   : > { %v3918_v32 = vsel %vm3914_vm10, %v8285_v11, %v3913_v7  ;;  %v3922_v12 = vsel %vm3914_vm10, %v3913_v7, %v8285_v11  ;;  %v3984_v3 = vmul.f32 %v8327_v30, %v3966_v38  ;;  %v3985_v16 = vmul.f32 %v8329_v1, %v3970_v24  ;;  %v5601_v7 = vld [vmem:[#allocation2 + $0x54] sm:$0xf] }
 0x871   : > { %v3936_v54 = vmul.f32 %v8306_v29, %v3918_v32  ;;  %v3937_v46 = vmul.f32 %v8308_v15, %v3922_v12  ;;  %v5359_v32 = vld [vmem:[#allocation2 + $0xb0] sm:$0xf] }
 0x872   : > { %v3989_v57 = vpack.c.bf16 %v3985_v16, %v3984_v3  ;;  %4339 = vmatpush.bf16.msra.mxu3 %v5384_v9  ;;  %4378 = vmatpush.bf16.msrb.mxu2 %v5388_v51  ;;  %v5303_v9 = vld [vmem:[#allocation2 + $0x40] sm:$0xf] }
 0x873   : > { %v3941_v10 = vpack.c.bf16 %v3937_v46, %v3936_v54  ;;  %4326 = vmatpush.bf16.msrb.mxu0 %v5320_v47  ;;  %4365 = vmatpush.bf16.msrb.mxu1 %v5324_v35  ;;  %v5600_v46 = vld [vmem:[#allocation2 + $0x44] sm:$0xf0] }
 0x874   : > { %3993 = vst [vmem:[#allocation2 + $0xd8] sm:$0xff] %v3989_v57  ;;  %v5304_v35 = vor.u32 %v5600_v46, %v5303_v9  ;;  %v5351_v57 = vld [vmem:[#allocation2 + $0xa0] sm:$0xf] }
 0x875   : > { %3945 = vst [vmem:[#allocation2 + $0xb8] sm:$0xff] %v3941_v10  ;;  %v5599_v10 = vld [vmem:[#allocation2 + $0x44] sm:$0xf] }
 0x876   : > { %v3809_v11 = vpop.permute.xlu0 %3808 }
 0x877   : > { %v3761_v30 = vpop.permute.xlu1 %3760  ;;  %v3814_v29 = vsel %vm3810_vm12, %v8355_v33, %v3809_v11  ;;  %v3818_v15 = vsel %vm3810_vm12, %v3809_v11, %v8355_v33  ;;  %v5617_v33 = vld [vmem:[#allocation2 + $0xd4] sm:$0xf]  ;;  %v5353_v11 = vld [vmem:[#allocation2 + $0xa8] sm:$0xf0] }
 0x878   : > { %v3766_v1 = vsel %vm3762_vm13, %v8297_v19, %v3761_v30  ;;  %v3770_v27 = vsel %vm3762_vm13, %v3761_v30, %v8297_v19  ;;  %v3832_v21 = vmul.f32 %v8349_v6, %v3818_v15  ;;  %v3833_v41 = vmul.f32 %v8351_v2, %v3814_v29 }
 0x879   : > { %v3784_v61 = vmul.f32 %v8364_v28, %v3770_v27  ;;  %v3785_v42 = vmul.f32 %v8366_v26, %v3766_v1  ;;  %v8574_v6 = vperm.slane %v4068_v43, 0  ;;  %v8576_v2 = vperm.slane %v4068_v43, 1  ;;  %v5615_v28 = vld [vmem:[#allocation2 + $0xc4] sm:$0xf]  ;;  %v4057_v26 = vpop.permute.xlu2 %4056 }
 0x87a   : > { %v3837_v25 = vpack.c.bf16 %v3833_v41, %v3832_v21  ;;  %v5372_v59 = vor.u32 %v5615_v28, %v5369_v22  ;;  %v5352_v1 = vor.u32 %v5612_v34, %v5351_v57  ;;  %v5611_v43 = vld [vmem:[#allocation2 + $0xa4] sm:$0xf] }
 0x87b   : > { %v3789_v13 = vpack.c.bf16 %v3785_v42, %v3784_v61  ;;  %v5618_v50 = vld [vmem:[#allocation2 + $0xd4] sm:$0xf0]  ;;  %v5377_v62 = vld [vmem:[#allocation2 + $0xd8] sm:$0xf0]  ;;  %v5305_v42 = vld [vmem:[#allocation2 + $0x48] sm:$0xf0] }
 0x87c   : > { %3841 = vst [vmem:[#allocation2 + $0x58] sm:$0xff] %v3837_v25  ;;  %v5376_v19 = vor.u32 %v5618_v50, %v5375_v60  ;;  %v5380_v8 = vor.u32 %v5617_v33, %v5377_v62  ;;  %v5614_v55 = vld [vmem:[#allocation2 + $0xb4] sm:$0xf0]  ;;  %v5361_v38 = vld [vmem:[#allocation2 + $0xb8] sm:$0xf0]  ;;  %v5356_v33 = vor.u32 %v5611_v43, %v5353_v11 }
 0x87d   : > { %3793 = vst [vmem:[#allocation2 + $0x38] sm:$0xff] %v3789_v13  ;;  %v5360_v3 = vor.u32 %v5614_v55, %v5359_v32  ;;  %v5364_v54 = vor.u32 %v5613_v20, %v5361_v38  ;;  %v5610_v13 = vld [vmem:[#allocation2 + $0x94] sm:$0xf0]  ;;  %v5335_v55 = vld [vmem:[#allocation2 + $0x80] sm:$0xf] }
 0x87e   : > { %4340 = vmatpush.bf16.msra.mxu3 %v5376_v19  ;;  %4379 = vmatpush.bf16.msrb.mxu2 %v5380_v8  ;;  %v4049_v45 = vpop.permute.xlu0 %4048  ;;  %v5345_v19 = vld [vmem:[#allocation2 + $0x98] sm:$0xf0]  ;;  %v5343_v8 = vld [vmem:[#allocation2 + $0x90] sm:$0xf]  ;;  %v5289_v38 = vld [vmem:[#allocation2 + $0x28] sm:$0xf0] }
 0x87f   : > { %v3710_v0 = vpop.permute.xlu1 %3709  ;;  %v4062_v40 = vsel %vm4058_vm1, %v4049_v45, %v4057_v26  ;;  %v4066_v14 = vsel %vm4058_vm1, %v4057_v26, %v4049_v45  ;;  %v5344_v26 = vor.u32 %v5610_v13, %v5343_v8  ;;  %v5597_v45 = vld [vmem:[#allocation2 + $0x34] sm:$0xf] }
 0x880   : > { %v3717_v18 = vsel %vm3715_vm0, %v8537_v56, %v3710_v0  ;;  %v3721_v39 = vsel %vm3715_vm0, %v3710_v0, %v8537_v56  ;;  %v4080_v36 = vmul.f32 %v8574_v6, %v4062_v40  ;;  %v4081_v23 = vmul.f32 %v8576_v2, %v4066_v14  ;;  %v5287_v40 = vld [vmem:[#allocation2 + $0x20] sm:$0xf]  ;;  %v5608_v14 = vld [vmem:[#allocation2 + $0x84] sm:$0xf0]  ;;  %v5593_v20 = vld [vmem:[#allocation2 + $0x14] sm:$0xf] }
 0x881   : > { %v3732_v53 = vmul.f32 %v8487_v52, %v3721_v39  ;;  %v3733_v37 = vmul.f32 %v8489_v48, %v3717_v18  ;;  %v5348_v0 = vor.u32 %v5609_v4, %v5345_v19  ;;  %v5595_v39 = vld [vmem:[#allocation2 + $0x24] sm:$0xf] }
 0x882   : > { %v4085_v17 = vpack.c.bf16 %v4081_v23, %v4080_v36  ;;  %4341 = vmatpush.bf16.msra.mxu3 %v5368_v44  ;;  %4380 = vmatpush.bf16.msrb.mxu2 %v5372_v59  ;;  %v4051_v59 = vpop.permute.xlu2 %4050  ;;  %v5337_v36 = vld [vmem:[#allocation2 + $0x88] sm:$0xf0] }
 0x883   : > { %v3739_v24 = vpack.c.bf16 %v3733_v37, %v3732_v53  ;;  %v5602_v51 = vld [vmem:[#allocation2 + $0x54] sm:$0xf0]  ;;  %v5313_v56 = vld [vmem:[#allocation2 + $0x58] sm:$0xf0]  ;;  %v5596_v37 = vld [vmem:[#allocation2 + $0x24] sm:$0xf0] }
 0x884   : > { %4089 = vst [vmem:[#allocation2 + $0x118] sm:$0xff] %v4085_v17  ;;  %v5312_v12 = vor.u32 %v5602_v51, %v5311_v58  ;;  %v5316_v16 = vor.u32 %v5601_v7, %v5313_v56  ;;  %v5598_v63 = vld [vmem:[#allocation2 + $0x34] sm:$0xf0]  ;;  %v5297_v62 = vld [vmem:[#allocation2 + $0x38] sm:$0xf0]  ;;  %v5288_v58 = vor.u32 %v5596_v37, %v5287_v40  ;;  %v5336_v7 = vor.u32 %v5608_v14, %v5335_v55 }
 0x885   : > { %3743 = vst [vmem:[#allocation2 + $0x8] sm:$0xff] %v3739_v24  ;;  %v5300_v22 = vor.u32 %v5597_v45, %v5297_v62  ;;  %v5607_v24 = vld [vmem:[#allocation2 + $0x84] sm:$0xf]  ;;  %v5292_v51 = vor.u32 %v5595_v39, %v5289_v38 }
 0x886   : > { %4327 = vmatpush.bf16.msrb.mxu0 %v5312_v12  ;;  %4342 = vmatpush.bf16.msra.mxu3 %v5360_v3  ;;  %v3714_v47 = vpop.permute.xlu0 %3713  ;;  %v5340_v32 = vor.u32 %v5607_v24, %v5337_v36  ;;  %v5279_v3 = vld [vmem:[#allocation2 + $0x10] sm:$0xf] }
 0x887   : > { %v4055_v30 = vpop.permute.xlu1 %4054  ;;  %4366 = vmatpush.bf16.msrb.mxu1 %v5316_v16  ;;  %4381 = vmatpush.bf16.msrb.mxu2 %v5364_v54  ;;  %v3719_v29 = vsel %vm3715_vm0, %v8370_v31, %v3714_v47  ;;  %v3723_v15 = vsel %vm3715_vm0, %v3714_v47, %v8370_v31  ;;  %v5308_v31 = vor.u32 %v5599_v10, %v5305_v42 }
 0x888   : > { %v4061_v27 = vsel %vm4058_vm1, %v8555_v5, %v4055_v30  ;;  %v4065_v21 = vsel %vm4058_vm1, %v4055_v30, %v8555_v5  ;;  %v3736_v41 = vmul.f32 %v8487_v52, %v3723_v15  ;;  %v3737_v61 = vmul.f32 %v8489_v48, %v3719_v29  ;;  %v8608_v5 = vld [vmem:[#allocation6] sm:$0xff]  ;;  %v5295_v48 = vld [vmem:[#allocation2 + $0x30] sm:$0xf] }
 0x889   : > { %v4078_v25 = vmul.f32 %v8574_v6, %v4061_v27  ;;  %v4079_v60 = vmul.f32 %v8576_v2, %v4065_v21  ;;  %v5296_v28 = vor.u32 %v5598_v63, %v5295_v48  ;;  %v4135_v44 = vunpack.c.h.b16 %v8608_v5 }
 0x88a   : > { %v3741_v50 = vpack.c.bf16 %v3737_v61, %v3736_v41  ;;  %4328 = vmatpush.bf16.msrb.mxu0 %v5304_v35  ;;  %4343 = vmatpush.bf16.msra.mxu3 %v5352_v1  ;;  %v4134_v10 = vunpack.c.l.b16 %v8608_v5  ;;  %v5271_v41 = vld [vmem:[#allocation2] sm:$0xf] }
 0x88b   : > { %v4084_v52 = vpack.c.bf16 %v4079_v60, %v4078_v25  ;;  %4367 = vmatpush.bf16.msrb.mxu1 %v5308_v31  ;;  %4382 = vmatpush.bf16.msrb.mxu2 %v5356_v33  ;;  %v4138_v56 = vpack.c.b16 %v4135_v44, %v4135_v44  ;;  %v5409_v35 = vld [vmem:[#allocation2 + $0x118] sm:$0xf0]  ;;  %v5591_v25 = vld [vmem:[#allocation2 + $0x4] sm:$0xf]  ;;  %v5626_v60 = vld [vmem:[#allocation2 + $0x114] sm:$0xf0] }
 0x88c   : > { %3745 = vst [vmem:[#allocation2 + $0x18] sm:$0xff] %v3741_v50  ;;  %v5592_v11 = vld [vmem:[#allocation2 + $0x4] sm:$0xf0]  ;;  %v5273_v15 = vld [vmem:[#allocation2 + $0x8] sm:$0xf0]  ;;  %v4137_v31 = vpack.c.b16 %v4134_v10, %v4134_v10  ;;  %v4136_v50 = vunpack.c.l.b16 %v3698_v49 }
 0x88d   : > { %4088 = vst [vmem:[#allocation2 + $0x110] sm:$0xff] %v4084_v52  ;;  %v5272_v43 = vor.u32 %v5592_v11, %v5271_v41  ;;  %v5276_v33 = vor.u32 %v5591_v25, %v5273_v15 }
 0x88e   : > { %4329 = vmatpush.bf16.msrb.mxu0 %v5296_v28  ;;  %4344 = vmatpush.bf16.msra.mxu3 %v5344_v26  ;;  %v4043_v18 = vpop.permute.xlu0 %4042  ;;  %v4139_v48 = vpack.c.b16 %v4136_v50, %v4136_v50 }
 0x88f   : > { %4368 = vmatpush.bf16.msrb.mxu1 %v5300_v22  ;;  %4383 = vmatpush.bf16.msrb.mxu2 %v5348_v0  ;;  %v4059_v23 = vsel %vm4058_vm1, %v4043_v18, %v4051_v59  ;;  %v4063_v53 = vsel %vm4058_vm1, %v4051_v59, %v4043_v18  ;;  %v4045_v30 = vpop.permute.xlu1 %4044 }
 0x890   : > { %v4074_v9 = vmul.f32 %v8574_v6, %v4059_v23  ;;  %v4075_v17 = vmul.f32 %v8576_v2, %v4063_v53 }
 0x892   : > { %v4082_v12 = vpack.c.bf16 %v4075_v17, %v4074_v9  ;;  %4330 = vmatpush.bf16.msrb.mxu0 %v5288_v58  ;;  %4345 = vmatpush.bf16.msra.mxu3 %v5336_v7 }
 0x893   : > { %4369 = vmatpush.bf16.msrb.mxu1 %v5292_v51  ;;  %4384 = vmatpush.bf16.msrb.mxu2 %v5340_v32  ;;  %v5594_v16 = vld [vmem:[#allocation2 + $0x14] sm:$0xf0]  ;;  %v5281_v34 = vld [vmem:[#allocation2 + $0x18] sm:$0xf0] }
 0x894   : > { %4086 = vst [vmem:[#allocation2 + $0x100] sm:$0xff] %v4082_v12  ;;  %v5280_v54 = vor.u32 %v5594_v16, %v5279_v3  ;;  %v5284_v46 = vor.u32 %v5593_v20, %v5281_v34  ;;  %v5625_v47 = vld [vmem:[#allocation2 + $0x114] sm:$0xf]  ;;  %v5407_v1 = vld [vmem:[#allocation2 + $0x110] sm:$0xf] }
 0x895   : > { %v5412_v57 = vor.u32 %v5625_v47, %v5409_v35  ;;  %4346 = vmatmul.bf16.vlgmr.msra.gmra.mxu3 %v4138_v56  ;;  %v5408_v63 = vor.u32 %v5626_v60, %v5407_v1 }
 0x896   : > { %4331 = vmatpush.bf16.msrb.mxu0 %v5280_v54  ;;  %v4053_v29 = vpop.permute.xlu0 %4052  ;;  %4385 = vmatmul.bf16.vlgmr.msrb.gmra.mxu2 %v4138_v56 }
 0x897   : > { %4370 = vmatpush.bf16.msrb.mxu1 %v5284_v46  ;;  %v4060_v27 = vsel %vm4058_vm1, %v4045_v30, %v4053_v29  ;;  %v4064_v21 = vsel %vm4058_vm1, %v4053_v29, %v4045_v30  ;;  %4396 = vmatpush.bf16.msrb.mxu3 %v5412_v57  ;;  %v4130_v14 = vpop.permute.xlu1 %4129 }
 0x898   : > { %v4076_v61 = vmul.f32 %v8574_v6, %v4060_v27  ;;  %v4077_v42 = vmul.f32 %v8576_v2, %v4064_v21 }
 0x89a   : > { %v4083_v13 = vpack.c.bf16 %v4077_v42, %v4076_v61  ;;  %4332 = vmatpush.bf16.msrb.mxu0 %v5272_v43 }
 0x89b   : > { %4371 = vmatpush.bf16.msrb.mxu1 %v5276_v33  ;;  %v5399_v62 = vld [vmem:[#allocation2 + $0x100] sm:$0xf]  ;;  %v5623_v6 = vld [vmem:[#allocation2 + $0x104] sm:$0xf] }
 0x89c   : > { %4087 = vst [vmem:[#allocation2 + $0x108] sm:$0xff] %v4083_v13 }
 0x89d   : > { %4333 = vmatmul.bf16.vlgmr.msrb.gmra.mxu0 %v4137_v31 }
 0x89e   : > { %4357 = vmatpush.bf16.msra.mxu0 %v5408_v63  ;;  %4372 = vmatmul.bf16.vlgmr.msrb.gmra.mxu1 %v4137_v31 }
 0x8a3   : > { %v5624_v19 = vld [vmem:[#allocation2 + $0x104] sm:$0xf0]  ;;  %v5401_v2 = vld [vmem:[#allocation2 + $0x108] sm:$0xf0] }
 0x8a4   : > { %v5400_v5 = vor.u32 %v5624_v19, %v5399_v62  ;;  %v5404_v52 = vor.u32 %v5623_v6, %v5401_v2 }
 0x8a6   : > { %4358 = vmatpush.bf16.msra.mxu0 %v5400_v5  ;;  %4397 = vmatpush.bf16.msrb.mxu3 %v5404_v52 }
 0x8a9   : > { %5414 = vmatmul.msk.bf16.vlgmr.msrb.gmra.mxu3 %vm1202_vm9, %v4139_v48 }
 0x8ad   : > { %5413 = vmatmul.msk.bf16.vlgmr.msra.gmra.mxu0 %vm1202_vm9, %v4139_v48 }
 0x918   : > { %v4347_v8 = vpop.f32.mrf.mxu3 }
 0x919   : > { %v4386_v28 = vpop.f32.mrf.mxu2 }
 0x91a   : > { %v4334_v26 = vpop.f32.mrf.mxu0 }
 0x91b   : > { %v4373_v45 = vpop.f32.mrf.mxu1  ;;  %v4335_v44 = vadd.f32 %v4334_v26, %v4130_v14 }
 0x91c   : > { %v4374_v59 = vadd.f32 %v4373_v45, %v4130_v14 }
 0x91d   : > { %v4348_v18 = vadd.f32 %v4347_v8, %v4335_v44 }
 0x91e   : > { %v4387_v36 = vadd.f32 %v4386_v28, %v4374_v59 }
 0x920   : > { %v4349_v4 = vpop.f32.mrf.mxu3 }
 0x921   : > { %v4388_v22 = vpop.f32.mrf.mxu2 }
 0x922   : > { %v4336_v0 = vpop.f32.mrf.mxu0 }
 0x923   : > { %v4375_v40 = vpop.f32.mrf.mxu1 }
 0x92a   : > { %v4360_v39 = vpop.f32.mrf.mxu0 }
 0x92b   : > { %v4361_v23 = vadd.f32 %v4360_v39, %v4348_v18 }
 0x92c   : > { %v4399_v53 = vpop.f32.mrf.mxu3 }
 0x92d   : > { %4403 = vst [vmem:[%s427_s15] sm:$0xff] %v4361_v23  ;;  %v4400_v37 = vadd.f32 %v4399_v53, %v4387_v36 }
 0x92f   : > { %4404 = vst [vmem:[%s427_s15 + $0x8] sm:$0xff] %v4400_v37 }
 0x930   : > { %5847 = shalt.err (!%p5844_p8)
}
 0x931   : > { %5648 = dma.vmem_to_hbm [thread:$0]  (%p6014_p5), %s4420_s24, 256, %s4422_s25, %s4406_s21  }
 0x932   : > { %v4362_v55 = vpop.f32.mrf.mxu0 }
 0x934   : > { %v4401_v9 = vpop.f32.mrf.mxu3 }
 0x935 PF: > { %p5670_p9 = scmp.ge.s32.totalorder %s5890_s20, 2  ;;  %s4433_s26 = sand.u32 1, %s5878_s17  }
 0x936   : > { %s4434_s28 = scalar_lea.sflag [#allocation5], %s4433_s26 }
 0x937   : > { %p5661_p10 = pnand %p5670_p9, %p6018_p6 }
 0x939   : > { %p5662_p11 = pneg %p5661_p10 }
 0x93b   : > { %5873 = dma.done.wait (%p5662_p11), %s4434_s28, 256  }
 0x93c   : > { %5875 = vsyncadd (%p5662_p11), %s4434_s28, 4294967040  ;;  %s8687_s20 = sld [smem:[#allocation14_spill]]  ;;  %s8690_s17 = smov %s5882_s18 }
 0x93d   : > { %s8688_s29 = sld [smem:[#allocation13_spill]] }
 0x93e   : > { %s8689_s19 = sld [smem:[#allocation15_spill]] }
 0x942   : > { %p23_p5 = scmp.ge.s32.totalorder %s8687_s20, 4  }
 0x943   : > { %s8691_s18 = smov %s8688_s29 }
 0x944   :  { %25 = sbr.rel (!%p23_p5) target bundleno = 8 (0x8), region = 130 }
 0x949   :  { %4440 = vsyncpa [#allocation4], 1 }
 0x94a   :  { %4442 = vsyncpa [#allocation4 + $0x1], 1 }
 0x94b   :  { %4443 = vsyncpa [#allocation7], 1 }
 0x94c   :  { %4444 = vsyncpa [#allocation5], 1 }
 0x94d   :  { %4446 = vsyncpa [#allocation5 + $0x1], 1 }

</bundles_post_ra>
